<compile_context>
chip_gen: v6e
topology: v6e:2x2x1
jax: 0.10.0
libtpu: 0.0.40
codegen_flags: <defaults>
</compile_context>

<pallas_src>
import jax
import jax.numpy as jnp
from jax.experimental import pallas as pl
from jax.experimental.pallas import tpu as pltpu

NEG_SLOPE = 0.01  # PyTorch LeakyReLU default negative_slope


def _leaky(x):
    return jnp.where(x > 0, x, NEG_SLOPE * x)


# ---------------- Pallas kernels ----------------

def conv_kernel(xph_ref, w_ref, b_ref, o_ref):
    """Conv2d(3,16,4,stride=2,pad=1) for one image, with no HBM im2col.

    xph_ref : (1, OH+1, OW+1, 12) bf16  phase view: [., u, v, c*4+ph*2+pw]
                                        = padded_x[c, 2u+ph, 2v+pw]
    w_ref   : (4, 16, 12)         bf16  [qh*2+qw, cout, c*4+ph*2+pw]
    b_ref   : (16, 1)             f32
    o_ref   : (1, 16, OH*OW)      bf16  channel-major -> NCHW flatten is free

    The stride-2 4x4 conv == a stride-1 2x2 conv over 12 phase channels:
    four taps, each a unit-stride (OH, OW, 12) window, each contracted on the
    MXU against a (16, 12) weight slice (q @ k.T - style NT dot), f32 acc.
    """
    ohp, owp = xph_ref.shape[1], xph_ref.shape[2]
    oh, ow = ohp - 1, owp - 1
    zc = xph_ref.shape[3]
    cout = w_ref.shape[1]

    # TODO(synk): merging the 4 taps into one K=48 contraction (lane concat of
    # the 12-wide slabs) would improve MXU utilization at 224x224 scale.
    acc = jnp.zeros((cout, oh * ow), jnp.float32)
    for t in range(4):                       # static unroll over the 2x2 taps
        qh, qw = t // 2, t % 2
        # Unit-stride window; (OH, OW, 12) -> (OH*OW, 12) is layout-trivial
        # because OW % 8 == 0 (sublane-aligned leading-dim merge).
        slab = xph_ref[0, qh:qh + oh, qw:qw + ow, :].reshape(oh * ow, zc)
        acc += jax.lax.dot_general(
            w_ref[t], slab,
            dimension_numbers=(((1,), (1,)), ((), ())),  # contract the 12s
            preferred_element_type=jnp.float32)
    acc = acc + b_ref[...]
    o_ref[0] = _leaky(acc).astype(o_ref.dtype)


def mlp_hidden_kernel(x_ref, w1_ref, b1_ref, h_ref, acc_ref):
    """h[:, n_tile] = LeakyReLU(feat @ w1[:, n_tile] + b1[:, n_tile]).

    Grid = (num_n "parallel", num_k "arbitrary"): hidden columns are split
    across TensorCores (v7x megacore) while each core K-streams bf16 w1 tiles
    into an f32 VMEM accumulator.
    """
    k = pl.program_id(1)

    @pl.when(k == 0)
    def _():
        acc_ref[...] = jnp.zeros_like(acc_ref)

    acc_ref[...] += jnp.dot(x_ref[...], w1_ref[...],
                            preferred_element_type=jnp.float32)

    @pl.when(k == pl.num_programs(1) - 1)
    def _():
        h_ref[...] = _leaky(acc_ref[...] + b1_ref[...]).astype(h_ref.dtype)


def mlp_head_kernel(h_ref, w2_ref, b2_ref, w3_ref, b3_ref, wh_ref, bh_ref,
                    o_ref):
    """Tiny fused epilogue: 512 -> 40 -> 30 -> merged sigmoid/tanh heads."""
    h = _leaky(jnp.dot(h_ref[...], w2_ref[...],
                       preferred_element_type=jnp.float32) + b2_ref[...])
    h = _leaky(jnp.dot(h.astype(jnp.bfloat16), w3_ref[...],
                       preferred_element_type=jnp.float32) + b3_ref[...])
    z = jnp.dot(h.astype(jnp.bfloat16), wh_ref[...],
                preferred_element_type=jnp.float32) + bh_ref[...]
    # Merged heads: single (30, action_dim) matmul, per-half sigmoid / tanh
    # via a lane mask.  Assumes equal head widths (true: action_dim // 2 each).
    half = wh_ref.shape[1] // 2
    lane = jax.lax.broadcasted_iota(jnp.int32, z.shape, 1)
    o_ref[...] = jnp.where(lane < half,
                           jax.nn.sigmoid(z),
                           jnp.tanh(z)).astype(o_ref.dtype)


# ---------------- JAX glue ----------------

def _phase_view(x_bf16):
    """(B, C, H, W) -> padded phase / channel-last view (B, OH+1, OW+1, C*4)."""
    B, C, H, W = x_bf16.shape
    xp = jnp.pad(x_bf16, ((0, 0), (0, 0), (1, 1), (1, 1)))
    hp, wp = H + 2, W + 2
    xph = xp.reshape(B, C, hp // 2, 2, wp // 2, 2)      # (b, c, u, ph, v, pw)
    xph = jnp.transpose(xph, (0, 2, 4, 1, 3, 5))        # (b, u, v, c, ph, pw)
    return xph.reshape(B, hp // 2, wp // 2, C * 4)


def _phase_weights(conv_w):
    """(Cout, C, 4, 4) -> (4 taps, Cout, C*4) matching _phase_view ordering."""
    co, C, _, _ = conv_w.shape
    w = conv_w.reshape(co, C, 2, 2, 2, 2)               # (o, c, qh, ph, qw, pw)
    w = jnp.transpose(w, (2, 4, 0, 1, 3, 5))            # (qh, qw, o, c, ph, pw)
    return w.reshape(4, co, C * 4)


def actor_forward(x, params, *, n_tile=256, k_tile=4096):
    B, C, H, W = x.shape
    assert H % 2 == 0 and W % 2 == 0
    OH, OW = H // 2, W // 2
    assert OW % 8 == 0, "OW must be sublane-aligned for the in-kernel reshape"
    nsp = OH * OW
    co = params["conv_w"].shape[0]
    ckk = C * 16

    # --- encoder: Conv2d(3,16,4,2,pad=1) + LeakyReLU + Flatten ---
    xph = _phase_view(x.astype(jnp.bfloat16))           # (B, OH+1, OW+1, 12)
    wc = _phase_weights(params["conv_w"]).astype(jnp.bfloat16)
    bc = params["conv_b"].reshape(co, 1).astype(jnp.float32)

    conv_cost = pl.CostEstimate(
        flops=2 * B * co * ckk * nsp,
        transcendentals=0,
        bytes_accessed=int(xph.size * 2 + B * co * nsp * 2
                           + wc.size * 2 + co * 4),
    )
    conv_out = pl.pallas_call(
        conv_kernel,
        out_shape=jax.ShapeDtypeStruct((B, co, nsp), jnp.bfloat16),
        grid=(B,),
        in_specs=[
            pl.BlockSpec((1, OH + 1, OW + 1, C * 4), lambda b: (b, 0, 0, 0)),
            pl.BlockSpec((4, co, C * 4), lambda b: (0, 0, 0)),
            pl.BlockSpec((co, 1), lambda b: (0, 0)),
        ],
        out_specs=pl.BlockSpec((1, co, nsp), lambda b: (b, 0, 0)),
        compiler_params=pltpu.CompilerParams(
            dimension_semantics=("parallel",)),
        cost_estimate=conv_cost,
    )(xph, wc, bc)

    # Free reshape: (B, Cout, OH*OW) channel-major == PyTorch NCHW x.view(B,-1).
    feat = conv_out.reshape(B, co * nsp)
    flat_dim = feat.shape[1]

    # --- MLP stage 1: h = LeakyReLU(feat @ w1 + b1), w1 K-streamed in bf16 ---
    # TODO(synk): quantize w1 (int8 on v5e/v6e, fp8 on v7x) to halve the
    # dominant HBM stream when the accuracy budget allows.
    # TODO(synk): at large batch also tile B with a "parallel" axis instead of
    # one (B, k_tile) block per step.
    # TODO(synk): fuse the conv output directly into this K-stream
    # (pltpu.emit_pipeline) to drop the feat HBM round trip.
    w1 = params["w1"].astype(jnp.bfloat16)
    b1 = params["b1"].astype(jnp.float32)
    hid = w1.shape[1]

    k_tile = min(k_tile, flat_dim)
    n_tile = min(n_tile, hid)
    # Full-scale flat_dim = 200704 = 2**12 * 7**2: legal k_tile values are
    # 2048 / 4096 / 7168 / 14336 / 28672; keep <= 14336 on v7x (64 MiB VMEM).
    assert flat_dim % k_tile == 0, (flat_dim, k_tile)
    assert hid % n_tile == 0, (hid, n_tile)
    num_k = flat_dim // k_tile
    num_n = hid // n_tile

    vmem_need = (2 * k_tile * n_tile * 2      # double-buffered bf16 w1 tiles
                 + 2 * B * k_tile * 2         # double-buffered feat tiles
                 + 2 * B * n_tile * 2         # double-buffered h output
                 + B * n_tile * 4             # f32 accumulator
                 + 2 * n_tile * 4)            # b1
    vmem_limit = int(max(vmem_need + (4 << 20), 32 << 20))

    mlp_cost = pl.CostEstimate(
        flops=2 * B * flat_dim * hid,
        transcendentals=0,
        bytes_accessed=int(flat_dim * hid * 2 + num_n * B * flat_dim * 2
                           + B * hid * 2),
    )
    h = pl.pallas_call(
        mlp_hidden_kernel,
        out_shape=jax.ShapeDtypeStruct((B, hid), jnp.bfloat16),
        grid=(num_n, num_k),
        in_specs=[
            pl.BlockSpec((B, k_tile), lambda n, k: (0, k)),
            pl.BlockSpec((k_tile, n_tile), lambda n, k: (k, n)),
            pl.BlockSpec((1, n_tile), lambda n, k: (0, n)),
        ],
        out_specs=pl.BlockSpec((B, n_tile), lambda n, k: (0, n)),
        scratch_shapes=[pltpu.VMEM((B, n_tile), jnp.float32)],
        compiler_params=pltpu.CompilerParams(
            dimension_semantics=("parallel", "arbitrary"),
            vmem_limit_bytes=vmem_limit),
        cost_estimate=mlp_cost,
    )(feat, w1, b1)

    # --- MLP stage 2: tiny fused trunk tail + merged heads (micro-kernel) ---
    w2 = params["w2"].astype(jnp.bfloat16)
    w3 = params["w3"].astype(jnp.bfloat16)
    wh = jnp.concatenate([params["wl"], params["wa"]], axis=1).astype(jnp.bfloat16)
    bh = jnp.concatenate([params["bl"], params["ba"]], axis=1).astype(jnp.float32)
    action_dim = wh.shape[1]
    assert action_dim % 2 == 0

    head_cost = pl.CostEstimate(
        flops=2 * B * (hid * w2.shape[1]
                       + w3.shape[0] * w3.shape[1]
                       + wh.shape[0] * action_dim),
        transcendentals=B * action_dim,
        bytes_accessed=int(B * hid * 2 + w2.size * 2 + w3.size * 2
                           + wh.size * 2 + B * action_dim * 4),
    )
    out = pl.pallas_call(
        mlp_head_kernel,
        out_shape=jax.ShapeDtypeStruct((B, action_dim), jnp.float32),
        cost_estimate=head_cost,
    )(h, w2, params["b2"].astype(jnp.float32), w3,
      params["b3"].astype(jnp.float32), wh, bh)
    return out


# ---------------- pure-JAX reference (f32) ----------------

def actor_reference(x, params):
    B = x.shape[0]
    conv = jax.lax.conv_general_dilated(
        x, params["conv_w"], window_strides=(2, 2),
        padding=((1, 1), (1, 1)),
        dimension_numbers=("NCHW", "OIHW", "NCHW"))
    conv = _leaky(conv + params["conv_b"][None, :, None, None])
    feat = conv.reshape(B, -1)                           # NCHW flatten order
    h = _leaky(feat @ params["w1"] + params["b1"])
    h = _leaky(h @ params["w2"] + params["b2"])
    h = _leaky(h @ params["w3"] + params["b3"])
    ol = jax.nn.sigmoid(h @ params["wl"] + params["bl"])
    oa = jnp.tanh(h @ params["wa"] + params["ba"])
    return jnp.concatenate([ol, oa], axis=1)


# ---------------- deterministic parameter init ----------------

def init_params(key, flat_dim, action_dim):
    ks = jax.random.split(key, 7)

    def lin(k, fin, fout):
        bound = 1.0 / float(fin) ** 0.5  # PyTorch nn.Linear default init range
        kw, kb = jax.random.split(k)
        w = jax.random.uniform(kw, (fin, fout), jnp.float32, -bound, bound)
        b = jax.random.uniform(kb, (1, fout), jnp.float32, -bound, bound)
        return w, b

    params = {}
    fan_in_conv = 3 * 4 * 4
    cbound = 1.0 / float(fan_in_conv) ** 0.5
    params["conv_w"] = jax.random.uniform(ks[0], (16, 3, 4, 4), jnp.float32,
                                          -cbound, cbound)
    params["conv_b"] = jax.random.uniform(ks[1], (16,), jnp.float32,
                                          -cbound, cbound)
    params["w1"], params["b1"] = lin(ks[2], flat_dim, 512)
    params["w2"], params["b2"] = lin(ks[3], 512, 40)
    params["w3"], params["b3"] = lin(ks[4], 40, 30)
    params["wl"], params["bl"] = lin(ks[5], 30, action_dim // 2)
    params["wa"], params["ba"] = lin(ks[6], 30, action_dim // 2)
    return params


if __name__ == "__main__":
    key = jax.random.PRNGKey(0)
    kx, kp = jax.random.split(key)

    B, H, W = 2, 32, 32      # small-scale stand-in for the 224x224 original
    action_dim = 4           # heads emit action_dim/2 = 2 each

    x = jax.random.normal(kx, (B, 3, H, W), jnp.float32)
    flat_dim = 16 * (H // 2) * (W // 2)   # analog of feat_size*feat_size*64

    params = init_params(kp, flat_dim, action_dim)

    fwd = jax.jit(actor_forward)
    out = jax.block_until_ready(fwd(x, params))

    assert out.shape == (B, action_dim), out.shape
    assert bool(jnp.all(jnp.isfinite(out)))

    ref = actor_reference(x, params)
    err = float(jnp.max(jnp.abs(out - ref)))
    assert err < 5e-2, f"max abs diff vs f32 reference: {err}"

    print("KERNEL_OK")
</pallas_src>

<mosaic_0001>
module attributes {stable_mosaic.version = 11 : i64} {
  func.func @conv_kernel(%arg0: i32, %arg1: memref<1x17x17x12xbf16, #tpu.memory_space<vmem>>, %arg2: memref<4x16x12xbf16, #tpu.memory_space<vmem>>, %arg3: memref<16x1xf32, #tpu.memory_space<vmem>>, %arg4: memref<1x16x256xbf16, #tpu.memory_space<vmem>>) attributes {dimension_semantics = [#tpu.dimension_semantics<parallel>], iteration_bounds = array<i64: 2>, scalar_prefetch = 0 : i64, scratch_operands = 0 : i64, tpu.core_type = #tpu.core_type<tc>, window_params = [{transform_indices = @transform_0, window_bounds = array<i64: 1, 17, 17, 12>}, {pipeline_mode = #tpu.pipeline_mode<synchronous>, transform_indices = @transform_1, window_bounds = array<i64: 4, 16, 12>}, {pipeline_mode = #tpu.pipeline_mode<synchronous>, transform_indices = @transform_2, window_bounds = array<i64: 16, 1>}, {transform_indices = @transform_3, window_bounds = array<i64: 1, 16, 256>}]} {
    %cst = arith.constant 0.000000e+00 : f32
    %0 = vector.broadcast %cst : f32 to vector<16x256xf32>
    %c0 = arith.constant 0 : index
    %c0_0 = arith.constant 0 : index
    %c0_1 = arith.constant 0 : index
    %c0_2 = arith.constant 0 : index
    %1 = vector.load %arg1[%c0, %c0_0, %c0_1, %c0_2] : memref<1x17x17x12xbf16, #tpu.memory_space<vmem>>, vector<1x16x16x12xbf16>
    %2 = vector.shape_cast %1 : vector<1x16x16x12xbf16> to vector<16x16x12xbf16>
    %3 = vector.shape_cast %2 : vector<16x16x12xbf16> to vector<256x12xbf16>
    %c0_3 = arith.constant 0 : index
    %c0_4 = arith.constant 0 : index
    %c0_5 = arith.constant 0 : index
    %4 = vector.load %arg2[%c0_3, %c0_4, %c0_5] : memref<4x16x12xbf16, #tpu.memory_space<vmem>>, vector<1x16x12xbf16>
    %5 = vector.shape_cast %4 : vector<1x16x12xbf16> to vector<16x12xbf16>
    %cst_6 = arith.constant dense<0.000000e+00> : vector<16x256xf32>
    %6 = tpu.matmul %5, %3, %cst_6 {dimension_numbers = #tpu.dot_dimension_numbers<[1], [1], [0], [0], [0, 0, 1, 0], [], []>} : vector<16x12xbf16>, vector<256x12xbf16>, vector<16x256xf32> -> vector<16x256xf32>
    %7 = arith.addf %0, %6 : vector<16x256xf32>
    %c0_7 = arith.constant 0 : index
    %c0_8 = arith.constant 0 : index
    %c1 = arith.constant 1 : index
    %c0_9 = arith.constant 0 : index
    %8 = vector.load %arg1[%c0_7, %c0_8, %c1, %c0_9] : memref<1x17x17x12xbf16, #tpu.memory_space<vmem>>, vector<1x16x16x12xbf16>
    %9 = vector.shape_cast %8 : vector<1x16x16x12xbf16> to vector<16x16x12xbf16>
    %10 = vector.shape_cast %9 : vector<16x16x12xbf16> to vector<256x12xbf16>
    %c1_10 = arith.constant 1 : index
    %c0_11 = arith.constant 0 : index
    %c0_12 = arith.constant 0 : index
    %11 = vector.load %arg2[%c1_10, %c0_11, %c0_12] : memref<4x16x12xbf16, #tpu.memory_space<vmem>>, vector<1x16x12xbf16>
    %12 = vector.shape_cast %11 : vector<1x16x12xbf16> to vector<16x12xbf16>
    %cst_13 = arith.constant dense<0.000000e+00> : vector<16x256xf32>
    %13 = tpu.matmul %12, %10, %cst_13 {dimension_numbers = #tpu.dot_dimension_numbers<[1], [1], [0], [0], [0, 0, 1, 0], [], []>} : vector<16x12xbf16>, vector<256x12xbf16>, vector<16x256xf32> -> vector<16x256xf32>
    %14 = arith.addf %7, %13 : vector<16x256xf32>
    %c0_14 = arith.constant 0 : index
    %c1_15 = arith.constant 1 : index
    %c0_16 = arith.constant 0 : index
    %c0_17 = arith.constant 0 : index
    %15 = vector.load %arg1[%c0_14, %c1_15, %c0_16, %c0_17] : memref<1x17x17x12xbf16, #tpu.memory_space<vmem>>, vector<1x16x16x12xbf16>
    %16 = vector.shape_cast %15 : vector<1x16x16x12xbf16> to vector<16x16x12xbf16>
    %17 = vector.shape_cast %16 : vector<16x16x12xbf16> to vector<256x12xbf16>
    %c2 = arith.constant 2 : index
    %c0_18 = arith.constant 0 : index
    %c0_19 = arith.constant 0 : index
    %18 = vector.load %arg2[%c2, %c0_18, %c0_19] : memref<4x16x12xbf16, #tpu.memory_space<vmem>>, vector<1x16x12xbf16>
    %19 = vector.shape_cast %18 : vector<1x16x12xbf16> to vector<16x12xbf16>
    %cst_20 = arith.constant dense<0.000000e+00> : vector<16x256xf32>
    %20 = tpu.matmul %19, %17, %cst_20 {dimension_numbers = #tpu.dot_dimension_numbers<[1], [1], [0], [0], [0, 0, 1, 0], [], []>} : vector<16x12xbf16>, vector<256x12xbf16>, vector<16x256xf32> -> vector<16x256xf32>
    %21 = arith.addf %14, %20 : vector<16x256xf32>
    %c0_21 = arith.constant 0 : index
    %c1_22 = arith.constant 1 : index
    %c1_23 = arith.constant 1 : index
    %c0_24 = arith.constant 0 : index
    %22 = vector.load %arg1[%c0_21, %c1_22, %c1_23, %c0_24] : memref<1x17x17x12xbf16, #tpu.memory_space<vmem>>, vector<1x16x16x12xbf16>
    %23 = vector.shape_cast %22 : vector<1x16x16x12xbf16> to vector<16x16x12xbf16>
    %24 = vector.shape_cast %23 : vector<16x16x12xbf16> to vector<256x12xbf16>
    %c3 = arith.constant 3 : index
    %c0_25 = arith.constant 0 : index
    %c0_26 = arith.constant 0 : index
    %25 = vector.load %arg2[%c3, %c0_25, %c0_26] : memref<4x16x12xbf16, #tpu.memory_space<vmem>>, vector<1x16x12xbf16>
    %26 = vector.shape_cast %25 : vector<1x16x12xbf16> to vector<16x12xbf16>
    %cst_27 = arith.constant dense<0.000000e+00> : vector<16x256xf32>
    %27 = tpu.matmul %26, %24, %cst_27 {dimension_numbers = #tpu.dot_dimension_numbers<[1], [1], [0], [0], [0, 0, 1, 0], [], []>} : vector<16x12xbf16>, vector<256x12xbf16>, vector<16x256xf32> -> vector<16x256xf32>
    %28 = arith.addf %21, %27 : vector<16x256xf32>
    %c0_28 = arith.constant 0 : index
    %c0_29 = arith.constant 0 : index
    %29 = vector.load %arg3[%c0_28, %c0_29] : memref<16x1xf32, #tpu.memory_space<vmem>>, vector<16x1xf32>
    %30 = vector.broadcast %29 : vector<16x1xf32> to vector<16x256xf32>
    %31 = arith.addf %28, %30 : vector<16x256xf32>
    %cst_30 = arith.constant 0.000000e+00 : f32
    %32 = vector.broadcast %cst_30 : f32 to vector<16x256xf32>
    %33 = arith.cmpf ogt, %31, %32 : vector<16x256xf32>
    %cst_31 = arith.constant 0.00999999977 : f32
    %34 = vector.broadcast %cst_31 : f32 to vector<16x256xf32>
    %35 = arith.mulf %34, %31 : vector<16x256xf32>
    %36 = arith.select %33, %31, %35 : vector<16x256xi1>, vector<16x256xf32>
    %37 = arith.truncf %36 : vector<16x256xf32> to vector<16x256xbf16>
    %c0_32 = arith.constant 0 : index
    %c0_33 = arith.constant 0 : index
    %c0_34 = arith.constant 0 : index
    %38 = vector.load %arg4[%c0_32, %c0_33, %c0_34] : memref<1x16x256xbf16, #tpu.memory_space<vmem>>, vector<1x16x256xbf16>
    %39 = vector.shape_cast %38 : vector<1x16x256xbf16> to vector<16x256xbf16>
    %40 = vector.shape_cast %37 : vector<16x256xbf16> to vector<1x16x256xbf16>
    tpu.vector_store %arg4[%c0_32, %c0_33, %c0_34], %40 {strides = array<i32>} : memref<1x16x256xbf16, #tpu.memory_space<vmem>>, vector<1x16x256xbf16>,
    return
  }
  func.func @transform_0(%arg0: i32) -> (i32, i32, i32, i32) {
    %c0_i32 = arith.constant 0 : i32
    %c0_i32_0 = arith.constant 0 : i32
    %c0_i32_1 = arith.constant 0 : i32
    %c0_i32_2 = arith.constant 0 : i32
    return %arg0, %c0_i32, %c0_i32_0, %c0_i32_1 : i32, i32, i32, i32
  }
  func.func @transform_1(%arg0: i32) -> (i32, i32, i32) {
    %c0_i32 = arith.constant 0 : i32
    %c0_i32_0 = arith.constant 0 : i32
    %c0_i32_1 = arith.constant 0 : i32
    %c0_i32_2 = arith.constant 0 : i32
    return %c0_i32, %c0_i32_0, %c0_i32_1 : i32, i32, i32
  }
  func.func @transform_2(%arg0: i32) -> (i32, i32) {
    %c0_i32 = arith.constant 0 : i32
    %c0_i32_0 = arith.constant 0 : i32
    %c0_i32_1 = arith.constant 0 : i32
    return %c0_i32, %c0_i32_0 : i32, i32
  }
  func.func @transform_3(%arg0: i32) -> (i32, i32, i32) {
    %c0_i32 = arith.constant 0 : i32
    %c0_i32_0 = arith.constant 0 : i32
    %c0_i32_1 = arith.constant 0 : i32
    return %arg0, %c0_i32, %c0_i32_0 : i32, i32, i32
  }
}

module attributes {stable_mosaic.version = 11 : i64} {
  func.func @mlp_hidden_kernel(%arg0: i32, %arg1: i32, %arg2: memref<2x4096xbf16, #tpu.memory_space<vmem>>, %arg3: memref<4096x256xbf16, #tpu.memory_space<vmem>>, %arg4: memref<1x256xf32, #tpu.memory_space<vmem>>, %arg5: memref<2x256xbf16, #tpu.memory_space<vmem>>, %arg6: memref<2x256xf32, #tpu.memory_space<vmem>>) attributes {dimension_semantics = [#tpu.dimension_semantics<parallel>, #tpu.dimension_semantics<arbitrary>], iteration_bounds = array<i64: 2, 1>, scalar_prefetch = 0 : i64, scratch_operands = 1 : i64, tpu.core_type = #tpu.core_type<tc>, window_params = [{transform_indices = @transform_0, window_bounds = array<i64: 2, 4096>}, {transform_indices = @transform_1, window_bounds = array<i64: 4096, 256>}, {transform_indices = @transform_2, window_bounds = array<i64: 1, 256>}, {transform_indices = @transform_3, window_bounds = array<i64: 2, 256>}]} {
    %c0_i32 = arith.constant 0 : i32
    %0 = arith.cmpi eq, %arg1, %c0_i32 : i32
    %1 = arith.extui %0 : i1 to i32
    %c0_i32_0 = arith.constant 0 : i32
    %2 = arith.cmpi ne, %1, %c0_i32_0 : i32
    scf.if %2 {
      %cst_10 = arith.constant 0.000000e+00 : f32
      %12 = vector.broadcast %cst_10 : f32 to vector<2x256xf32>
      %c0_11 = arith.constant 0 : index
      %c0_12 = arith.constant 0 : index
      %13 = vector.load %arg6[%c0_11, %c0_12] : memref<2x256xf32, #tpu.memory_space<vmem>>, vector<2x256xf32>
      tpu.vector_store %arg6[%c0_11, %c0_12], %12 {strides = array<i32>} : memref<2x256xf32, #tpu.memory_space<vmem>>, vector<2x256xf32>,
    } else {
    }
    %c0 = arith.constant 0 : index
    %c0_1 = arith.constant 0 : index
    %3 = vector.load %arg6[%c0, %c0_1] : memref<2x256xf32, #tpu.memory_space<vmem>>, vector<2x256xf32>
    %c0_2 = arith.constant 0 : index
    %c0_3 = arith.constant 0 : index
    %4 = vector.load %arg2[%c0_2, %c0_3] : memref<2x4096xbf16, #tpu.memory_space<vmem>>, vector<2x4096xbf16>
    %c0_4 = arith.constant 0 : index
    %c0_5 = arith.constant 0 : index
    %5 = vector.load %arg3[%c0_4, %c0_5] : memref<4096x256xbf16, #tpu.memory_space<vmem>>, vector<4096x256xbf16>
    %cst = arith.constant dense<0.000000e+00> : vector<2x256xf32>
    %6 = tpu.matmul %4, %5, %cst {dimension_numbers = #tpu.dot_dimension_numbers<[1], [0], [0], [1], [0, 0, 1, 1], [], []>} : vector<2x4096xbf16>, vector<4096x256xbf16>, vector<2x256xf32> -> vector<2x256xf32>
    %7 = arith.addf %3, %6 : vector<2x256xf32>
    %c0_6 = arith.constant 0 : index
    %c0_7 = arith.constant 0 : index
    %8 = vector.load %arg6[%c0_6, %c0_7] : memref<2x256xf32, #tpu.memory_space<vmem>>, vector<2x256xf32>
    tpu.vector_store %arg6[%c0_6, %c0_7], %7 {strides = array<i32>} : memref<2x256xf32, #tpu.memory_space<vmem>>, vector<2x256xf32>,
    %c0_i32_8 = arith.constant 0 : i32
    %9 = arith.cmpi eq, %arg1, %c0_i32_8 : i32
    %10 = arith.extui %9 : i1 to i32
    %c0_i32_9 = arith.constant 0 : i32
    %11 = arith.cmpi ne, %10, %c0_i32_9 : i32
    scf.if %11 {
      %c0_10 = arith.constant 0 : index
      %c0_11 = arith.constant 0 : index
      %12 = vector.load %arg6[%c0_10, %c0_11] : memref<2x256xf32, #tpu.memory_space<vmem>>, vector<2x256xf32>
      %c0_12 = arith.constant 0 : index
      %c0_13 = arith.constant 0 : index
      %13 = vector.load %arg4[%c0_12, %c0_13] : memref<1x256xf32, #tpu.memory_space<vmem>>, vector<1x256xf32>
      %14 = vector.broadcast %13 : vector<1x256xf32> to vector<2x256xf32>
      %15 = arith.addf %12, %14 : vector<2x256xf32>
      %cst_14 = arith.constant 0.000000e+00 : f32
      %16 = vector.broadcast %cst_14 : f32 to vector<2x256xf32>
      %17 = arith.cmpf ogt, %15, %16 : vector<2x256xf32>
      %cst_15 = arith.constant 0.00999999977 : f32
      %18 = vector.broadcast %cst_15 : f32 to vector<2x256xf32>
      %19 = arith.mulf %18, %15 : vector<2x256xf32>
      %20 = arith.select %17, %15, %19 : vector<2x256xi1>, vector<2x256xf32>
      %21 = arith.truncf %20 : vector<2x256xf32> to vector<2x256xbf16>
      %c0_16 = arith.constant 0 : index
      %c0_17 = arith.constant 0 : index
      %22 = vector.load %arg5[%c0_16, %c0_17] : memref<2x256xbf16, #tpu.memory_space<vmem>>, vector<2x256xbf16>
      tpu.vector_store %arg5[%c0_16, %c0_17], %21 {strides = array<i32>} : memref<2x256xbf16, #tpu.memory_space<vmem>>, vector<2x256xbf16>,
    } else {
    }
    return
  }
  func.func @transform_0(%arg0: i32, %arg1: i32) -> (i32, i32) {
    %c0_i32 = arith.constant 0 : i32
    %c0_i32_0 = arith.constant 0 : i32
    return %c0_i32, %arg1 : i32, i32
  }
  func.func @transform_1(%arg0: i32, %arg1: i32) -> (i32, i32) {
    %c0_i32 = arith.constant 0 : i32
    return %arg1, %arg0 : i32, i32
  }
  func.func @transform_2(%arg0: i32, %arg1: i32) -> (i32, i32) {
    %c0_i32 = arith.constant 0 : i32
    %c0_i32_0 = arith.constant 0 : i32
    return %c0_i32, %arg0 : i32, i32
  }
  func.func @transform_3(%arg0: i32, %arg1: i32) -> (i32, i32) {
    %c0_i32 = arith.constant 0 : i32
    %c0_i32_0 = arith.constant 0 : i32
    return %c0_i32, %arg0 : i32, i32
  }
}

module attributes {stable_mosaic.version = 11 : i64} {
  func.func @mlp_head_kernel(%arg0: memref<2x512xbf16, #tpu.memory_space<vmem>>, %arg1: memref<512x40xbf16, #tpu.memory_space<vmem>>, %arg2: memref<1x40xf32, #tpu.memory_space<vmem>>, %arg3: memref<40x30xbf16, #tpu.memory_space<vmem>>, %arg4: memref<1x30xf32, #tpu.memory_space<vmem>>, %arg5: memref<30x4xbf16, #tpu.memory_space<vmem>>, %arg6: memref<1x4xf32, #tpu.memory_space<vmem>>, %arg7: memref<2x4xf32, #tpu.memory_space<vmem>>) attributes {dimension_semantics = [], scalar_prefetch = 0 : i64, scratch_operands = 0 : i64, tpu.core_type = #tpu.core_type<tc>} {
    %c0 = arith.constant 0 : index
    %c0_0 = arith.constant 0 : index
    %0 = vector.load %arg0[%c0, %c0_0] : memref<2x512xbf16, #tpu.memory_space<vmem>>, vector<2x512xbf16>
    %c0_1 = arith.constant 0 : index
    %c0_2 = arith.constant 0 : index
    %1 = vector.load %arg1[%c0_1, %c0_2] : memref<512x40xbf16, #tpu.memory_space<vmem>>, vector<512x40xbf16>
    %cst = arith.constant dense<0.000000e+00> : vector<2x40xf32>
    %2 = tpu.matmul %0, %1, %cst {dimension_numbers = #tpu.dot_dimension_numbers<[1], [0], [0], [1], [0, 0, 1, 1], [], []>} : vector<2x512xbf16>, vector<512x40xbf16>, vector<2x40xf32> -> vector<2x40xf32>
    %c0_3 = arith.constant 0 : index
    %c0_4 = arith.constant 0 : index
    %3 = vector.load %arg2[%c0_3, %c0_4] : memref<1x40xf32, #tpu.memory_space<vmem>>, vector<1x40xf32>
    %4 = vector.broadcast %3 : vector<1x40xf32> to vector<2x40xf32>
    %5 = arith.addf %2, %4 : vector<2x40xf32>
    %cst_5 = arith.constant 0.000000e+00 : f32
    %6 = vector.broadcast %cst_5 : f32 to vector<2x40xf32>
    %7 = arith.cmpf ogt, %5, %6 : vector<2x40xf32>
    %cst_6 = arith.constant 0.00999999977 : f32
    %8 = vector.broadcast %cst_6 : f32 to vector<2x40xf32>
    %9 = arith.mulf %8, %5 : vector<2x40xf32>
    %10 = arith.select %7, %5, %9 : vector<2x40xi1>, vector<2x40xf32>
    %11 = arith.truncf %10 : vector<2x40xf32> to vector<2x40xbf16>
    %c0_7 = arith.constant 0 : index
    %c0_8 = arith.constant 0 : index
    %12 = vector.load %arg3[%c0_7, %c0_8] : memref<40x30xbf16, #tpu.memory_space<vmem>>, vector<40x30xbf16>
    %cst_9 = arith.constant dense<0.000000e+00> : vector<2x30xf32>
    %13 = tpu.matmul %11, %12, %cst_9 {dimension_numbers = #tpu.dot_dimension_numbers<[1], [0], [0], [1], [0, 0, 1, 1], [], []>} : vector<2x40xbf16>, vector<40x30xbf16>, vector<2x30xf32> -> vector<2x30xf32>
    %c0_10 = arith.constant 0 : index
    %c0_11 = arith.constant 0 : index
    %14 = vector.load %arg4[%c0_10, %c0_11] : memref<1x30xf32, #tpu.memory_space<vmem>>, vector<1x30xf32>
    %15 = vector.broadcast %14 : vector<1x30xf32> to vector<2x30xf32>
    %16 = arith.addf %13, %15 : vector<2x30xf32>
    %cst_12 = arith.constant 0.000000e+00 : f32
    %17 = vector.broadcast %cst_12 : f32 to vector<2x30xf32>
    %18 = arith.cmpf ogt, %16, %17 : vector<2x30xf32>
    %cst_13 = arith.constant 0.00999999977 : f32
    %19 = vector.broadcast %cst_13 : f32 to vector<2x30xf32>
    %20 = arith.mulf %19, %16 : vector<2x30xf32>
    %21 = arith.select %18, %16, %20 : vector<2x30xi1>, vector<2x30xf32>
    %22 = arith.truncf %21 : vector<2x30xf32> to vector<2x30xbf16>
    %c0_14 = arith.constant 0 : index
    %c0_15 = arith.constant 0 : index
    %23 = vector.load %arg5[%c0_14, %c0_15] : memref<30x4xbf16, #tpu.memory_space<vmem>>, vector<30x4xbf16>
    %cst_16 = arith.constant dense<0.000000e+00> : vector<2x4xf32>
    %24 = tpu.matmul %22, %23, %cst_16 {dimension_numbers = #tpu.dot_dimension_numbers<[1], [0], [0], [1], [0, 0, 1, 1], [], []>} : vector<2x30xbf16>, vector<30x4xbf16>, vector<2x4xf32> -> vector<2x4xf32>
    %c0_17 = arith.constant 0 : index
    %c0_18 = arith.constant 0 : index
    %25 = vector.load %arg6[%c0_17, %c0_18] : memref<1x4xf32, #tpu.memory_space<vmem>>, vector<1x4xf32>
    %26 = vector.broadcast %25 : vector<1x4xf32> to vector<2x4xf32>
    %27 = arith.addf %24, %26 : vector<2x4xf32>
    %28 = tpu.iota {dimensions = array<i32: 1>} : vector<2x4xi32>
    %c2_i32 = arith.constant 2 : i32
    %29 = vector.broadcast %c2_i32 : i32 to vector<2x4xi32>
    %30 = arith.cmpi slt, %28, %29 : vector<2x4xi32>
    %31 = arith.negf %27 : vector<2x4xf32>
    %32 = math.exp %31 : vector<2x4xf32>
    %cst_19 = arith.constant 1.000000e+00 : f32
    %33 = vector.broadcast %cst_19 : f32 to vector<2x4xf32>
    %34 = arith.addf %33, %32 : vector<2x4xf32>
    %35 = arith.divf %33, %34 : vector<2x4xf32>
    %36 = math.tanh %27 : vector<2x4xf32>
    %37 = arith.select %30, %35, %36 : vector<2x4xi1>, vector<2x4xf32>
    %c0_20 = arith.constant 0 : index
    %c0_21 = arith.constant 0 : index
    %38 = vector.load %arg7[%c0_20, %c0_21] : memref<2x4xf32, #tpu.memory_space<vmem>>, vector<2x4xf32>
    tpu.vector_store %arg7[%c0_20, %c0_21], %37 {strides = array<i32>} : memref<2x4xf32, #tpu.memory_space<vmem>>, vector<2x4xf32>,
    return
  }
}

</mosaic_0001>

<bundles_post_ra>
// kernel: actor_forward.3
= control target key start
LH: loop header
LB: loop body
LE: loop exit
PB: predicated region body
PF: predicated region fallthrough
CT: control target
= control target key end

     0   :  { %s2194_s12 = smov 0   ;;  %s2569_s0 = inlined_call_operand.vmem [shape: bf16[2,17,17,12], index: 0, kind: input, shape index: {}]   ;;  %s2570_s1 = inlined_call_operand.vmem [shape: bf16[4,16,12], index: 1, kind: input, shape index: {}]   ;;  %s2571_s2 = inlined_call_operand.vmem [shape: f32[16,1], index: 2, kind: input, shape index: {}]   ;;  %s2572_s3 = inlined_call_operand.vmem [shape: bf16[2,16,256], index: 3, kind: output, shape index: {}]  }
   0x1 LB: > { %s1841_s13 = sadd.s32 4294967295, %s2171_s12   ;;  %p1845_p0 = scmp.ge.s32.totalorder %s2171_s12, 1  ;;  %s2171_s12 = sphi %s2194_s12, %s13_s12  }
   0x2   : > { %p137_p1 = scmp.lt.s32.totalorder %s2171_s12, 3 }
   0x4   : > { %p138_p2 = pnand %p1845_p0, %p137_p1 }
   0x5   : > { %p161_p3 = scmp.lt.s32.totalorder (!%p138_p2), %s1841_s13, 1 }
   0x6   : > { %141 = sbr.rel (%p138_p2) target bundleno = 387 (0x183), region = 32 }
   0xb   : > { %s2576_s13 = smov (!%p161_p3, %s1841_s13), 1  ;;  %v2207_v0 = vld [vmem:[%s2570_s1] sm:$0xff]   ;;  %vm665_vm0 = vcmask 97280   ;;  %v2212_v1 = vld [vmem:[%s2570_s1 + $0x8] sm:$0xff]   ;;  %vm222_vm1 = vsmask.f32 3328 }
   0xc   : > { %s2118_s18 = smul.u32 204, %s2576_s13  ;;  %2048 = vmatprep.mubr.msk.bf16.mxu1 %vm665_vm0, %v2207_v0  ;;  %2030 = vmatprep.mubr.msk.bf16.mxu0 %vm665_vm0, %v2212_v1  ;;  %vm223_vm2 = vsmask.f32 7440  ;;  %s2011_s30 = sshll.u32 %s2576_s13, 4 }
   0xd   : > { %vm2234_vm3 = vmor %vm222_vm1, %vm223_vm2  ;;  %s170_s6 = scalar_lea.vmem %s2572_s3, %s2011_s30 }
   0xe   : > { %s2222_s21 = scalar_lea.vmem %s2569_s0, %s2118_s18 }
   0xf   : > { %v202_v2 = vld [vmem:[%s2222_s21 + $0xb4] sm:$0xf]  ;;  %v203_v3 = vld [vmem:[%s2222_s21 + $0xb8] sm:$0xf]  ;;  %v221_v14 = vld [vmem:[%s2222_s21 + $0xbc] sm:$0x1] }
  0x10   : > { %v186_v4 = vld [vmem:[%s2222_s21 + $0x54] sm:$0xf]  ;;  %v586_v5 = vshrl.u32 %v202_v2, 16  ;;  %v589_v6 = vshll.u32 %v202_v2, 16  ;;  %v595_v7 = vshll.u32 %v203_v3, 16  ;;  %v599_v8 = vshrl.u32 %v203_v3, 16 }
  0x11   : > { %v187_v9 = vld [vmem:[%s2222_s21 + $0x58] sm:$0xf]  ;;  %v1885_v10 = vcombine.low %v202_v2, %v203_v3  ;;  %v394_v11 = vshrl.u32 %v186_v4, 16  ;;  %v397_v12 = vshll.u32 %v186_v4, 16  ;;  %v213_v19 = vld [vmem:[%s2222_s21 + $0x5c] sm:$0x1] }
  0x12   : > { %v403_v13 = vshll.u32 %v187_v9, 16  ;;  %v588_v15 = vrot.slane %v586_v5, 4  ;;  %v591_v16 = vrot.slane %v589_v6, 5  ;;  %v597_v17 = vrot.slane %v595_v7, 5  ;;  %v200_v24 = vld [vmem:[%s2222_s21 + $0xa8] sm:$0xf] }
  0x13   : > { %v601_v18 = vrot.slane %v599_v8, 4  ;;  %2094 = vmatprep.subr.msk.bf16.mxu1 %vm665_vm0, %v1885_v10  ;;  %v396_v20 = vrot.slane %v394_v11, 4  ;;  %v399_v21 = vrot.slane %v397_v12, 5  ;;  %v407_v23 = vshrl.u32 %v187_v9, 16  ;;  %v201_v33 = vld [vmem:[%s2222_s21 + $0xac] sm:$0xf] }
  0x14   : > { %v405_v22 = vrot.slane %v403_v13, 5  ;;  %v1877_v25 = vcombine.low %v186_v4, %v187_v9  ;;  %v592_v26 = vor.u32 %v591_v16, %v588_v15  ;;  %v605_v28 = vshll.u32 %v221_v14, 16  ;;  %v184_v43 = vld [vmem:[%s2222_s21 + $0x48] sm:$0xf]  ;;  %v185_v48 = vld [vmem:[%s2222_s21 + $0x4c] sm:$0xf] }
  0x15   : > { %v602_v27 = vor.u32 %v601_v18, %v597_v17  ;;  %v409_v29 = vrot.slane %v407_v23, 4  ;;  %v400_v31 = vor.u32 %v399_v21, %v396_v20  ;;  %v413_v32 = vshll.u32 %v213_v19, 16  ;;  %v220_v61 = vld [vmem:[%s2222_s21 + $0xb0] sm:$0x1]  ;;  %v198_v9 = vld [vmem:[%s2222_s21 + $0x9c] sm:$0xf] }
  0x16   : > { %v562_v34 = vshrl.u32 %v200_v24, 16  ;;  %v870_v35 = vsel %vm665_vm0, %v1877_v25, 0  ;;  %v593_v36 = vrot.slane %v592_v26, 4  ;;  %v607_v38 = vrot.slane %v605_v28, 5  ;;  %v212_v4 = vld [vmem:[%s2222_s21 + $0x50] sm:$0x1] }
  0x17   : > { %v603_v37 = vrot.slane %v602_v27, 4  ;;  %2033 = vmatpush3.bf16.xpose.msra.mxu1 %v870_v35  ;;  %v401_v39 = vrot.slane %v400_v31, 4  ;;  %v410_v40 = vor.u32 %v409_v29, %v405_v22  ;;  %v415_v41 = vrot.slane %v413_v32, 5  ;;  %v199_v14 = vld [vmem:[%s2222_s21 + $0xa0] sm:$0xf] }
  0x18   : > { %v564_v42 = vrot.slane %v562_v34, 4  ;;  %v598_v44 = vsel %vm2234_vm3, %v593_v36, %v597_v17  ;;  %v565_v46 = vshll.u32 %v200_v24, 16  ;;  %v571_v47 = vshll.u32 %v201_v33, 16  ;;  %v182_v27 = vld [vmem:[%s2222_s21 + $0x3c] sm:$0xf] }
  0x19   : > { %v608_v45 = vsel %vm2234_vm3, %v603_v37, %v607_v38  ;;  %v406_v50 = vsel %vm2234_vm3, %v401_v39, %v405_v22  ;;  %v411_v51 = vrot.slane %v410_v40, 4  ;;  %v575_v52 = vshrl.u32 %v201_v33, 16 }
  0x1a   : > { %v1867_v49 = vcombine.low %v598_v44, %v608_v45  ;;  %v567_v53 = vrot.slane %v565_v46, 5  ;;  %v573_v54 = vrot.slane %v571_v47, 5  ;;  %v1884_v55 = vcombine.low %v200_v24, %v201_v33  ;;  %v183_v33 = vld [vmem:[%s2222_s21 + $0x40] sm:$0xf]  ;;  %v219_v46 = vld [vmem:[%s2222_s21 + $0xa4] sm:$0x1] }
  0x1b   : > { %v370_v56 = vshrl.u32 %v184_v43, 16  ;;  %v416_v57 = vsel %vm2234_vm3, %v411_v51, %v415_v41  ;;  %v577_v58 = vrot.slane %v575_v52, 4  ;;  %v373_v59 = vshll.u32 %v184_v43, 16  ;;  %v211_v51 = vld [vmem:[%s2222_s21 + $0x44] sm:$0x1] }
  0x1c   : > { %2086 = vmatprep.subr.msk.bf16.mxu0 %vm665_vm0, %v1867_v49  ;;  %v379_v60 = vshll.u32 %v185_v48, 16  ;;  %v1859_v62 = vcombine.low %v406_v50, %v416_v57  ;;  %2095 = vmatprep.subr.msk.bf16.mxu1 %vm665_vm0, %v1884_v55  ;;  %v383_v2 = vshrl.u32 %v185_v48, 16  ;;  %v1876_v3 = vcombine.low %v184_v43, %v185_v48  ;;  %v196_v52 = vld [vmem:[%s2222_s21 + $0x90] sm:$0xf] }
  0x1d   : > { %v372_v63 = vrot.slane %v370_v56, 4  ;;  %v375_v5 = vrot.slane %v373_v59, 5  ;;  %v568_v7 = vor.u32 %v567_v53, %v564_v42  ;;  %v578_v8 = vor.u32 %v577_v58, %v573_v54 }
  0x1e   : > { %v381_v6 = vrot.slane %v379_v60, 5  ;;  %v691_v10 = vsel %vm665_vm0, %v1859_v62, 0  ;;  %v385_v11 = vrot.slane %v383_v2, 4  ;;  %v867_v12 = vsel %vm665_vm0, %v1876_v3, 0 }
  0x1f   : > { %v581_v13 = vshll.u32 %v220_v61, 16  ;;  %2015 = vmatpush3.bf16.xpose.msra.mxu0 %v691_v10  ;;  %2035 = vmatpush3.bf16.xpose.msra.mxu1 %v867_v12  ;;  %v569_v15 = vrot.slane %v568_v7, 4  ;;  %v579_v16 = vrot.slane %v578_v8, 4  ;;  %v376_v17 = vor.u32 %v375_v5, %v372_v63  ;;  %v197_v61 = vld [vmem:[%s2222_s21 + $0x94] sm:$0xf] }
  0x20   : > { %v389_v18 = vshll.u32 %v212_v4, 16  ;;  %v386_v20 = vor.u32 %v385_v11, %v381_v6  ;;  %v538_v21 = vshrl.u32 %v198_v9, 16  ;;  %v541_v22 = vshll.u32 %v198_v9, 16  ;;  %v180_v12 = vld [vmem:[%s2222_s21 + $0x30] sm:$0xf] }
  0x21   : > { %v583_v19 = vrot.slane %v581_v13, 5  ;;  %v574_v23 = vsel %vm2234_vm3, %v569_v15, %v573_v54  ;;  %v377_v24 = vrot.slane %v376_v17, 4  ;;  %v547_v26 = vshll.u32 %v199_v14, 16  ;;  %v181_v17 = vld [vmem:[%s2222_s21 + $0x34] sm:$0xf] }
  0x22   : > { %v391_v25 = vrot.slane %v389_v18, 5  ;;  %v387_v29 = vrot.slane %v386_v20, 4  ;;  %v540_v31 = vrot.slane %v538_v21, 4  ;;  %v543_v32 = vrot.slane %v541_v22, 5 }
  0x23   : > { %v584_v28 = vsel %vm2234_vm3, %v579_v16, %v583_v19  ;;  %v382_v35 = vsel %vm2234_vm3, %v377_v24, %v381_v6  ;;  %v549_v36 = vrot.slane %v547_v26, 5  ;;  %v551_v37 = vshrl.u32 %v199_v14, 16 }
  0x24   : > { %v1866_v34 = vcombine.low %v574_v23, %v584_v28  ;;  %v392_v38 = vsel %vm2234_vm3, %v387_v29, %v391_v25  ;;  %v1883_v39 = vcombine.low %v198_v9, %v199_v14  ;;  %v346_v40 = vshrl.u32 %v182_v27, 16  ;;  %v218_v29 = vld [vmem:[%s2222_s21 + $0x98] sm:$0x1] }
  0x25   : > { %v349_v41 = vshll.u32 %v182_v27, 16  ;;  %v1858_v42 = vcombine.low %v382_v35, %v392_v38  ;;  %v553_v43 = vrot.slane %v551_v37, 4  ;;  %v355_v44 = vshll.u32 %v183_v33, 16  ;;  %v194_v37 = vld [vmem:[%s2222_s21 + $0x84] sm:$0xf] }
  0x26   : > { %2087 = vmatprep.subr.msk.bf16.mxu0 %vm665_vm0, %v1866_v34  ;;  %v359_v45 = vshrl.u32 %v183_v33, 16  ;;  %2096 = vmatprep.subr.msk.bf16.mxu1 %vm665_vm0, %v1883_v39  ;;  %v348_v47 = vrot.slane %v346_v40, 4  ;;  %v1875_v49 = vcombine.low %v182_v27, %v183_v33  ;;  %v544_v50 = vor.u32 %v543_v32, %v540_v31  ;;  %v210_v32 = vld [vmem:[%s2222_s21 + $0x38] sm:$0x1] }
  0x27   : > { %v351_v48 = vrot.slane %v349_v41, 5  ;;  %v688_v53 = vsel %vm665_vm0, %v1858_v42, 0  ;;  %v357_v54 = vrot.slane %v355_v44, 5  ;;  %v554_v56 = vor.u32 %v553_v43, %v549_v36  ;;  %v195_v42 = vld [vmem:[%s2222_s21 + $0x88] sm:$0xf] }
  0x28   : > { %v361_v55 = vrot.slane %v359_v45, 4  ;;  %2017 = vmatpush3.bf16.xpose.msra.mxu0 %v688_v53  ;;  %v864_v57 = vsel %vm665_vm0, %v1875_v49, 0  ;;  %v545_v58 = vrot.slane %v544_v50, 4  ;;  %v557_v59 = vshll.u32 %v219_v46, 16 }
  0x29   : > { %v352_v60 = vor.u32 %v351_v48, %v348_v47  ;;  %2037 = vmatpush3.bf16.xpose.msra.mxu1 %v864_v57  ;;  %v555_v62 = vrot.slane %v554_v56, 4  ;;  %v365_v2 = vshll.u32 %v211_v51, 16  ;;  %v514_v3 = vshrl.u32 %v196_v52, 16 }
  0x2a   : > { %v362_v63 = vor.u32 %v361_v55, %v357_v54  ;;  %v550_v4 = vsel %vm2234_vm3, %v545_v58, %v549_v36  ;;  %v559_v5 = vrot.slane %v557_v59, 5  ;;  %v517_v7 = vshll.u32 %v196_v52, 16  ;;  %v178_v55 = vld [vmem:[%s2222_s21 + $0x24] sm:$0xf] }
  0x2b   : > { %v353_v6 = vrot.slane %v352_v60, 4  ;;  %v367_v9 = vrot.slane %v365_v2, 5  ;;  %v516_v10 = vrot.slane %v514_v3, 4  ;;  %v523_v11 = vshll.u32 %v197_v61, 16  ;;  %v179_v60 = vld [vmem:[%s2222_s21 + $0x28] sm:$0xf] }
  0x2c   : > { %v363_v8 = vrot.slane %v362_v63, 4  ;;  %v560_v13 = vsel %vm2234_vm3, %v555_v62, %v559_v5  ;;  %v519_v15 = vrot.slane %v517_v7, 5  ;;  %v527_v16 = vshrl.u32 %v197_v61, 16  ;;  %v217_v3 = vld [vmem:[%s2222_s21 + $0x8c] sm:$0x1] }
  0x2d   : > { %v358_v14 = vsel %vm2234_vm3, %v353_v6, %v357_v54  ;;  %v1865_v18 = vcombine.low %v550_v4, %v560_v13  ;;  %v525_v20 = vrot.slane %v523_v11, 5  ;;  %v1882_v21 = vcombine.low %v196_v52, %v197_v61 }
  0x2e   : > { %v368_v19 = vsel %vm2234_vm3, %v363_v8, %v367_v9  ;;  %v529_v23 = vrot.slane %v527_v16, 4  ;;  %v322_v24 = vshrl.u32 %v180_v12, 16  ;;  %v325_v25 = vshll.u32 %v180_v12, 16  ;;  %v209_v16 = vld [vmem:[%s2222_s21 + $0x2c] sm:$0x1] }
  0x2f   : > { %v1857_v22 = vcombine.low %v358_v14, %v368_v19  ;;  %2088 = vmatprep.subr.msk.bf16.mxu0 %vm665_vm0, %v1865_v18  ;;  %2097 = vmatprep.subr.msk.bf16.mxu1 %vm665_vm0, %v1882_v21  ;;  %v331_v26 = vshll.u32 %v181_v17, 16  ;;  %v335_v27 = vshrl.u32 %v181_v17, 16  ;;  %v1874_v28 = vcombine.low %v180_v12, %v181_v17  ;;  %v192_v17 = vld [vmem:[%s2222_s21 + $0x78] sm:$0xf] }
  0x30   : > { %v520_v31 = vor.u32 %v519_v15, %v516_v10  ;;  %v324_v34 = vrot.slane %v322_v24, 4  ;;  %v327_v35 = vrot.slane %v325_v25, 5  ;;  %v530_v36 = vor.u32 %v529_v23, %v525_v20 }
  0x31   : > { %v685_v33 = vsel %vm665_vm0, %v1857_v22, 0  ;;  %v333_v38 = vrot.slane %v331_v26, 5  ;;  %v337_v39 = vrot.slane %v335_v27, 4  ;;  %v861_v40 = vsel %vm665_vm0, %v1874_v28, 0  ;;  %v193_v22 = vld [vmem:[%s2222_s21 + $0x7c] sm:$0xf] }
  0x32   : > { %2019 = vmatpush3.bf16.xpose.msra.mxu0 %v685_v33  ;;  %v521_v41 = vrot.slane %v520_v31, 4  ;;  %2039 = vmatpush3.bf16.xpose.msra.mxu1 %v861_v40  ;;  %v531_v43 = vrot.slane %v530_v36, 4  ;;  %v533_v44 = vshll.u32 %v218_v29, 16  ;;  %v328_v45 = vor.u32 %v327_v35, %v324_v34 }
  0x33   : > { %v341_v46 = vshll.u32 %v210_v32, 16  ;;  %v338_v48 = vor.u32 %v337_v39, %v333_v38  ;;  %v490_v49 = vshrl.u32 %v194_v37, 16  ;;  %v493_v50 = vshll.u32 %v194_v37, 16  ;;  %v176_v32 = vld [vmem:[%s2222_s21 + $0x18] sm:$0xf] }
  0x34   : > { %v526_v47 = vsel %vm2234_vm3, %v521_v41, %v525_v20  ;;  %v535_v51 = vrot.slane %v533_v44, 5  ;;  %v329_v52 = vrot.slane %v328_v45, 4  ;;  %v499_v54 = vshll.u32 %v195_v42, 16 }
  0x35   : > { %v343_v53 = vrot.slane %v341_v46, 5  ;;  %v339_v56 = vrot.slane %v338_v48, 4  ;;  %v492_v57 = vrot.slane %v490_v49, 4  ;;  %v495_v58 = vrot.slane %v493_v50, 5 }
  0x36   : > { %v503_v59 = vshrl.u32 %v195_v42, 16  ;;  %v536_v61 = vsel %vm2234_vm3, %v531_v43, %v535_v51  ;;  %v334_v62 = vsel %vm2234_vm3, %v329_v52, %v333_v38  ;;  %v501_v63 = vrot.slane %v499_v54, 5  ;;  %v216_v54 = vld [vmem:[%s2222_s21 + $0x80] sm:$0x1] }
  0x37   : > { %v1881_v2 = vcombine.low %v194_v37, %v195_v42  ;;  %v1864_v4 = vcombine.low %v526_v47, %v536_v61  ;;  %v344_v5 = vsel %vm2234_vm3, %v339_v56, %v343_v53  ;;  %v298_v7 = vshrl.u32 %v178_v55, 16  ;;  %v177_v37 = vld [vmem:[%s2222_s21 + $0x1c] sm:$0xf] }
  0x38   : > { %v505_v6 = vrot.slane %v503_v59, 4  ;;  %v1856_v8 = vcombine.low %v334_v62, %v344_v5  ;;  %v301_v9 = vshll.u32 %v178_v55, 16  ;;  %v307_v10 = vshll.u32 %v179_v60, 16  ;;  %v208_v59 = vld [vmem:[%s2222_s21 + $0x20] sm:$0x1] }
  0x39   : > { %2098 = vmatprep.subr.msk.bf16.mxu1 %vm665_vm0, %v1881_v2  ;;  %v311_v11 = vshrl.u32 %v179_v60, 16  ;;  %2089 = vmatprep.subr.msk.bf16.mxu0 %vm665_vm0, %v1864_v4  ;;  %v300_v12 = vrot.slane %v298_v7, 4  ;;  %v1873_v13 = vcombine.low %v178_v55, %v179_v60  ;;  %v496_v14 = vor.u32 %v495_v58, %v492_v57  ;;  %v190_v60 = vld [vmem:[%s2222_s21 + $0x6c] sm:$0xf] }
  0x3a   : > { %v506_v15 = vor.u32 %v505_v6, %v501_v63  ;;  %v682_v18 = vsel %vm665_vm0, %v1856_v8, 0  ;;  %v303_v19 = vrot.slane %v301_v9, 5  ;;  %v309_v20 = vrot.slane %v307_v10, 5 }
  0x3b   : > { %v313_v21 = vrot.slane %v311_v11, 4  ;;  %2021 = vmatpush3.bf16.xpose.msra.mxu0 %v682_v18  ;;  %v858_v23 = vsel %vm665_vm0, %v1873_v13, 0  ;;  %v497_v24 = vrot.slane %v496_v14, 4  ;;  %v509_v26 = vshll.u32 %v217_v3, 16  ;;  %v191_v3 = vld [vmem:[%s2222_s21 + $0x70] sm:$0xf] }
  0x3c   : > { %v507_v25 = vrot.slane %v506_v15, 4  ;;  %2041 = vmatpush3.bf16.xpose.msra.mxu1 %v858_v23  ;;  %v304_v27 = vor.u32 %v303_v19, %v300_v12  ;;  %v317_v29 = vshll.u32 %v209_v16, 16  ;;  %v466_v31 = vshrl.u32 %v192_v17, 16 }
  0x3d   : > { %v314_v28 = vor.u32 %v313_v21, %v309_v20  ;;  %v502_v33 = vsel %vm2234_vm3, %v497_v24, %v501_v63  ;;  %v511_v34 = vrot.slane %v509_v26, 5  ;;  %v469_v35 = vshll.u32 %v192_v17, 16 }
  0x3e   : > { %v475_v36 = vshll.u32 %v193_v22, 16  ;;  %v305_v38 = vrot.slane %v304_v27, 4  ;;  %v319_v40 = vrot.slane %v317_v29, 5  ;;  %v468_v41 = vrot.slane %v466_v31, 4  ;;  %v215_v31 = vld [vmem:[%s2222_s21 + $0x74] sm:$0x1] }
  0x3f   : > { %v315_v39 = vrot.slane %v314_v28, 4  ;;  %v512_v42 = vsel %vm2234_vm3, %v507_v25, %v511_v34  ;;  %v471_v43 = vrot.slane %v469_v35, 5  ;;  %v479_v45 = vshrl.u32 %v193_v22, 16  ;;  %v175_v25 = vld [vmem:[%s2222_s21 + $0x10] sm:$0xf] }
  0x40   : > { %v477_v44 = vrot.slane %v475_v36, 5  ;;  %v1863_v46 = vcombine.low %v502_v33, %v512_v42  ;;  %v310_v47 = vsel %vm2234_vm3, %v305_v38, %v309_v20  ;;  %v1880_v49 = vcombine.low %v192_v17, %v193_v22  ;;  %v174_v20 = vld [vmem:[%s2222_s21 + $0xc] sm:$0xf]  ;;  %v207_v36 = vld [vmem:[%s2222_s21 + $0x14] sm:$0x1] }
  0x41   : > { %v320_v48 = vsel %vm2234_vm3, %v315_v39, %v319_v40  ;;  %v481_v51 = vrot.slane %v479_v45, 4  ;;  %v274_v52 = vshrl.u32 %v176_v32, 16  ;;  %v277_v53 = vshll.u32 %v176_v32, 16  ;;  %v189_v42 = vld [vmem:[%s2222_s21 + $0x64] sm:$0xf] }
  0x42   : > { %v1855_v50 = vcombine.low %v310_v47, %v320_v48  ;;  %2090 = vmatprep.subr.msk.bf16.mxu0 %vm665_vm0, %v1863_v46  ;;  %2099 = vmatprep.subr.msk.bf16.mxu1 %vm665_vm0, %v1880_v49  ;;  %v283_v55 = vshll.u32 %v177_v37, 16  ;;  %v287_v56 = vshrl.u32 %v177_v37, 16  ;;  %v1872_v57 = vcombine.low %v176_v32, %v177_v37  ;;  %v188_v37 = vld [vmem:[%s2222_s21 + $0x60] sm:$0xf] }
  0x43   : > { %v472_v58 = vor.u32 %v471_v43, %v468_v41  ;;  %v276_v62 = vrot.slane %v274_v52, 4  ;;  %v279_v63 = vrot.slane %v277_v53, 5  ;;  %v482_v2 = vor.u32 %v481_v51, %v477_v44 }
  0x44   : > { %v679_v61 = vsel %vm665_vm0, %v1855_v50, 0  ;;  %v285_v4 = vrot.slane %v283_v55, 5  ;;  %v289_v5 = vrot.slane %v287_v56, 4  ;;  %v855_v6 = vsel %vm665_vm0, %v1872_v57, 0 }
  0x45   : > { %2023 = vmatpush3.bf16.xpose.msra.mxu0 %v679_v61  ;;  %v473_v7 = vrot.slane %v472_v58, 4  ;;  %2043 = vmatpush3.bf16.xpose.msra.mxu1 %v855_v6  ;;  %v483_v8 = vrot.slane %v482_v2, 4  ;;  %v485_v9 = vshll.u32 %v216_v54, 16  ;;  %v280_v10 = vor.u32 %v279_v63, %v276_v62 }
  0x46   : > { %v293_v11 = vshll.u32 %v208_v59, 16  ;;  %v290_v13 = vor.u32 %v289_v5, %v285_v4  ;;  %v442_v14 = vshrl.u32 %v190_v60, 16  ;;  %v445_v15 = vshll.u32 %v190_v60, 16  ;;  %v172_v5 = vld [vmem:[%s2222_s21] sm:$0xf] }
  0x47   : > { %v478_v12 = vsel %vm2234_vm3, %v473_v7, %v477_v44  ;;  %v487_v16 = vrot.slane %v485_v9, 5  ;;  %v281_v17 = vrot.slane %v280_v10, 4  ;;  %v451_v19 = vshll.u32 %v191_v3, 16  ;;  %v173_v10 = vld [vmem:[%s2222_s21 + $0x4] sm:$0xf] }
  0x48   : > { %v295_v18 = vrot.slane %v293_v11, 5  ;;  %v291_v21 = vrot.slane %v290_v13, 4  ;;  %v444_v22 = vrot.slane %v442_v14, 4  ;;  %v447_v23 = vrot.slane %v445_v15, 5 }
  0x49   : > { %v455_v24 = vshrl.u32 %v191_v3, 16  ;;  %v488_v26 = vsel %vm2234_vm3, %v483_v8, %v487_v16  ;;  %v286_v27 = vsel %vm2234_vm3, %v281_v17, %v285_v4  ;;  %v453_v28 = vrot.slane %v451_v19, 5 }
  0x4a   : > { %v1879_v29 = vcombine.low %v190_v60, %v191_v3  ;;  %v1862_v32 = vcombine.low %v478_v12, %v488_v26  ;;  %v296_v33 = vsel %vm2234_vm3, %v291_v21, %v295_v18  ;;  %v250_v35 = vshrl.u32 %v174_v20, 16 }
  0x4b   : > { %v457_v34 = vrot.slane %v455_v24, 4  ;;  %v1854_v38 = vcombine.low %v286_v27, %v296_v33  ;;  %v253_v39 = vshll.u32 %v174_v20, 16  ;;  %v259_v40 = vshll.u32 %v175_v25, 16  ;;  %v206_v24 = vld [vmem:[%s2222_s21 + $0x8] sm:$0x1] }
  0x4c   : > { %2100 = vmatprep.subr.msk.bf16.mxu1 %vm665_vm0, %v1879_v29  ;;  %v263_v41 = vshrl.u32 %v175_v25, 16  ;;  %2091 = vmatprep.subr.msk.bf16.mxu0 %vm665_vm0, %v1862_v32  ;;  %v252_v43 = vrot.slane %v250_v35, 4  ;;  %v1871_v44 = vcombine.low %v174_v20, %v175_v25  ;;  %v448_v45 = vor.u32 %v447_v23, %v444_v22  ;;  %v214_v22 = vld [vmem:[%s2222_s21 + $0x68] sm:$0x1]  ;;  %v1984_v29 = vld [vmem:[%s2222_s21 + $0xc0] sm:$0xf] }
  0x4d   : > { %v458_v46 = vor.u32 %v457_v34, %v453_v28  ;;  %v676_v47 = vsel %vm665_vm0, %v1854_v38, 0  ;;  %v255_v48 = vrot.slane %v253_v39, 5  ;;  %v261_v49 = vrot.slane %v259_v40, 5  ;;  %v1985_v35 = vld [vmem:[%s2222_s21 + $0xc4] sm:$0xf] }
  0x4e   : > { %v265_v50 = vrot.slane %v263_v41, 4  ;;  %2025 = vmatpush3.bf16.xpose.msra.mxu0 %v676_v47  ;;  %v852_v51 = vsel %vm665_vm0, %v1871_v44, 0  ;;  %v449_v52 = vrot.slane %v448_v45, 4  ;;  %v461_v54 = vshll.u32 %v215_v31, 16  ;;  %v1986_v40 = vld [vmem:[%s2222_s21 + $0xc8] sm:$0x1] }
  0x4f   : > { %v459_v53 = vrot.slane %v458_v46, 4  ;;  %2045 = vmatpush3.bf16.xpose.msra.mxu1 %v852_v51  ;;  %v256_v55 = vor.u32 %v255_v48, %v252_v43  ;;  %v269_v57 = vshll.u32 %v207_v36, 16  ;;  %v418_v58 = vshrl.u32 %v188_v37, 16  ;;  %v1960_v45 = vld [vmem:[%s2222_s21 + $0x60] sm:$0xf] }
  0x50   : > { %v266_v56 = vor.u32 %v265_v50, %v261_v49  ;;  %v454_v59 = vsel %vm2234_vm3, %v449_v52, %v453_v28  ;;  %v463_v60 = vrot.slane %v461_v54, 5  ;;  %v421_v61 = vshll.u32 %v188_v37, 16  ;;  %v2373_v50 = vld [vmem:[%s2570_s1 + $0x18] sm:$0xff]  }
  0x51   : > { %v427_v62 = vshll.u32 %v189_v42, 16  ;;  %v257_v63 = vrot.slane %v256_v55, 4  ;;  %v271_v3 = vrot.slane %v269_v57, 5  ;;  %v420_v4 = vrot.slane %v418_v58, 4 }
  0x52   : > { %v267_v2 = vrot.slane %v266_v56, 4  ;;  %v464_v6 = vsel %vm2234_vm3, %v459_v53, %v463_v60  ;;  %v423_v7 = vrot.slane %v421_v61, 5  ;;  %v431_v9 = vshrl.u32 %v189_v42, 16 }
  0x53   : > { %v429_v8 = vrot.slane %v427_v62, 5  ;;  %v1861_v11 = vcombine.low %v454_v59, %v464_v6  ;;  %v262_v12 = vsel %vm2234_vm3, %v257_v63, %v261_v49  ;;  %v1878_v14 = vcombine.low %v188_v37, %v189_v42  ;;  %v1961_v59 = vld [vmem:[%s2222_s21 + $0x64] sm:$0xf] }
  0x54   : > { %v272_v13 = vsel %vm2234_vm3, %v267_v2, %v271_v3  ;;  %v433_v16 = vrot.slane %v431_v9, 4  ;;  %v226_v17 = vshrl.u32 %v172_v5, 16  ;;  %v229_v18 = vshll.u32 %v172_v5, 16  ;;  %v1962_v2 = vld [vmem:[%s2222_s21 + $0x68] sm:$0x1]  ;;  %v2147_v3 = vld [vmem:[%s2222_s21 + $0xc0] sm:$0xff]  }
  0x55   : > { %v1853_v15 = vcombine.low %v262_v12, %v272_v13  ;;  %2092 = vmatprep.subr.msk.bf16.mxu0 %vm665_vm0, %v1861_v11  ;;  %2101 = vmatprep.subr.msk.bf16.mxu1 %vm665_vm0, %v1878_v14  ;;  %v235_v19 = vshll.u32 %v173_v10, 16  ;;  %v239_v20 = vshrl.u32 %v173_v10, 16  ;;  %v1870_v21 = vcombine.low %v172_v5, %v173_v10  ;;  %v1981_v9 = vld [vmem:[%s2222_s21 + $0xb4] sm:$0xf]  ;;  %v1982_v14 = vld [vmem:[%s2222_s21 + $0xb8] sm:$0xf] }
  0x56   : > { %v424_v23 = vor.u32 %v423_v7, %v420_v4  ;;  %v228_v26 = vrot.slane %v226_v17, 4  ;;  %v231_v27 = vrot.slane %v229_v18, 5  ;;  %v434_v28 = vor.u32 %v433_v16, %v429_v8 }
  0x57   : > { %v673_v25 = vsel %vm665_vm0, %v1853_v15, 0  ;;  %v237_v31 = vrot.slane %v235_v19, 5  ;;  %v241_v32 = vrot.slane %v239_v20, 4  ;;  %v849_v33 = vsel %vm665_vm0, %v1870_v21, 0  ;;  %v1983_v19 = vld [vmem:[%s2222_s21 + $0xbc] sm:$0x1] }
  0x58   : > { %2027 = vmatpush3.bf16.xpose.msra.mxu0 %v673_v25  ;;  %v425_v34 = vrot.slane %v424_v23, 4  ;;  %2047 = vmatpush3.bf16.xpose.msra.mxu1 %v849_v33  ;;  %v435_v36 = vrot.slane %v434_v28, 4  ;;  %v437_v37 = vshll.u32 %v214_v22, 16  ;;  %v232_v38 = vor.u32 %v231_v27, %v228_v26  ;;  %v1957_v23 = vld [vmem:[%s2222_s21 + $0x54] sm:$0xf] }
  0x59   : > { %v245_v39 = vshll.u32 %v206_v24, 16  ;;  %v242_v42 = vor.u32 %v241_v32, %v237_v31  ;;  %v1567_v43 = vshrl.u32 %v1984_v29, 16  ;;  %v1570_v44 = vshll.u32 %v1984_v29, 16 }
  0x5a   : > { %v430_v41 = vsel %vm2234_vm3, %v425_v34, %v429_v8  ;;  %v439_v46 = vrot.slane %v437_v37, 5  ;;  %v233_v47 = vrot.slane %v232_v38, 4  ;;  %v1576_v49 = vshll.u32 %v1985_v35, 16  ;;  %v2148_v8 = vld [vmem:[%s2222_s21 + $0x60] sm:$0xff]   ;;  %v1958_v37 = vld [vmem:[%s2222_s21 + $0x58] sm:$0xf] }
  0x5b   : > { %v247_v48 = vrot.slane %v245_v39, 5  ;;  %v243_v51 = vrot.slane %v242_v42, 4  ;;  %v1569_v52 = vrot.slane %v1567_v43, 4  ;;  %v1572_v53 = vrot.slane %v1570_v44, 5  ;;  %v2149_v42 = vld [vmem:[%s2222_s21 + $0xb4] sm:$0xff]  }
  0x5c   : > { %v1580_v54 = vshrl.u32 %v1985_v35, 16  ;;  %v440_v55 = vsel %vm2234_vm3, %v435_v36, %v439_v46  ;;  %v238_v56 = vsel %vm2234_vm3, %v233_v47, %v237_v31  ;;  %v1578_v57 = vrot.slane %v1576_v49, 5  ;;  %v2406_v43 = vld [vmem:[%s2570_s1 + $0x10] sm:$0xff]   ;;  %v1959_v46 = vld [vmem:[%s2222_s21 + $0x5c] sm:$0x1] }
  0x5d   : > { %v1586_v58 = vshll.u32 %v1986_v40, 16  ;;  %v1860_v60 = vcombine.low %v430_v41, %v440_v55  ;;  %v248_v61 = vsel %vm2234_vm3, %v243_v51, %v247_v48  ;;  %v1573_v62 = vor.u32 %v1572_v53, %v1569_v52  ;;  %v2150_v49 = vld [vmem:[%s2222_s21 + $0x54] sm:$0xff]   ;;  %v1978_v55 = vld [vmem:[%s2222_s21 + $0xa8] sm:$0xf] }
  0x5e   : > { %v1582_v63 = vrot.slane %v1580_v54, 4  ;;  %v1852_v4 = vcombine.low %v238_v56, %v248_v61  ;;  %v1375_v6 = vshrl.u32 %v1960_v45, 16  ;;  %v1378_v7 = vshll.u32 %v1960_v45, 16 }
  0x5f   : > { %v1588_v5 = vrot.slane %v1586_v58, 5  ;;  %2093 = vmatprep.subr.msk.bf16.mxu0 %vm665_vm0, %v1860_v60  ;;  %v1574_v10 = vrot.slane %v1573_v62, 4  ;;  %2049 = vmatmul.mubr.msk.bf16.vlgmr.msra.gmra.mxu1 %vm665_vm0, %v2207_v0  ;;  %v1384_v12 = vshll.u32 %v1961_v59, 16  ;;  %v1388_v13 = vshrl.u32 %v1961_v59, 16  ;;  %v1979_v60 = vld [vmem:[%s2222_s21 + $0xac] sm:$0xf] }
  0x60   : > { %v1583_v11 = vor.u32 %v1582_v63, %v1578_v57  ;;  %v670_v15 = vsel %vm665_vm0, %v1852_v4, 0  ;;  %v1377_v16 = vrot.slane %v1375_v6, 4  ;;  %v1380_v17 = vrot.slane %v1378_v7, 5  ;;  %2084 = vmatprep.mubr.msk.bf16.mxu1 %vm665_vm0, %v2373_v50 }
  0x61   : > { %v1394_v18 = vshll.u32 %v1962_v2, 16  ;;  %2029 = vmatpush3.bf16.xpose.msra.mxu0 %v670_v15  ;;  %v1579_v20 = vsel %vm2234_vm3, %v1574_v10, %v1578_v57  ;;  %v1386_v22 = vrot.slane %v1384_v12, 5  ;;  %v1390_v0 = vrot.slane %v1388_v13, 4  ;;  %v1954_v15 = vld [vmem:[%s2222_s21 + $0x48] sm:$0xf] }
  0x62   : > { %v1584_v21 = vrot.slane %v1583_v11, 4  ;;  %v1381_v24 = vor.u32 %v1380_v17, %v1377_v16  ;;  %2102 = vmatprep.subr.msk.bf16.mxu0 %vm665_vm0, %v2147_v3  ;;  %v1085_v26 = vsel %vm665_vm0, %v2148_v8, 0  ;;  %v1543_v27 = vshrl.u32 %v1981_v9, 16  ;;  %v1980_v3 = vld [vmem:[%s2222_s21 + $0xb0] sm:$0x1] }
  0x63   : > { %v1396_v25 = vrot.slane %v1394_v18, 5  ;;  %v1391_v29 = vor.u32 %v1390_v0, %v1386_v22  ;;  %v1546_v31 = vshll.u32 %v1981_v9, 16  ;;  %v1552_v32 = vshll.u32 %v1982_v14, 16 }
  0x64   : > { %v1589_v28 = vsel %vm2234_vm3, %v1584_v21, %v1588_v5  ;;  %v1382_v34 = vrot.slane %v1381_v24, 4  ;;  %v1545_v35 = vrot.slane %v1543_v27, 4  ;;  %v1556_v36 = vshrl.u32 %v1982_v14, 16  ;;  %v2151_v24 = vld [vmem:[%s2222_s21 + $0xa8] sm:$0xff]  }
  0x65   : > { %v2005_v33 = vcombine.low %v1579_v20, %v1589_v28  ;;  %v1392_v38 = vrot.slane %v1391_v29, 4  ;;  %v1548_v39 = vrot.slane %v1546_v31, 5  ;;  %v1554_v40 = vrot.slane %v1552_v32, 5  ;;  %v1955_v20 = vld [vmem:[%s2222_s21 + $0x4c] sm:$0xf] }
  0x66   : > { %v1562_v41 = vshll.u32 %v1983_v19, 16  ;;  %v1387_v44 = vsel %vm2234_vm3, %v1382_v34, %v1386_v22  ;;  %v1558_v45 = vrot.slane %v1556_v36, 4  ;;  %v1351_v47 = vshrl.u32 %v1957_v23, 16  ;;  %v2152_v29 = vld [vmem:[%s2222_s21 + $0x48] sm:$0xff]  }
  0x67   : > { %2110 = vmatprep.subr.msk.bf16.mxu1 %vm665_vm0, %v2005_v33  ;;  %v1354_v48 = vshll.u32 %v1957_v23, 16  ;;  %v1397_v51 = vsel %vm2234_vm3, %v1392_v38, %v1396_v25  ;;  %v1549_v52 = vor.u32 %v1548_v39, %v1545_v35  ;;  %v1360_v54 = vshll.u32 %v1958_v37, 16  ;;  %v1956_v33 = vld [vmem:[%s2222_s21 + $0x50] sm:$0x1] }
  0x68   : > { %v1564_v53 = vrot.slane %v1562_v41, 5  ;;  %v1997_v56 = vcombine.low %v1387_v44, %v1397_v51  ;;  %2031 = vmatmul.mubr.msk.bf16.vlgmr.msra.gmra.mxu0 %vm665_vm0, %v2212_v1  ;;  %v1559_v57 = vor.u32 %v1558_v45, %v1554_v40  ;;  %v1353_v58 = vrot.slane %v1351_v47, 4  ;;  %v1976_v51 = vld [vmem:[%s2222_s21 + $0xa0] sm:$0xf] }
  0x69   : > { %v1356_v59 = vrot.slane %v1354_v48, 5  ;;  %2051 = vmatpush3.bf16.xpose.msra.mxu0 %v1085_v26  ;;  %v1550_v61 = vrot.slane %v1549_v52, 4  ;;  %v1362_v62 = vrot.slane %v1360_v54, 5  ;;  %v1364_v63 = vshrl.u32 %v1958_v37, 16  ;;  %2066 = vmatprep.mubr.msk.bf16.mxu0 %vm665_vm0, %v2406_v43 }
  0x6a   : > { %v1370_v2 = vshll.u32 %v1959_v46, 16  ;;  %v1671_v4 = vsel %vm665_vm0, %v1997_v56, 0  ;;  %v1560_v5 = vrot.slane %v1559_v57, 4  ;;  %2103 = vmatprep.subr.msk.bf16.mxu0 %vm665_vm0, %v2149_v42  ;;  %v1082_v1 = vsel %vm665_vm0, %v2150_v49, 0 }
  0x6b   : > { %v1357_v6 = vor.u32 %v1356_v59, %v1353_v58  ;;  %2069 = vmatpush3.bf16.xpose.msra.mxu1 %v1671_v4  ;;  %v1555_v7 = vsel %vm2234_vm3, %v1550_v61, %v1554_v40  ;;  %v1366_v8 = vrot.slane %v1364_v63, 4  ;;  %v1519_v10 = vshrl.u32 %v1978_v55, 16  ;;  %v1975_v40 = vld [vmem:[%s2222_s21 + $0x9c] sm:$0xf] }
  0x6c   : > { %v1372_v9 = vrot.slane %v1370_v2, 5  ;;  %v1565_v11 = vsel %vm2234_vm3, %v1560_v5, %v1564_v53  ;;  %v1522_v13 = vshll.u32 %v1978_v55, 16  ;;  %v1528_v14 = vshll.u32 %v1979_v60, 16  ;;  %v1977_v55 = vld [vmem:[%s2222_s21 + $0xa4] sm:$0x1]  ;;  %v2153_v4 = vld [vmem:[%s2222_s21 + $0x9c] sm:$0xff]  }
  0x6d   : > { %v1358_v12 = vrot.slane %v1357_v6, 4  ;;  %v2004_v16 = vcombine.low %v1555_v7, %v1565_v11  ;;  %v1367_v17 = vor.u32 %v1366_v8, %v1362_v62  ;;  %v1521_v18 = vrot.slane %v1519_v10, 4  ;;  %v1951_v61 = vld [vmem:[%s2222_s21 + $0x3c] sm:$0xf]  ;;  %v1952_v8 = vld [vmem:[%s2222_s21 + $0x40] sm:$0xf] }
  0x6e   : > { %v1532_v19 = vshrl.u32 %v1979_v60, 16  ;;  %v1524_v22 = vrot.slane %v1522_v13, 5  ;;  %v1530_v0 = vrot.slane %v1528_v14, 5  ;;  %v1538_v23 = vshll.u32 %v1980_v3, 16  ;;  %v1953_v11 = vld [vmem:[%s2222_s21 + $0x44] sm:$0x1] }
  0x6f   : > { %v1363_v21 = vsel %vm2234_vm3, %v1358_v12, %v1362_v62  ;;  %2111 = vmatprep.subr.msk.bf16.mxu1 %vm665_vm0, %v2004_v16  ;;  %v1368_v25 = vrot.slane %v1367_v17, 4  ;;  %v1327_v27 = vshrl.u32 %v1954_v15, 16  ;;  %v1330_v28 = vshll.u32 %v1954_v15, 16  ;;  %v2154_v14 = vld [vmem:[%s2222_s21 + $0x3c] sm:$0xff]  }
  0x70   : > { %v1534_v26 = vrot.slane %v1532_v19, 4  ;;  %v1525_v31 = vor.u32 %v1524_v22, %v1521_v18  ;;  %v1540_v32 = vrot.slane %v1538_v23, 5  ;;  %v1336_v34 = vshll.u32 %v1955_v20, 16 }
  0x71   : > { %v1340_v35 = vshrl.u32 %v1955_v20, 16  ;;  %v1373_v36 = vsel %vm2234_vm3, %v1368_v25, %v1372_v9  ;;  %2053 = vmatpush3.bf16.xpose.msra.mxu0 %v1082_v1  ;;  %v1329_v38 = vrot.slane %v1327_v27, 4  ;;  %v1332_v39 = vrot.slane %v1330_v28, 5  ;;  %v1973_v27 = vld [vmem:[%s2222_s21 + $0x94] sm:$0xf] }
  0x72   : > { %v1535_v37 = vor.u32 %v1534_v26, %v1530_v0  ;;  %v1996_v41 = vcombine.low %v1363_v21, %v1373_v36  ;;  %v1526_v42 = vrot.slane %v1525_v31, 4  ;;  %v1338_v44 = vrot.slane %v1336_v34, 5  ;;  %2104 = vmatprep.subr.msk.bf16.mxu0 %vm665_vm0, %v2151_v24 }
  0x73   : > { %v1342_v45 = vrot.slane %v1340_v35, 4  ;;  %v1333_v47 = vor.u32 %v1332_v39, %v1329_v38  ;;  %v1346_v48 = vshll.u32 %v1956_v33, 16  ;;  %v1079_v49 = vsel %vm665_vm0, %v2152_v29, 0  ;;  %v1974_v33 = vld [vmem:[%s2222_s21 + $0x98] sm:$0x1] }
  0x74   : > { %v1536_v46 = vrot.slane %v1535_v37, 4  ;;  %v1668_v52 = vsel %vm665_vm0, %v1996_v41, 0  ;;  %v1531_v53 = vsel %vm2234_vm3, %v1526_v42, %v1530_v0  ;;  %v1495_v56 = vshrl.u32 %v1975_v40, 16  ;;  %v1972_v0 = vld [vmem:[%s2222_s21 + $0x90] sm:$0xf] }
  0x75   : > { %v1343_v54 = vor.u32 %v1342_v45, %v1338_v44  ;;  %2071 = vmatpush3.bf16.xpose.msra.mxu1 %v1668_v52  ;;  %v1334_v58 = vrot.slane %v1333_v47, 4  ;;  %v1348_v59 = vrot.slane %v1346_v48, 5  ;;  %v1498_v60 = vshll.u32 %v1975_v40, 16  ;;  %v1948_v42 = vld [vmem:[%s2222_s21 + $0x30] sm:$0xf] }
  0x76   : > { %v1541_v57 = vsel %vm2234_vm3, %v1536_v46, %v1540_v32  ;;  %v1497_v2 = vrot.slane %v1495_v56, 4  ;;  %v1504_v3 = vshll.u32 %v1976_v51, 16  ;;  %v1508_v1 = vshrl.u32 %v1976_v51, 16 }
  0x77   : > { %v2003_v62 = vcombine.low %v1531_v53, %v1541_v57  ;;  %v1344_v63 = vrot.slane %v1343_v54, 4  ;;  %v1339_v5 = vsel %vm2234_vm3, %v1334_v58, %v1338_v44  ;;  %v1500_v6 = vrot.slane %v1498_v60, 5  ;;  %v2155_v44 = vld [vmem:[%s2222_s21 + $0x90] sm:$0xff]  }
  0x78   : > { %v1514_v7 = vshll.u32 %v1977_v55, 16  ;;  %v1506_v10 = vrot.slane %v1504_v3, 5  ;;  %v1303_v12 = vshrl.u32 %v1951_v61, 16  ;;  %v1306_v13 = vshll.u32 %v1951_v61, 16  ;;  %v2156_v55 = vld [vmem:[%s2222_s21 + $0x30] sm:$0xff]  }
  0x79   : > { %2112 = vmatprep.subr.msk.bf16.mxu1 %vm665_vm0, %v2003_v62  ;;  %v1349_v9 = vsel %vm2234_vm3, %v1344_v63, %v1348_v59  ;;  %2055 = vmatpush3.bf16.xpose.msra.mxu0 %v1079_v49  ;;  %v1501_v16 = vor.u32 %v1500_v6, %v1497_v2  ;;  %v1510_v17 = vrot.slane %v1508_v1, 4  ;;  %v1312_v21 = vshll.u32 %v1952_v8, 16  ;;  %v1949_v49 = vld [vmem:[%s2222_s21 + $0x34] sm:$0xf]  ;;  %v1950_v59 = vld [vmem:[%s2222_s21 + $0x38] sm:$0x1] }
  0x7a   : > { %v1995_v15 = vcombine.low %v1339_v5, %v1349_v9  ;;  %v1516_v18 = vrot.slane %v1514_v7, 5  ;;  %v1305_v19 = vrot.slane %v1303_v12, 4  ;;  %v1308_v20 = vrot.slane %v1306_v13, 5  ;;  %2105 = vmatprep.subr.msk.bf16.mxu0 %vm665_vm0, %v2153_v4  ;;  %v1969_v1 = vld [vmem:[%s2222_s21 + $0x84] sm:$0xf] }
  0x7b   : > { %v1316_v22 = vshrl.u32 %v1952_v8, 16  ;;  %v1502_v24 = vrot.slane %v1501_v16, 4  ;;  %v1511_v25 = vor.u32 %v1510_v17, %v1506_v10  ;;  %v1322_v26 = vshll.u32 %v1953_v11, 16  ;;  %v1970_v11 = vld [vmem:[%s2222_s21 + $0x88] sm:$0xf] }
  0x7c   : > { %v1665_v23 = vsel %vm665_vm0, %v1995_v15, 0  ;;  %v1309_v28 = vor.u32 %v1308_v20, %v1305_v19  ;;  %v1314_v29 = vrot.slane %v1312_v21, 5  ;;  %v1076_v32 = vsel %vm665_vm0, %v2154_v14, 0  ;;  %v1971_v19 = vld [vmem:[%s2222_s21 + $0x8c] sm:$0x1]  ;;  %v2157_v21 = vld [vmem:[%s2222_s21 + $0x84] sm:$0xff]  }
  0x7d   : > { %v1318_v31 = vrot.slane %v1316_v22, 4  ;;  %2073 = vmatpush3.bf16.xpose.msra.mxu1 %v1665_v23  ;;  %v1507_v34 = vsel %vm2234_vm3, %v1502_v24, %v1506_v10  ;;  %v1512_v35 = vrot.slane %v1511_v25, 4  ;;  %v1324_v36 = vrot.slane %v1322_v26, 5  ;;  %v1945_v25 = vld [vmem:[%s2222_s21 + $0x24] sm:$0xf] }
  0x7e   : > { %v1471_v37 = vshrl.u32 %v1972_v0, 16  ;;  %v1310_v38 = vrot.slane %v1309_v28, 4  ;;  %v1474_v40 = vshll.u32 %v1972_v0, 16  ;;  %v1480_v41 = vshll.u32 %v1973_v27, 16 }
  0x7f   : > { %v1319_v39 = vor.u32 %v1318_v31, %v1314_v29  ;;  %v1517_v45 = vsel %vm2234_vm3, %v1512_v35, %v1516_v18  ;;  %v1484_v47 = vshrl.u32 %v1973_v27, 16  ;;  %v1490_v48 = vshll.u32 %v1974_v33, 16  ;;  %v1946_v31 = vld [vmem:[%s2222_s21 + $0x28] sm:$0xf] }
  0x80   : > { %v1473_v46 = vrot.slane %v1471_v37, 4  ;;  %v2002_v51 = vcombine.low %v1507_v34, %v1517_v45  ;;  %v1315_v52 = vsel %vm2234_vm3, %v1310_v38, %v1314_v29  ;;  %v1476_v54 = vrot.slane %v1474_v40, 5  ;;  %v1947_v38 = vld [vmem:[%s2222_s21 + $0x2c] sm:$0x1] }
  0x81   : > { %v1320_v53 = vrot.slane %v1319_v39, 4  ;;  %2057 = vmatpush3.bf16.xpose.msra.mxu0 %v1076_v32  ;;  %v1482_v56 = vrot.slane %v1480_v41, 5  ;;  %v1486_v57 = vrot.slane %v1484_v47, 4  ;;  %v1492_v58 = vrot.slane %v1490_v48, 5  ;;  %v2158_v41 = vld [vmem:[%s2222_s21 + $0x24] sm:$0xff]  }
  0x82   : > { %v1279_v60 = vshrl.u32 %v1948_v42, 16  ;;  %2113 = vmatprep.subr.msk.bf16.mxu1 %vm665_vm0, %v2002_v51  ;;  %v1477_v62 = vor.u32 %v1476_v54, %v1473_v46  ;;  %v1282_v63 = vshll.u32 %v1948_v42, 16  ;;  %v1288_v2 = vshll.u32 %v1949_v49, 16  ;;  %2106 = vmatprep.subr.msk.bf16.mxu0 %vm665_vm0, %v2155_v44 }
  0x83   : > { %v1325_v61 = vsel %vm2234_vm3, %v1320_v53, %v1324_v36  ;;  %v1487_v4 = vor.u32 %v1486_v57, %v1482_v56  ;;  %v1292_v6 = vshrl.u32 %v1949_v49, 16  ;;  %v1298_v10 = vshll.u32 %v1950_v59, 16  ;;  %v1967_v57 = vld [vmem:[%s2222_s21 + $0x7c] sm:$0xf] }
  0x84   : > { %v1994_v3 = vcombine.low %v1315_v52, %v1325_v61  ;;  %v1281_v5 = vrot.slane %v1279_v60, 4  ;;  %v1478_v7 = vrot.slane %v1477_v62, 4  ;;  %v1284_v8 = vrot.slane %v1282_v63, 5  ;;  %v1966_v52 = vld [vmem:[%s2222_s21 + $0x78] sm:$0xf] }
  0x85   : > { %v1290_v9 = vrot.slane %v1288_v2, 5  ;;  %v1488_v13 = vrot.slane %v1487_v4, 4  ;;  %v1294_v14 = vrot.slane %v1292_v6, 4  ;;  %v1073_v15 = vsel %vm665_vm0, %v2156_v55, 0  ;;  %v2159_v62 = vld [vmem:[%s2222_s21 + $0x78] sm:$0xff]  }
  0x86   : > { %v1662_v12 = vsel %vm665_vm0, %v1994_v3, 0  ;;  %v1483_v16 = vsel %vm2234_vm3, %v1478_v7, %v1482_v56  ;;  %v1285_v17 = vor.u32 %v1284_v8, %v1281_v5  ;;  %v1300_v18 = vrot.slane %v1298_v10, 5  ;;  %v1968_v4 = vld [vmem:[%s2222_s21 + $0x80] sm:$0x1] }
  0x87   : > { %2075 = vmatpush3.bf16.xpose.msra.mxu1 %v1662_v12  ;;  %v1447_v20 = vshrl.u32 %v1969_v1, 16  ;;  %v1493_v22 = vsel %vm2234_vm3, %v1488_v13, %v1492_v58  ;;  %v1295_v0 = vor.u32 %v1294_v14, %v1290_v9  ;;  %v1450_v23 = vshll.u32 %v1969_v1, 16  ;;  %v1943_v14 = vld [vmem:[%s2222_s21 + $0x1c] sm:$0xf] }
  0x88   : > { %v1456_v24 = vshll.u32 %v1970_v11, 16  ;;  %v2001_v26 = vcombine.low %v1483_v16, %v1493_v22  ;;  %v1286_v27 = vrot.slane %v1285_v17, 4  ;;  %v1460_v29 = vshrl.u32 %v1970_v11, 16 }
  0x89   : > { %v1449_v28 = vrot.slane %v1447_v20, 4  ;;  %v1296_v32 = vrot.slane %v1295_v0, 4  ;;  %2059 = vmatpush3.bf16.xpose.msra.mxu0 %v1073_v15  ;;  %v1452_v33 = vrot.slane %v1450_v23, 5  ;;  %v1466_v35 = vshll.u32 %v1971_v19, 16  ;;  %v2160_v0 = vld [vmem:[%s2222_s21 + $0x18] sm:$0xff]  }
  0x8a   : > { %v1458_v34 = vrot.slane %v1456_v24, 5  ;;  %2114 = vmatprep.subr.msk.bf16.mxu1 %vm665_vm0, %v2001_v26  ;;  %v1291_v36 = vsel %vm2234_vm3, %v1286_v27, %v1290_v9  ;;  %v1462_v37 = vrot.slane %v1460_v29, 4  ;;  %v1255_v39 = vshrl.u32 %v1945_v25, 16  ;;  %2107 = vmatprep.subr.msk.bf16.mxu0 %vm665_vm0, %v2157_v21  ;;  %v1942_v9 = vld [vmem:[%s2222_s21 + $0x18] sm:$0xf] }
  0x8b   : > { %v1258_v40 = vshll.u32 %v1945_v25, 16  ;;  %v1301_v42 = vsel %vm2234_vm3, %v1296_v32, %v1300_v18  ;;  %v1453_v44 = vor.u32 %v1452_v33, %v1449_v28  ;;  %v1468_v45 = vrot.slane %v1466_v35, 5  ;;  %v1944_v25 = vld [vmem:[%s2222_s21 + $0x20] sm:$0x1]  ;;  %v1963_v33 = vld [vmem:[%s2222_s21 + $0x6c] sm:$0xf] }
  0x8c   : > { %v1264_v46 = vshll.u32 %v1946_v31, 16  ;;  %v1993_v47 = vcombine.low %v1291_v36, %v1301_v42  ;;  %v1463_v48 = vor.u32 %v1462_v37, %v1458_v34  ;;  %v1257_v49 = vrot.slane %v1255_v39, 4 }
  0x8d   : > { %v1260_v51 = vrot.slane %v1258_v40, 5  ;;  %v1454_v53 = vrot.slane %v1453_v44, 4  ;;  %v1268_v55 = vshrl.u32 %v1946_v31, 16  ;;  %v1274_v56 = vshll.u32 %v1947_v38, 16  ;;  %v2161_v38 = vld [vmem:[%s2222_s21 + $0x6c] sm:$0xff]  }
  0x8e   : > { %v1266_v54 = vrot.slane %v1264_v46, 5  ;;  %v1659_v58 = vsel %vm665_vm0, %v1993_v47, 0  ;;  %v1464_v59 = vrot.slane %v1463_v48, 4  ;;  %v1070_v61 = vsel %vm665_vm0, %v2158_v41, 0  ;;  %v1964_v44 = vld [vmem:[%s2222_s21 + $0x70] sm:$0xf] }
  0x8f   : > { %v1261_v60 = vor.u32 %v1260_v51, %v1257_v49  ;;  %2077 = vmatpush3.bf16.xpose.msra.mxu1 %v1659_v58  ;;  %v1459_v63 = vsel %vm2234_vm3, %v1454_v53, %v1458_v34  ;;  %v1270_v2 = vrot.slane %v1268_v55, 4  ;;  %v1276_v3 = vrot.slane %v1274_v56, 5  ;;  %v1965_v48 = vld [vmem:[%s2222_s21 + $0x74] sm:$0x1]  ;;  %v1939_v55 = vld [vmem:[%s2222_s21 + $0xc] sm:$0xf] }
  0x90   : > { %v1423_v5 = vshrl.u32 %v1966_v52, 16  ;;  %v1469_v6 = vsel %vm2234_vm3, %v1464_v59, %v1468_v45  ;;  %v1426_v7 = vshll.u32 %v1966_v52, 16  ;;  %v1432_v8 = vshll.u32 %v1967_v57, 16 }
  0x91   : > { %v1262_v1 = vrot.slane %v1261_v60, 4  ;;  %v2000_v10 = vcombine.low %v1459_v63, %v1469_v6  ;;  %v1271_v11 = vor.u32 %v1270_v2, %v1266_v54  ;;  %2061 = vmatpush3.bf16.xpose.msra.mxu0 %v1070_v61  ;;  %v1436_v13 = vshrl.u32 %v1967_v57, 16  ;;  %v1940_v2 = vld [vmem:[%s2222_s21 + $0x10] sm:$0xf] }
  0x92   : > { %v1425_v12 = vrot.slane %v1423_v5, 4  ;;  %v1428_v16 = vrot.slane %v1426_v7, 5  ;;  %v1434_v17 = vrot.slane %v1432_v8, 5  ;;  %v1442_v18 = vshll.u32 %v1968_v4, 16  ;;  %2108 = vmatprep.subr.msk.bf16.mxu0 %vm665_vm0, %v2159_v62  ;;  %v1941_v5 = vld [vmem:[%s2222_s21 + $0x14] sm:$0x1] }
  0x93   : > { %v1267_v15 = vsel %vm2234_vm3, %v1262_v1, %v1266_v54  ;;  %2115 = vmatprep.subr.msk.bf16.mxu1 %vm665_vm0, %v2000_v10  ;;  %v1272_v19 = vrot.slane %v1271_v11, 4  ;;  %v1438_v20 = vrot.slane %v1436_v13, 4  ;;  %v1231_v21 = vshrl.u32 %v1942_v9, 16  ;;  %v2162_v7 = vld [vmem:[%s2222_s21 + $0xc] sm:$0xff]  }
  0x94   : > { %v1234_v22 = vshll.u32 %v1942_v9, 16  ;;  %v1429_v23 = vor.u32 %v1428_v16, %v1425_v12  ;;  %v1444_v24 = vrot.slane %v1442_v18, 5  ;;  %v1240_v26 = vshll.u32 %v1943_v14, 16 }
  0x95   : > { %v1244_v27 = vshrl.u32 %v1943_v14, 16  ;;  %v1277_v28 = vsel %vm2234_vm3, %v1272_v19, %v1276_v3  ;;  %v1439_v29 = vor.u32 %v1438_v20, %v1434_v17  ;;  %v1233_v31 = vrot.slane %v1231_v21, 4 }
  0x96   : > { %v1236_v32 = vrot.slane %v1234_v22, 5  ;;  %v1992_v34 = vcombine.low %v1267_v15, %v1277_v28  ;;  %v1430_v35 = vrot.slane %v1429_v23, 4  ;;  %v1242_v36 = vrot.slane %v1240_v26, 5  ;;  %v1744_v23 = vld [vmem:[%s2571_s2] sm:$0xff] }
  0x97   : > { %v1246_v37 = vrot.slane %v1244_v27, 4  ;;  %v1440_v39 = vrot.slane %v1439_v29, 4  ;;  %v1250_v41 = vshll.u32 %v1944_v25, 16  ;;  %v1067_v42 = vsel %vm665_vm0, %v2160_v0, 0 }
  0x98   : > { %v1237_v40 = vor.u32 %v1236_v32, %v1233_v31  ;;  %v1656_v45 = vsel %vm665_vm0, %v1992_v34, 0  ;;  %v1435_v46 = vsel %vm2234_vm3, %v1430_v35, %v1434_v17  ;;  %v1399_v49 = vshrl.u32 %v1963_v33, 16  ;;  %v1745_v35 = vld [vmem:[%s2571_s2 + $0x8] sm:$0xff] }
  0x99   : > { %v1247_v47 = vor.u32 %v1246_v37, %v1242_v36  ;;  %2079 = vmatpush3.bf16.xpose.msra.mxu1 %v1656_v45  ;;  %v1445_v51 = vsel %vm2234_vm3, %v1440_v39, %v1444_v24  ;;  %v1252_v53 = vrot.slane %v1250_v41, 5  ;;  %2063 = vmatpush3.bf16.xpose.msra.mxu0 %v1067_v42  ;;  %v1402_v54 = vshll.u32 %v1963_v33, 16 }
  0x9a   : > { %v1238_v52 = vrot.slane %v1237_v40, 4  ;;  %v1999_v56 = vcombine.low %v1435_v46, %v1445_v51  ;;  %v1401_v58 = vrot.slane %v1399_v49, 4  ;;  %v1408_v59 = vshll.u32 %v1964_v44, 16  ;;  %2109 = vmatprep.subr.msk.bf16.mxu0 %vm665_vm0, %v2161_v38 }
  0x9b   : > { %v1248_v57 = vrot.slane %v1247_v47, 4  ;;  %v1404_v61 = vrot.slane %v1402_v54, 5  ;;  %v1412_v62 = vshrl.u32 %v1964_v44, 16  ;;  %v1418_v63 = vshll.u32 %v1965_v48, 16 }
  0x9c   : > { %v1243_v60 = vsel %vm2234_vm3, %v1238_v52, %v1242_v36  ;;  %2116 = vmatprep.subr.msk.bf16.mxu1 %vm665_vm0, %v1999_v56  ;;  %v1410_v4 = vrot.slane %v1408_v59, 5  ;;  %v1207_v6 = vshrl.u32 %v1939_v55, 16  ;;  %v1210_v1 = vshll.u32 %v1939_v55, 16 }
  0x9d   : > { %v1253_v3 = vsel %vm2234_vm3, %v1248_v57, %v1252_v53  ;;  %v1405_v9 = vor.u32 %v1404_v61, %v1401_v58  ;;  %v1414_v10 = vrot.slane %v1412_v62, 4  ;;  %v1420_v11 = vrot.slane %v1418_v63, 5 }
  0x9e   : > { %v1991_v8 = vcombine.low %v1243_v60, %v1253_v3  ;;  %v1209_v12 = vrot.slane %v1207_v6, 4  ;;  %v1212_v13 = vrot.slane %v1210_v1, 5  ;;  %v1216_v14 = vshll.u32 %v1940_v2, 16 }
  0x9f   : > { %v1220_v15 = vshrl.u32 %v1940_v2, 16  ;;  %v1406_v17 = vrot.slane %v1405_v9, 4  ;;  %v1415_v18 = vor.u32 %v1414_v10, %v1410_v4  ;;  %v1226_v19 = vshll.u32 %v1941_v5, 16 }
  0xa0   : > { %v1653_v16 = vsel %vm665_vm0, %v1991_v8, 0  ;;  %v1213_v20 = vor.u32 %v1212_v13, %v1209_v12  ;;  %v1218_v21 = vrot.slane %v1216_v14, 5  ;;  %v1064_v0 = vsel %vm665_vm0, %v2162_v7, 0 }
  0xa1   : > { %v1222_v22 = vrot.slane %v1220_v15, 4  ;;  %2081 = vmatpush3.bf16.xpose.msra.mxu1 %v1653_v16  ;;  %v1411_v24 = vsel %vm2234_vm3, %v1406_v17, %v1410_v4  ;;  %v1416_v25 = vrot.slane %v1415_v18, 4  ;;  %2065 = vmatpush3.bf16.xpose.msra.mxu0 %v1064_v0  ;;  %v1228_v28 = vrot.slane %v1226_v19, 5 }
  0xa2   : > { %v1214_v26 = vrot.slane %v1213_v20, 4  ;;  %v2173_v29 = vmov 0  }
  0xa3   : > { %v1223_v27 = vor.u32 %v1222_v22, %v1218_v21  ;;  %2128 = vset.pattern.permute.xlu0 %v2173_v29  ;;  %v1421_v31 = vsel %vm2234_vm3, %v1416_v25, %v1420_v11 }
  0xa4   : > { %1748 = vperm.xlu0 %2128, %v1744_v23   ;;  %v1998_v32 = vcombine.low %v1411_v24, %v1421_v31  ;;  %v1219_v33 = vsel %vm2234_vm3, %v1214_v26, %v1218_v21 }
  0xa5   : > { %v1224_v34 = vrot.slane %v1223_v27, 4 }
  0xa6   : > { %2117 = vmatprep.subr.msk.bf16.mxu1 %vm665_vm0, %v1998_v32 }
  0xa7   : > { %v1229_v36 = vsel %vm2234_vm3, %v1224_v34, %v1228_v28 }
  0xa8   : > { %v1990_v37 = vcombine.low %v1219_v33, %v1229_v36  ;;  %1753 = vperm.xlu0 %2128, %v1745_v35   ;;  %2067 = vmatmul.mubr.msk.bf16.vlgmr.msra.gmra.mxu0 %vm665_vm0, %v2406_v43 }
  0xaa   : > { %v1650_v38 = vsel %vm665_vm0, %v1990_v37, 0 }
  0xab   : > { %2083 = vmatpush3.bf16.xpose.msra.mxu1 %v1650_v38 }
  0xb2   : > { %2085 = vmatmul.mubr.msk.bf16.vlgmr.msra.gmra.mxu1 %vm665_vm0, %v2373_v50 }
 0x11f   : > { %v930_v42 = vpop.f32.mrf.mxu1  ;;  %v1749_v56 = vpop.permute.xlu0 %1748 }
 0x121   : > { %v932_v45 = vpop.f32.mrf.mxu1 }
 0x123   : > { %v934_v47 = vpop.f32.mrf.mxu1  ;;  %v1754_v6 = vpop.permute.xlu0 %1753 }
 0x125   : > { %v936_v43 = vpop.f32.mrf.mxu1 }
 0x128   : > { %v751_v39 = vpop.f32.mrf.mxu0 }
 0x129   : > { %v931_v48 = vadd.f32 %v930_v42, %v751_v39 }
 0x12a   : > { %v753_v40 = vpop.f32.mrf.mxu0 }
 0x12b   : > { %v933_v49 = vadd.f32 %v932_v45, %v753_v40 }
 0x12c   : > { %v755_v41 = vpop.f32.mrf.mxu0 }
 0x12d   : > { %v935_v53 = vadd.f32 %v934_v47, %v755_v41 }
 0x12e   : > { %v757_v44 = vpop.f32.mrf.mxu0 }
 0x12f   : > { %v937_v59 = vadd.f32 %v936_v43, %v757_v44 }
 0x168   : > { %v1145_v46 = vpop.f32.mrf.mxu0 }
 0x169   : > { %v1154_v51 = vadd.f32 %v1145_v46, %v931_v48 }
 0x16a   : > { %v1147_v30 = vpop.f32.mrf.mxu0 }
 0x16b   : > { %v1155_v54 = vadd.f32 %v1147_v30, %v933_v49 }
 0x16c   : > { %v1149_v52 = vpop.f32.mrf.mxu0 }
 0x16d   : > { %v1156_v57 = vadd.f32 %v1149_v52, %v935_v53 }
 0x16e   : > { %v1151_v58 = vpop.f32.mrf.mxu0 }
 0x16f   : > { %v1157_v2 = vadd.f32 %v1151_v58, %v937_v59 }
 0x172   : > { %v1731_v55 = vpop.f32.mrf.mxu1 }
 0x173   : > { %v1740_v50 = vadd.f32 %v1731_v55, %v1154_v51 }
 0x174   : > { %v1733_v60 = vpop.f32.mrf.mxu1 }
 0x175   : > { %v1756_v61 = vadd.f32 %v1749_v56, %v1740_v50  ;;  %v1741_v62 = vadd.f32 %v1733_v60, %v1155_v54 }
 0x176   : > { %v1735_v63 = vpop.f32.mrf.mxu1 }
 0x177   : > { %v1764_v3 = vmul.f32 0.01, %v1756_v61  ;;  %v1757_v4 = vadd.f32 %v1749_v56, %v1741_v62  ;;  %v1742_v5 = vadd.f32 %v1735_v63, %v1156_v57  ;;  %vm1760_vm4 = vcmp.gt.f32.partialorder %v1756_v61, 0.0 }
 0x178   : > { %v1737_v7 = vpop.f32.mrf.mxu1 }
 0x179   : > { %vm1761_vm5 = vcmp.gt.f32.partialorder %v1757_v4, 0.0  ;;  %v1765_v1 = vmul.f32 0.01, %v1757_v4  ;;  %v1758_v8 = vadd.f32 %v1754_v6, %v1742_v5  ;;  %v1743_v9 = vadd.f32 %v1737_v7, %v1157_v2 }
 0x17a   : > { %v1768_v10 = vsel %vm1760_vm4, %v1756_v61, %v1764_v3 }
 0x17b   : > { %v1769_v11 = vsel %vm1761_vm5, %v1757_v4, %v1765_v1  ;;  %v1766_v13 = vmul.f32 0.01, %v1758_v8  ;;  %v1759_v14 = vadd.f32 %v1754_v6, %v1743_v9  ;;  %vm1762_vm6 = vcmp.gt.f32.partialorder %v1758_v8, 0.0 }
 0x17c   : > { %v2012_v12 = vpack.c.bf16 %v1769_v11, %v1768_v10 }
 0x17d   : > { %vm1763_vm7 = vcmp.gt.f32.partialorder %v1759_v14, 0.0  ;;  %v1767_v15 = vmul.f32 0.01, %v1759_v14  ;;  %v1770_v16 = vsel %vm1762_vm6, %v1758_v8, %v1766_v13 }
 0x17e   : > { %1784 = vst [vmem:[%s170_s6] sm:$0xff] %v2012_v12 }
 0x17f   : > { %v1771_v17 = vsel %vm1763_vm7, %v1759_v14, %v1767_v15 }
 0x180   : > { %v2013_v18 = vpack.c.bf16 %v1771_v17, %v1770_v16 }
 0x182   : > { %1785 = vst [vmem:[%s170_s6 + $0x8] sm:$0xff] %v2013_v18 }
 0x183 PF: > { %s13_s12 = sadd.s32 1, %s2171_s12  }
 0x184   : > { %p10_p4 = scmp.ge.s32.totalorder %s13_s12, 4  }
 0x186   :  { %12 = sbr.rel (!%p10_p4) target bundleno = 1 (0x1), region = 66 }

// kernel: actor_forward.5
= control target key start
LH: loop header
LB: loop body
LE: loop exit
PB: predicated region body
PF: predicated region fallthrough
CT: control target
= control target key end

     0   :  { %v112_v28 = vlaneseq  ;;  %v763_v35 = vmov 1966171168   ;;  %s935_s0 = inlined_call_operand.vmem [shape: bf16[2,512], index: 0, kind: input, shape index: {}]   ;;  %s936_s1 = inlined_call_operand.vmem [shape: bf16[512,40], index: 1, kind: input, shape index: {}]   ;;  %s937_s2 = inlined_call_operand.vmem [shape: f32[1,40], index: 2, kind: input, shape index: {}]   ;;  %s938_s3 = inlined_call_operand.vmem [shape: bf16[40,30], index: 3, kind: input, shape index: {}]   ;;  %s939_s4 = inlined_call_operand.vmem [shape: f32[1,30], index: 4, kind: input, shape index: {}]   ;;  %s940_s5 = inlined_call_operand.vmem [shape: bf16[30,4], index: 5, kind: input, shape index: {}]   ;;  %s941_s6 = inlined_call_operand.vmem [shape: f32[1,4], index: 6, kind: input, shape index: {}]   ;;  %s942_s7 = inlined_call_operand.hbm [shape: f32[2,4], index: 7, kind: output, shape index: {}]  }
   0x1   :  { %v698_v0 = vld [vmem:[%s936_s1 + $0x78] sm:$0xff]   ;;  %v702_v4 = vld [vmem:[%s936_s1 + $0x70] sm:$0xff]   ;;  %v706_v8 = vld [vmem:[%s936_s1 + $0x68] sm:$0xff]   ;;  %v110_v36 = vunpack.c.l.s4 %v763_v35 }
   0x2   :  { %v699_v1 = vld [vmem:[%s936_s1 + $0xf8] sm:$0xff]   ;;  %625 = vmatprep.subr.bf16.mxu0 %v698_v0  ;;  %v703_v5 = vld [vmem:[%s936_s1 + $0xf0] sm:$0xff]   ;;  %v707_v9 = vld [vmem:[%s936_s1 + $0xe8] sm:$0xff]   ;;  %v113_v33 = vshrl.u32 %v112_v28, 7 }
   0x3   :  { %v700_v2 = vld [vmem:[%s936_s1 + $0x38] sm:$0xff]   ;;  %647 = vmatprep.subr.bf16.mxu1 %v699_v1  ;;  %v704_v6 = vld [vmem:[%s936_s1 + $0x30] sm:$0xff]   ;;  %v708_v10 = vld [vmem:[%s936_s1 + $0x28] sm:$0xff]   ;;  %v111_v38 = vunpack.c.0.s8 %v110_v36 }
   0x4   :  { %v701_v3 = vld [vmem:[%s936_s1 + $0xb8] sm:$0xff]   ;;  %626 = vmatpush3.bf16.msra.mxu0 %v700_v2  ;;  %v705_v7 = vld [vmem:[%s936_s1 + $0xb0] sm:$0xff]   ;;  %v709_v11 = vld [vmem:[%s936_s1 + $0xa8] sm:$0xff]  }
   0x5   :  { %648 = vmatpush3.bf16.msra.mxu1 %v701_v3  ;;  %627 = vmatprep.subr.bf16.mxu0 %v702_v4  ;;  %v710_v12 = vld [vmem:[%s936_s1 + $0x60] sm:$0xff]   ;;  %v714_v16 = vld [vmem:[%s936_s1 + $0x58] sm:$0xff]   ;;  %v718_v20 = vld [vmem:[%s936_s1 + $0x50] sm:$0xff]  }
   0x6   :  { %649 = vmatprep.subr.bf16.mxu1 %v703_v5  ;;  %v711_v13 = vld [vmem:[%s936_s1 + $0xe0] sm:$0xff]   ;;  %v715_v17 = vld [vmem:[%s936_s1 + $0xd8] sm:$0xff]   ;;  %v719_v21 = vld [vmem:[%s936_s1 + $0xd0] sm:$0xff]  }
   0x7   :  { %v712_v14 = vld [vmem:[%s936_s1 + $0x20] sm:$0xff]   ;;  %v716_v18 = vld [vmem:[%s936_s1 + $0x18] sm:$0xff]   ;;  %v720_v22 = vld [vmem:[%s936_s1 + $0x10] sm:$0xff]  }
   0x8   :  { %628 = vmatpush3.bf16.msra.mxu0 %v704_v6  ;;  %v713_v15 = vld [vmem:[%s936_s1 + $0xa0] sm:$0xff]   ;;  %v717_v19 = vld [vmem:[%s936_s1 + $0x98] sm:$0xff]   ;;  %v721_v23 = vld [vmem:[%s936_s1 + $0x90] sm:$0xff]  }
   0x9   :  { %650 = vmatpush3.bf16.msra.mxu1 %v705_v7  ;;  %629 = vmatprep.subr.bf16.mxu0 %v706_v8  ;;  %v722_v24 = vld [vmem:[%s936_s1 + $0x48] sm:$0xff]   ;;  %v726_v29 = vld [vmem:[%s936_s1 + $0x40] sm:$0xff]  }
   0xa   :  { %651 = vmatprep.subr.bf16.mxu1 %v707_v9  ;;  %v723_v25 = vld [vmem:[%s936_s1 + $0xc8] sm:$0xff]   ;;  %v727_v30 = vld [vmem:[%s936_s1 + $0xc0] sm:$0xff]  }
   0xb   :  { %v724_v26 = vld [vmem:[%s936_s1 + $0x8] sm:$0xff]   ;;  %v728_v31 = vld [vmem:[%s936_s1] sm:$0xff]  }
   0xc   :  { %630 = vmatpush3.bf16.msra.mxu0 %v708_v10  ;;  %v725_v27 = vld [vmem:[%s936_s1 + $0x88] sm:$0xff]   ;;  %v729_v32 = vld [vmem:[%s936_s1 + $0x80] sm:$0xff]  }
   0xd   :  { %652 = vmatpush3.bf16.msra.mxu1 %v709_v11  ;;  %631 = vmatprep.subr.bf16.mxu0 %v710_v12  ;;  %v582_v34 = vld.sshfl [vmem:[%s935_s0] sm:$0x33 pattern:$0x75316420] }
   0xe   :  { %653 = vmatprep.subr.bf16.mxu1 %v711_v13  ;;  %v108_v37 = vcombine.high %v582_v34, %v582_v34 }
  0x10   :  { %632 = vmatpush3.bf16.msra.mxu0 %v712_v14 }
  0x11   :  { %654 = vmatpush3.bf16.msra.mxu1 %v713_v15  ;;  %633 = vmatprep.subr.bf16.mxu0 %v714_v16 }
  0x12   :  { %655 = vmatprep.subr.bf16.mxu1 %v715_v17 }
  0x14   :  { %634 = vmatpush3.bf16.msra.mxu0 %v716_v18 }
  0x15   :  { %656 = vmatpush3.bf16.msra.mxu1 %v717_v19  ;;  %635 = vmatprep.subr.bf16.mxu0 %v718_v20 }
  0x16   :  { %657 = vmatprep.subr.bf16.mxu1 %v719_v21 }
  0x18   :  { %636 = vmatpush3.bf16.msra.mxu0 %v720_v22 }
  0x19   :  { %658 = vmatpush3.bf16.msra.mxu1 %v721_v23  ;;  %637 = vmatprep.subr.bf16.mxu0 %v722_v24 }
  0x1a   :  { %659 = vmatprep.subr.bf16.mxu1 %v723_v25 }
  0x1c   :  { %638 = vmatpush3.bf16.msra.mxu0 %v724_v26 }
  0x1d   :  { %660 = vmatpush3.bf16.msra.mxu1 %v725_v27  ;;  %639 = vmatprep.subr.bf16.mxu0 %v726_v29 }
  0x1e   :  { %661 = vmatprep.subr.bf16.mxu1 %v727_v30 }
  0x20   :  { %640 = vmatpush3.bf16.msra.mxu0 %v728_v31 }
  0x21   :  { %662 = vmatpush3.bf16.msra.mxu1 %v729_v32 }
  0x22   :  { %12 = vsyncpa [#allocation3], 0  ;;  %v114_v39 = vsub.s32 %v111_v38, %v113_v33  ;;  %v730_v44 = vld [vmem:[%s938_s3 + $0x10] ss:$0 sps:$4 sm:$0xff]   ;;  %vm436_vm0 = vcmask 1043456   ;;  %v764_v45 = vmov 0.0  }
  0x23   :  { %676 = vmatprep.subr.bf16.mxu0 %v764_v45  ;;  %v438_v46 = vsel %vm436_vm0, %v730_v44, 0  ;;  %686 = vmatprep.subr.bf16.mxu1 %v764_v45  ;;  %v731_v47 = vld [vmem:[%s938_s3 + $0x8] sm:$0xff]   ;;  %v732_v48 = vld [vmem:[%s938_s3] sm:$0xff]   ;;  %vm765_vm1 = vmmov 0   ;;  %vm432_vm3 = vcmask 326656   ;;  %vm510_vm4 = vcmask 1046528  }
  0x24   :  { %v122_v40 = vrot.slane %v108_v37, %v114_v39  ;;  %v115_v41 = vrot.slane %v582_v34, %v114_v39  ;;  %v581_v51 = vld [vmem:[%s937_s2] ss:$0 sm:$0xff]  ;;  %v733_v1 = vld [vmem:[%s940_s5 + $0x8] sm:$0x7f]   ;;  %vm506_vm6 = vcmask 244736   ;;  %v555_v22 = vand.u32 127, %v112_v28 }
  0x25   :  { %v512_v2 = vsel %vm510_vm4, %v733_v1, 0  ;;  %v734_v3 = vld [vmem:[%s940_s5] sm:$0xff]   ;;  %vm565_vm8 = vcmask 25600  }
  0x26   :  { %353 = vmatprep.mubr.bf16.mxu0 %v122_v40  ;;  %v124_v42 = vcombine.high %v122_v40, %v122_v40  ;;  %v123_v43 = vcombine.high %v115_v41, %v115_v41  ;;  %v615_v4 = vld [vmem:[%s939_s4] ss:$0 sm:$0xff]  ;;  %s766_s4 = smov [#allocation2]   ;;  %vm556_vm7 = vcmp.lt.s32.totalorder %v555_v22, 2 }
  0x27   :  { %354 = vmatmul.mubr.bf16.vlgmr.msra.gmra.mxu0 %v115_v41  ;;  %v620_v13 = vld [vmem:[%s941_s6] ss:$0 sm:$0xff]  ;;  %s573_s5 = sshll.u32 %s766_s4, 4  ;;  %s574_s5 = int_to_ptr.vmem [resolvable:$true] %s573_s5 }
  0x28   :  { %393 = vmatprep.mubr.bf16.mxu1 %v124_v42  ;;  %677 = vmatpush3.bf16.msra.mxu0 %v438_v46  ;;  %s741_s6 = scalar_lea.vmem %s574_s5, 32  ;;  %p746_p1 = scmp.lt.s32.totalorder %s574_s5, %s574_s5 }
  0x29   :  { %394 = vmatmul.mubr.bf16.vlgmr.msra.gmra.mxu1 %v123_v43  ;;  %678 = vmatprep.subr.bf16.mxu0 %v764_v45  ;;  %p742_p0 = scmp.ne.s32.totalorder %s574_s5, %s741_s6  ;;  %p747_p2 = scmp.lt.s32.totalorder %s741_s6, %s741_s6 }
  0x2a   :  { %682 = vmatprep.mubr.msk.bf16.mxu0 %vm765_vm1, %v764_v45  ;;  %690 = vmatprep.mubr.msk.bf16.mxu1 %vm765_vm1, %v764_v45 }
  0x2b   :  { %687 = vmatpush3.bf16.msra.mxu1 %v512_v2  ;;  %p748_p3 = por %p747_p2, %p746_p1 }
  0x2c   :  { %679 = vmatpush3.bf16.msra.mxu0 %v731_v47  ;;  %688 = vmatprep.subr.bf16.mxu1 %v764_v45 }
  0x2d   :  { %680 = vmatprep.subr.bf16.mxu0 %v764_v45  ;;  %p749_p4 = pnand %p748_p3, %p742_p0 }
  0x2f   :  { %689 = vmatpush3.bf16.msra.mxu1 %v734_v3 }
  0x30   :  { %681 = vmatpush3.bf16.msra.mxu0 %v732_v48 }
  0xe7   :  { %v641_v49 = vpop.f32.mrf.mxu0 }
  0xe9   :  { %v663_v50 = vpop.f32.mrf.mxu1  ;;  %v642_v52 = vpop.f32.mrf.mxu0 }
  0xea   :  { %v643_v53 = vadd.f32 %v642_v52, %v641_v49 }
  0xeb   :  { %v664_v54 = vpop.f32.mrf.mxu1  ;;  %v644_v55 = vpop.f32.mrf.mxu0 }
  0xec   :  { %v356_v56 = vadd.f32 %v643_v53, %v581_v51  ;;  %v665_v57 = vadd.f32 %v664_v54, %v663_v50 }
  0xed   :  { %v666_v58 = vpop.f32.mrf.mxu1  ;;  %v645_v59 = vpop.f32.mrf.mxu0 }
  0xee   :  { %v396_v60 = vadd.f32 %v665_v57, %v356_v56 }
  0xef   :  { %v667_v61 = vpop.f32.mrf.mxu1 }
  0xf0   :  { %vm401_vm2 = vcmp.gt.f32.partialorder %v396_v60, 0.0  ;;  %v402_v62 = vmul.f32 0.01, %v396_v60 }
  0xf2   :  { %v403_v63 = vsel %vm401_vm2, %v396_v60, %v402_v62 }
  0xf3   :  { %v404_v0 = vpack.c.bf16 %v403_v63, %v403_v63 }
  0xf5   :  { %683 = vmatmul.mubr.msk.bf16.vlgmr.msra.gmra.mxu0 %vm432_vm3, %v404_v0 }
 0x1b5   :  { %v474_v5 = vpop.f32.mrf.mxu0 }
 0x1b6   :  { %v475_v6 = vadd.f32 %v615_v4, %v474_v5 }
 0x1b7   :  { %v684_v7 = vpop.f32.mrf.mxu0 }
 0x1b8   :  { %vm480_vm5 = vcmp.gt.f32.partialorder %v475_v6, 0.0  ;;  %v481_v8 = vmul.f32 0.01, %v475_v6 }
 0x1b9   :  { %v477_v9 = vpop.f32.mrf.mxu0 }
 0x1ba   :  { %v482_v10 = vsel %vm480_vm5, %v475_v6, %v481_v8 }
 0x1bb   :  { %v483_v11 = vpack.c.bf16 %v482_v10, %v482_v10  ;;  %v685_v12 = vpop.f32.mrf.mxu0 }
 0x1bd   :  { %691 = vmatmul.mubr.msk.bf16.vlgmr.msra.gmra.mxu1 %vm506_vm6, %v483_v11 }
 0x27d   :  { %v548_v14 = vpop.f32.mrf.mxu1 }
 0x27e   :  { %v549_v15 = vadd.f32 %v620_v13, %v548_v14 }
 0x27f   :  { %v692_v16 = vpop.f32.mrf.mxu1 }
 0x280   :  { %v624_v17 = vmul.f32 -1.442695, %v549_v15 }
 0x281   :  { %v551_v18 = vpop.f32.mrf.mxu1 }
 0x282   :  { %735 = vpow2.f32 %v624_v17 }
 0x283   :  { %v693_v19 = vpop.f32.mrf.mxu1  ;;  %737 = vtanh.f32 %v549_v15 }
 0x28f   :  { %v736_v20 = vpop.eup %735 }
 0x290   :  { %v560_v21 = vadd.f32 1.0, %v736_v20  ;;  %v738_v23 = vpop.eup %737 }
 0x292   :  { %739 = vrcp.f32 %v560_v21 }
 0x29f   :  { %v740_v24 = vpop.eup %739 }
 0x2a0   :  { %v564_v25 = vsel %vm556_vm7, %v740_v24, %v738_v23 }
 0x2a1   :  { %566 = vst.msk [vmem:[#allocation2] sm:$0x3] %vm565_vm8, %v564_v25 }
 0x2a2   :  { %752 = shalt.err (!%p749_p4)
}
 0x2a3   :  { %576 = dma.vmem_to_hbm [thread:$0]  %s574_s5, 32, %s942_s7, [#allocation3]  }
 0x2a4   :  { %761 = dma.done.wait [#allocation3], 32  }
 0x2a5   :  { %762 = vsyncadd [#allocation3], 4294967264 }
 0x2a6   :  { %580 = vsyncpa [#allocation3], 1 }

// kernel: actor_forward.4
= control target key start
LH: loop header
LB: loop body
LE: loop exit
PB: predicated region body
PF: predicated region fallthrough
CT: control target
= control target key end

     0   :  { %s9942_s12 = smov 0   ;;  %s9944_s13 = smov 0   ;;  %s11685_s0 = inlined_call_operand.vmem [shape: bf16[2,4096], index: 0, kind: input, shape index: {}]   ;;  %s11686_s1 = inlined_call_operand.vmem [shape: bf16[4096,512], index: 1, kind: input, shape index: {}]   ;;  %s11687_s2 = inlined_call_operand.vmem [shape: f32[1,512], index: 2, kind: input, shape index: {}]   ;;  %s11688_s3 = inlined_call_operand.vmem [shape: bf16[2,512], index: 3, kind: output, shape index: {}]  }
   0x1   :  { %s9946_s14 = smov 0   ;;  %s9948_s15 = smov 0  }
   0x2   :  { %s9950_s16 = smov 0  }
   0x3 LB: > { %s25_s17 = sadd.s32 1, %s9913_s15  ;;  %p67_p1 = scmp.ne.s32.totalorder %s9905_s13, %s9901_s12  ;;  %s9917_s16 = sphi %s9950_s16, %s13_s16   ;;  %s9913_s15 = sphi %s9948_s15, %s11692_s15   ;;  %s9909_s14 = sphi %s9946_s14, %s11691_s14   ;;  %s9905_s13 = sphi %s9944_s13, %s11690_s13   ;;  %s9901_s12 = sphi %s9942_s12, %s11689_s12  }
   0x4   : > { %p27_p0 = scmp.ge.s32.totalorder %s25_s17, 2  ;;  %p68_p2 = scmp.eq.s32.totalorder %s9917_s16, 0 }
   0x5   : > { %s60_s19 = sadd.s32 1, %s9905_s13  ;;  %p8539_p5 = scmp.ge.s32.totalorder %s9917_s16, 2 }
   0x6   : > { %s11694_s17 = smov (%p27_p0, %s25_s17), 0  ;;  %p69_p3 = por %p68_p2, %p67_p1 }
   0x7   : > { %s56_s18 = ssub.s32 %s9913_s15, %s11694_s17  ;;  %153 = sbr.rel (%p8539_p5) target bundleno = 272 (0x110), region = 20 }
   0x8   : > { %p58_p4 = scmp.eq.s32.totalorder %s56_s18, 0 }
   0xa   : > { %s9977_s20 = scalar_select %p58_p4, %s9905_s13, %s60_s19  }
   0xc   : > { %156 = sbr.rel (!%p69_p3) target bundleno = 272 (0x110), region = 24  ;;  %s158_s21 = sand.u32 (%p69_p3), 1, %s9905_s13  }
   0xd   : > { %s9063_s22 = sshll.u32 (%p69_p3), %s9913_s15, 3  ;;  %s8540_s23 = sshll.u32 (%p69_p3), %s158_s21, 12 }
   0xe   : > { %s9985_s26 = scalar_lea.vmem (%p69_p3), %s11686_s1, %s9063_s22  ;;  %s9990_s27 = scalar_lea.vmem (%p69_p3), [#allocation3], %s8540_s23 }
   0xf   : > { %v1220_v0 = vld [vmem:[%s9985_s26] sm:$0xff] (%p69_p3)  ;;  %v1222_v1 = vld [vmem:[%s9985_s26 + $0x10] sm:$0xff] (%p69_p3) }
  0x10   : > { %v1224_v2 = vld [vmem:[%s9985_s26 + $0x20] sm:$0xff] (%p69_p3)  ;;  %1221 = vst [vmem:[%s9990_s27] sm:$0xff] (%p69_p3), %v1220_v0  ;;  %1223 = vst [vmem:[%s9990_s27 + $0x8] sm:$0xff] (%p69_p3), %v1222_v1  ;;  %v1226_v3 = vld [vmem:[%s9985_s26 + $0x30] sm:$0xff] (%p69_p3) }
  0x11   : > { %1225 = vst [vmem:[%s9990_s27 + $0x10] sm:$0xff] %v1224_v2  ;;  %v1228_v4 = vld [vmem:[%s9985_s26 + $0x40] sm:$0xff]  ;;  %v1230_v5 = vld [vmem:[%s9985_s26 + $0x50] sm:$0xff]  ;;  %1227 = vst [vmem:[%s9990_s27 + $0x18] sm:$0xff] %v1226_v3 }
  0x12   : > { %1229 = vst [vmem:[%s9990_s27 + $0x20] sm:$0xff] %v1228_v4  ;;  %1231 = vst [vmem:[%s9990_s27 + $0x28] sm:$0xff] %v1230_v5  ;;  %v1232_v6 = vld [vmem:[%s9985_s26 + $0x60] sm:$0xff]  ;;  %v1234_v7 = vld [vmem:[%s9985_s26 + $0x70] sm:$0xff] }
  0x13   : > { %v1236_v8 = vld [vmem:[%s9985_s26 + $0x80] sm:$0xff]  ;;  %1233 = vst [vmem:[%s9990_s27 + $0x30] sm:$0xff] %v1232_v6  ;;  %1235 = vst [vmem:[%s9990_s27 + $0x38] sm:$0xff] %v1234_v7  ;;  %v1238_v9 = vld [vmem:[%s9985_s26 + $0x90] sm:$0xff] }
  0x14   : > { %1237 = vst [vmem:[%s9990_s27 + $0x40] sm:$0xff] %v1236_v8  ;;  %v1240_v10 = vld [vmem:[%s9985_s26 + $0xa0] sm:$0xff]  ;;  %v1242_v11 = vld [vmem:[%s9985_s26 + $0xb0] sm:$0xff]  ;;  %1239 = vst [vmem:[%s9990_s27 + $0x48] sm:$0xff] %v1238_v9 }
  0x15   : > { %1241 = vst [vmem:[%s9990_s27 + $0x50] sm:$0xff] %v1240_v10  ;;  %1243 = vst [vmem:[%s9990_s27 + $0x58] sm:$0xff] %v1242_v11  ;;  %v1244_v12 = vld [vmem:[%s9985_s26 + $0xc0] sm:$0xff]  ;;  %v1246_v13 = vld [vmem:[%s9985_s26 + $0xd0] sm:$0xff] }
  0x16   : > { %v1248_v14 = vld [vmem:[%s9985_s26 + $0xe0] sm:$0xff]  ;;  %1245 = vst [vmem:[%s9990_s27 + $0x60] sm:$0xff] %v1244_v12  ;;  %1247 = vst [vmem:[%s9990_s27 + $0x68] sm:$0xff] %v1246_v13  ;;  %v1250_v15 = vld [vmem:[%s9985_s26 + $0xf0] sm:$0xff] }
  0x17   : > { %1249 = vst [vmem:[%s9990_s27 + $0x70] sm:$0xff] %v1248_v14  ;;  %v1252_v16 = vld [vmem:[%s9985_s26 + $0x100] sm:$0xff]  ;;  %v1254_v17 = vld [vmem:[%s9985_s26 + $0x110] sm:$0xff]  ;;  %1251 = vst [vmem:[%s9990_s27 + $0x78] sm:$0xff] %v1250_v15 }
  0x18   : > { %1253 = vst [vmem:[%s9990_s27 + $0x80] sm:$0xff] %v1252_v16  ;;  %1255 = vst [vmem:[%s9990_s27 + $0x88] sm:$0xff] %v1254_v17  ;;  %v1256_v18 = vld [vmem:[%s9985_s26 + $0x120] sm:$0xff]  ;;  %v1258_v19 = vld [vmem:[%s9985_s26 + $0x130] sm:$0xff] }
  0x19   : > { %v1260_v20 = vld [vmem:[%s9985_s26 + $0x140] sm:$0xff]  ;;  %1257 = vst [vmem:[%s9990_s27 + $0x90] sm:$0xff] %v1256_v18  ;;  %1259 = vst [vmem:[%s9990_s27 + $0x98] sm:$0xff] %v1258_v19  ;;  %v1262_v21 = vld [vmem:[%s9985_s26 + $0x150] sm:$0xff] }
  0x1a   : > { %1261 = vst [vmem:[%s9990_s27 + $0xa0] sm:$0xff] %v1260_v20  ;;  %v1264_v22 = vld [vmem:[%s9985_s26 + $0x160] sm:$0xff]  ;;  %v1266_v23 = vld [vmem:[%s9985_s26 + $0x170] sm:$0xff]  ;;  %1263 = vst [vmem:[%s9990_s27 + $0xa8] sm:$0xff] %v1262_v21 }
  0x1b   : > { %1265 = vst [vmem:[%s9990_s27 + $0xb0] sm:$0xff] %v1264_v22  ;;  %1267 = vst [vmem:[%s9990_s27 + $0xb8] sm:$0xff] %v1266_v23  ;;  %v1268_v24 = vld [vmem:[%s9985_s26 + $0x180] sm:$0xff]  ;;  %v1270_v25 = vld [vmem:[%s9985_s26 + $0x190] sm:$0xff] }
  0x1c   : > { %v1272_v26 = vld [vmem:[%s9985_s26 + $0x1a0] sm:$0xff]  ;;  %1269 = vst [vmem:[%s9990_s27 + $0xc0] sm:$0xff] %v1268_v24  ;;  %1271 = vst [vmem:[%s9990_s27 + $0xc8] sm:$0xff] %v1270_v25  ;;  %v1274_v27 = vld [vmem:[%s9985_s26 + $0x1b0] sm:$0xff] }
  0x1d   : > { %1273 = vst [vmem:[%s9990_s27 + $0xd0] sm:$0xff] %v1272_v26  ;;  %v1276_v28 = vld [vmem:[%s9985_s26 + $0x1c0] sm:$0xff]  ;;  %v1278_v29 = vld [vmem:[%s9985_s26 + $0x1d0] sm:$0xff]  ;;  %1275 = vst [vmem:[%s9990_s27 + $0xd8] sm:$0xff] %v1274_v27 }
  0x1e   : > { %1277 = vst [vmem:[%s9990_s27 + $0xe0] sm:$0xff] %v1276_v28  ;;  %1279 = vst [vmem:[%s9990_s27 + $0xe8] sm:$0xff] %v1278_v29  ;;  %v1280_v30 = vld [vmem:[%s9985_s26 + $0x1e0] sm:$0xff]  ;;  %v1282_v31 = vld [vmem:[%s9985_s26 + $0x1f0] sm:$0xff] }
  0x1f   : > { %v1284_v32 = vld [vmem:[%s9985_s26 + $0x200] sm:$0xff]  ;;  %1281 = vst [vmem:[%s9990_s27 + $0xf0] sm:$0xff] %v1280_v30  ;;  %1283 = vst [vmem:[%s9990_s27 + $0xf8] sm:$0xff] %v1282_v31  ;;  %v1286_v33 = vld [vmem:[%s9985_s26 + $0x210] sm:$0xff] }
  0x20   : > { %1285 = vst [vmem:[%s9990_s27 + $0x100] sm:$0xff] %v1284_v32  ;;  %v1288_v34 = vld [vmem:[%s9985_s26 + $0x220] sm:$0xff]  ;;  %v1290_v35 = vld [vmem:[%s9985_s26 + $0x230] sm:$0xff]  ;;  %1287 = vst [vmem:[%s9990_s27 + $0x108] sm:$0xff] %v1286_v33 }
  0x21   : > { %1289 = vst [vmem:[%s9990_s27 + $0x110] sm:$0xff] %v1288_v34  ;;  %1291 = vst [vmem:[%s9990_s27 + $0x118] sm:$0xff] %v1290_v35  ;;  %v1292_v36 = vld [vmem:[%s9985_s26 + $0x240] sm:$0xff]  ;;  %v1294_v37 = vld [vmem:[%s9985_s26 + $0x250] sm:$0xff] }
  0x22   : > { %v1296_v38 = vld [vmem:[%s9985_s26 + $0x260] sm:$0xff]  ;;  %1293 = vst [vmem:[%s9990_s27 + $0x120] sm:$0xff] %v1292_v36  ;;  %1295 = vst [vmem:[%s9990_s27 + $0x128] sm:$0xff] %v1294_v37  ;;  %v1298_v39 = vld [vmem:[%s9985_s26 + $0x270] sm:$0xff] }
  0x23   : > { %1297 = vst [vmem:[%s9990_s27 + $0x130] sm:$0xff] %v1296_v38  ;;  %v1300_v40 = vld [vmem:[%s9985_s26 + $0x280] sm:$0xff]  ;;  %v1302_v41 = vld [vmem:[%s9985_s26 + $0x290] sm:$0xff]  ;;  %1299 = vst [vmem:[%s9990_s27 + $0x138] sm:$0xff] %v1298_v39 }
  0x24   : > { %1301 = vst [vmem:[%s9990_s27 + $0x140] sm:$0xff] %v1300_v40  ;;  %1303 = vst [vmem:[%s9990_s27 + $0x148] sm:$0xff] %v1302_v41  ;;  %v1304_v42 = vld [vmem:[%s9985_s26 + $0x2a0] sm:$0xff]  ;;  %v1306_v43 = vld [vmem:[%s9985_s26 + $0x2b0] sm:$0xff] }
  0x25   : > { %v1308_v44 = vld [vmem:[%s9985_s26 + $0x2c0] sm:$0xff]  ;;  %1305 = vst [vmem:[%s9990_s27 + $0x150] sm:$0xff] %v1304_v42  ;;  %1307 = vst [vmem:[%s9990_s27 + $0x158] sm:$0xff] %v1306_v43  ;;  %v1310_v45 = vld [vmem:[%s9985_s26 + $0x2d0] sm:$0xff] }
  0x26   : > { %1309 = vst [vmem:[%s9990_s27 + $0x160] sm:$0xff] %v1308_v44  ;;  %v1312_v46 = vld [vmem:[%s9985_s26 + $0x2e0] sm:$0xff]  ;;  %v1314_v47 = vld [vmem:[%s9985_s26 + $0x2f0] sm:$0xff]  ;;  %1311 = vst [vmem:[%s9990_s27 + $0x168] sm:$0xff] %v1310_v45 }
  0x27   : > { %1313 = vst [vmem:[%s9990_s27 + $0x170] sm:$0xff] %v1312_v46  ;;  %1315 = vst [vmem:[%s9990_s27 + $0x178] sm:$0xff] %v1314_v47  ;;  %v1316_v48 = vld [vmem:[%s9985_s26 + $0x300] sm:$0xff]  ;;  %v1318_v49 = vld [vmem:[%s9985_s26 + $0x310] sm:$0xff] }
  0x28   : > { %v1320_v50 = vld [vmem:[%s9985_s26 + $0x320] sm:$0xff]  ;;  %1317 = vst [vmem:[%s9990_s27 + $0x180] sm:$0xff] %v1316_v48  ;;  %1319 = vst [vmem:[%s9990_s27 + $0x188] sm:$0xff] %v1318_v49  ;;  %v1322_v51 = vld [vmem:[%s9985_s26 + $0x330] sm:$0xff] }
  0x29   : > { %1321 = vst [vmem:[%s9990_s27 + $0x190] sm:$0xff] %v1320_v50  ;;  %v1324_v52 = vld [vmem:[%s9985_s26 + $0x340] sm:$0xff]  ;;  %v1326_v53 = vld [vmem:[%s9985_s26 + $0x350] sm:$0xff]  ;;  %1323 = vst [vmem:[%s9990_s27 + $0x198] sm:$0xff] %v1322_v51 }
  0x2a   : > { %1325 = vst [vmem:[%s9990_s27 + $0x1a0] sm:$0xff] %v1324_v52  ;;  %1327 = vst [vmem:[%s9990_s27 + $0x1a8] sm:$0xff] %v1326_v53  ;;  %v1328_v54 = vld [vmem:[%s9985_s26 + $0x360] sm:$0xff]  ;;  %v1330_v55 = vld [vmem:[%s9985_s26 + $0x370] sm:$0xff] }
  0x2b   : > { %v1332_v56 = vld [vmem:[%s9985_s26 + $0x380] sm:$0xff]  ;;  %1329 = vst [vmem:[%s9990_s27 + $0x1b0] sm:$0xff] %v1328_v54  ;;  %1331 = vst [vmem:[%s9990_s27 + $0x1b8] sm:$0xff] %v1330_v55  ;;  %v1334_v57 = vld [vmem:[%s9985_s26 + $0x390] sm:$0xff] }
  0x2c   : > { %1333 = vst [vmem:[%s9990_s27 + $0x1c0] sm:$0xff] %v1332_v56  ;;  %v1336_v58 = vld [vmem:[%s9985_s26 + $0x3a0] sm:$0xff]  ;;  %v1338_v59 = vld [vmem:[%s9985_s26 + $0x3b0] sm:$0xff]  ;;  %1335 = vst [vmem:[%s9990_s27 + $0x1c8] sm:$0xff] %v1334_v57 }
  0x2d   : > { %1337 = vst [vmem:[%s9990_s27 + $0x1d0] sm:$0xff] %v1336_v58  ;;  %1339 = vst [vmem:[%s9990_s27 + $0x1d8] sm:$0xff] %v1338_v59  ;;  %v1340_v60 = vld [vmem:[%s9985_s26 + $0x3c0] sm:$0xff]  ;;  %v1342_v61 = vld [vmem:[%s9985_s26 + $0x3d0] sm:$0xff] }
  0x2e   : > { %v1344_v62 = vld [vmem:[%s9985_s26 + $0x3e0] sm:$0xff]  ;;  %1341 = vst [vmem:[%s9990_s27 + $0x1e0] sm:$0xff] %v1340_v60  ;;  %1343 = vst [vmem:[%s9990_s27 + $0x1e8] sm:$0xff] %v1342_v61  ;;  %v1346_v63 = vld [vmem:[%s9985_s26 + $0x3f0] sm:$0xff] }
  0x2f   : > { %1345 = vst [vmem:[%s9990_s27 + $0x1f0] sm:$0xff] %v1344_v62  ;;  %v1348_v0 = vld [vmem:[%s9985_s26 + $0x400] sm:$0xff]  ;;  %v1350_v1 = vld [vmem:[%s9985_s26 + $0x410] sm:$0xff]  ;;  %1347 = vst [vmem:[%s9990_s27 + $0x1f8] sm:$0xff] %v1346_v63 }
  0x30   : > { %1349 = vst [vmem:[%s9990_s27 + $0x200] sm:$0xff] %v1348_v0  ;;  %1351 = vst [vmem:[%s9990_s27 + $0x208] sm:$0xff] %v1350_v1  ;;  %v1352_v2 = vld [vmem:[%s9985_s26 + $0x420] sm:$0xff]  ;;  %v1354_v3 = vld [vmem:[%s9985_s26 + $0x430] sm:$0xff] }
  0x31   : > { %v1356_v4 = vld [vmem:[%s9985_s26 + $0x440] sm:$0xff]  ;;  %1353 = vst [vmem:[%s9990_s27 + $0x210] sm:$0xff] %v1352_v2  ;;  %1355 = vst [vmem:[%s9990_s27 + $0x218] sm:$0xff] %v1354_v3  ;;  %v1358_v5 = vld [vmem:[%s9985_s26 + $0x450] sm:$0xff] }
  0x32   : > { %1357 = vst [vmem:[%s9990_s27 + $0x220] sm:$0xff] %v1356_v4  ;;  %v1360_v6 = vld [vmem:[%s9985_s26 + $0x460] sm:$0xff]  ;;  %v1362_v7 = vld [vmem:[%s9985_s26 + $0x470] sm:$0xff]  ;;  %1359 = vst [vmem:[%s9990_s27 + $0x228] sm:$0xff] %v1358_v5 }
  0x33   : > { %1361 = vst [vmem:[%s9990_s27 + $0x230] sm:$0xff] %v1360_v6  ;;  %1363 = vst [vmem:[%s9990_s27 + $0x238] sm:$0xff] %v1362_v7  ;;  %v1364_v8 = vld [vmem:[%s9985_s26 + $0x480] sm:$0xff]  ;;  %v1366_v9 = vld [vmem:[%s9985_s26 + $0x490] sm:$0xff] }
  0x34   : > { %v1368_v10 = vld [vmem:[%s9985_s26 + $0x4a0] sm:$0xff]  ;;  %1365 = vst [vmem:[%s9990_s27 + $0x240] sm:$0xff] %v1364_v8  ;;  %1367 = vst [vmem:[%s9990_s27 + $0x248] sm:$0xff] %v1366_v9  ;;  %v1370_v11 = vld [vmem:[%s9985_s26 + $0x4b0] sm:$0xff] }
  0x35   : > { %1369 = vst [vmem:[%s9990_s27 + $0x250] sm:$0xff] %v1368_v10  ;;  %v1372_v12 = vld [vmem:[%s9985_s26 + $0x4c0] sm:$0xff]  ;;  %v1374_v13 = vld [vmem:[%s9985_s26 + $0x4d0] sm:$0xff]  ;;  %1371 = vst [vmem:[%s9990_s27 + $0x258] sm:$0xff] %v1370_v11 }
  0x36   : > { %1373 = vst [vmem:[%s9990_s27 + $0x260] sm:$0xff] %v1372_v12  ;;  %1375 = vst [vmem:[%s9990_s27 + $0x268] sm:$0xff] %v1374_v13  ;;  %v1376_v14 = vld [vmem:[%s9985_s26 + $0x4e0] sm:$0xff]  ;;  %v1378_v15 = vld [vmem:[%s9985_s26 + $0x4f0] sm:$0xff] }
  0x37   : > { %v1380_v16 = vld [vmem:[%s9985_s26 + $0x500] sm:$0xff]  ;;  %1377 = vst [vmem:[%s9990_s27 + $0x270] sm:$0xff] %v1376_v14  ;;  %1379 = vst [vmem:[%s9990_s27 + $0x278] sm:$0xff] %v1378_v15  ;;  %v1382_v17 = vld [vmem:[%s9985_s26 + $0x510] sm:$0xff] }
  0x38   : > { %1381 = vst [vmem:[%s9990_s27 + $0x280] sm:$0xff] %v1380_v16  ;;  %v1384_v18 = vld [vmem:[%s9985_s26 + $0x520] sm:$0xff]  ;;  %v1386_v19 = vld [vmem:[%s9985_s26 + $0x530] sm:$0xff]  ;;  %1383 = vst [vmem:[%s9990_s27 + $0x288] sm:$0xff] %v1382_v17 }
  0x39   : > { %1385 = vst [vmem:[%s9990_s27 + $0x290] sm:$0xff] %v1384_v18  ;;  %1387 = vst [vmem:[%s9990_s27 + $0x298] sm:$0xff] %v1386_v19  ;;  %v1388_v20 = vld [vmem:[%s9985_s26 + $0x540] sm:$0xff]  ;;  %v1390_v21 = vld [vmem:[%s9985_s26 + $0x550] sm:$0xff] }
  0x3a   : > { %v1392_v22 = vld [vmem:[%s9985_s26 + $0x560] sm:$0xff]  ;;  %1389 = vst [vmem:[%s9990_s27 + $0x2a0] sm:$0xff] %v1388_v20  ;;  %1391 = vst [vmem:[%s9990_s27 + $0x2a8] sm:$0xff] %v1390_v21  ;;  %v1394_v23 = vld [vmem:[%s9985_s26 + $0x570] sm:$0xff] }
  0x3b   : > { %1393 = vst [vmem:[%s9990_s27 + $0x2b0] sm:$0xff] %v1392_v22  ;;  %v1396_v24 = vld [vmem:[%s9985_s26 + $0x580] sm:$0xff]  ;;  %v1398_v25 = vld [vmem:[%s9985_s26 + $0x590] sm:$0xff]  ;;  %1395 = vst [vmem:[%s9990_s27 + $0x2b8] sm:$0xff] %v1394_v23 }
  0x3c   : > { %1397 = vst [vmem:[%s9990_s27 + $0x2c0] sm:$0xff] %v1396_v24  ;;  %1399 = vst [vmem:[%s9990_s27 + $0x2c8] sm:$0xff] %v1398_v25  ;;  %v1400_v26 = vld [vmem:[%s9985_s26 + $0x5a0] sm:$0xff]  ;;  %v1402_v27 = vld [vmem:[%s9985_s26 + $0x5b0] sm:$0xff] }
  0x3d   : > { %v1404_v28 = vld [vmem:[%s9985_s26 + $0x5c0] sm:$0xff]  ;;  %1401 = vst [vmem:[%s9990_s27 + $0x2d0] sm:$0xff] %v1400_v26  ;;  %1403 = vst [vmem:[%s9990_s27 + $0x2d8] sm:$0xff] %v1402_v27  ;;  %v1406_v29 = vld [vmem:[%s9985_s26 + $0x5d0] sm:$0xff] }
  0x3e   : > { %1405 = vst [vmem:[%s9990_s27 + $0x2e0] sm:$0xff] %v1404_v28  ;;  %v1408_v30 = vld [vmem:[%s9985_s26 + $0x5e0] sm:$0xff]  ;;  %v1410_v31 = vld [vmem:[%s9985_s26 + $0x5f0] sm:$0xff]  ;;  %1407 = vst [vmem:[%s9990_s27 + $0x2e8] sm:$0xff] %v1406_v29 }
  0x3f   : > { %1409 = vst [vmem:[%s9990_s27 + $0x2f0] sm:$0xff] %v1408_v30  ;;  %1411 = vst [vmem:[%s9990_s27 + $0x2f8] sm:$0xff] %v1410_v31  ;;  %v1412_v32 = vld [vmem:[%s9985_s26 + $0x600] sm:$0xff]  ;;  %v1414_v33 = vld [vmem:[%s9985_s26 + $0x610] sm:$0xff] }
  0x40   : > { %v1416_v34 = vld [vmem:[%s9985_s26 + $0x620] sm:$0xff]  ;;  %1413 = vst [vmem:[%s9990_s27 + $0x300] sm:$0xff] %v1412_v32  ;;  %1415 = vst [vmem:[%s9990_s27 + $0x308] sm:$0xff] %v1414_v33  ;;  %v1418_v35 = vld [vmem:[%s9985_s26 + $0x630] sm:$0xff] }
  0x41   : > { %1417 = vst [vmem:[%s9990_s27 + $0x310] sm:$0xff] %v1416_v34  ;;  %v1420_v36 = vld [vmem:[%s9985_s26 + $0x640] sm:$0xff]  ;;  %v1422_v37 = vld [vmem:[%s9985_s26 + $0x650] sm:$0xff]  ;;  %1419 = vst [vmem:[%s9990_s27 + $0x318] sm:$0xff] %v1418_v35 }
  0x42   : > { %1421 = vst [vmem:[%s9990_s27 + $0x320] sm:$0xff] %v1420_v36  ;;  %1423 = vst [vmem:[%s9990_s27 + $0x328] sm:$0xff] %v1422_v37  ;;  %v1424_v38 = vld [vmem:[%s9985_s26 + $0x660] sm:$0xff]  ;;  %v1426_v39 = vld [vmem:[%s9985_s26 + $0x670] sm:$0xff] }
  0x43   : > { %v1428_v40 = vld [vmem:[%s9985_s26 + $0x680] sm:$0xff]  ;;  %1425 = vst [vmem:[%s9990_s27 + $0x330] sm:$0xff] %v1424_v38  ;;  %1427 = vst [vmem:[%s9990_s27 + $0x338] sm:$0xff] %v1426_v39  ;;  %v1430_v41 = vld [vmem:[%s9985_s26 + $0x690] sm:$0xff] }
  0x44   : > { %1429 = vst [vmem:[%s9990_s27 + $0x340] sm:$0xff] %v1428_v40  ;;  %v1432_v42 = vld [vmem:[%s9985_s26 + $0x6a0] sm:$0xff]  ;;  %v1434_v43 = vld [vmem:[%s9985_s26 + $0x6b0] sm:$0xff]  ;;  %1431 = vst [vmem:[%s9990_s27 + $0x348] sm:$0xff] %v1430_v41 }
  0x45   : > { %1433 = vst [vmem:[%s9990_s27 + $0x350] sm:$0xff] %v1432_v42  ;;  %1435 = vst [vmem:[%s9990_s27 + $0x358] sm:$0xff] %v1434_v43  ;;  %v1436_v44 = vld [vmem:[%s9985_s26 + $0x6c0] sm:$0xff]  ;;  %v1438_v45 = vld [vmem:[%s9985_s26 + $0x6d0] sm:$0xff] }
  0x46   : > { %v1440_v46 = vld [vmem:[%s9985_s26 + $0x6e0] sm:$0xff]  ;;  %1437 = vst [vmem:[%s9990_s27 + $0x360] sm:$0xff] %v1436_v44  ;;  %1439 = vst [vmem:[%s9990_s27 + $0x368] sm:$0xff] %v1438_v45  ;;  %v1442_v47 = vld [vmem:[%s9985_s26 + $0x6f0] sm:$0xff] }
  0x47   : > { %1441 = vst [vmem:[%s9990_s27 + $0x370] sm:$0xff] %v1440_v46  ;;  %v1444_v48 = vld [vmem:[%s9985_s26 + $0x700] sm:$0xff]  ;;  %v1446_v49 = vld [vmem:[%s9985_s26 + $0x710] sm:$0xff]  ;;  %1443 = vst [vmem:[%s9990_s27 + $0x378] sm:$0xff] %v1442_v47 }
  0x48   : > { %1445 = vst [vmem:[%s9990_s27 + $0x380] sm:$0xff] %v1444_v48  ;;  %1447 = vst [vmem:[%s9990_s27 + $0x388] sm:$0xff] %v1446_v49  ;;  %v1448_v50 = vld [vmem:[%s9985_s26 + $0x720] sm:$0xff]  ;;  %v1450_v51 = vld [vmem:[%s9985_s26 + $0x730] sm:$0xff] }
  0x49   : > { %v1452_v52 = vld [vmem:[%s9985_s26 + $0x740] sm:$0xff]  ;;  %1449 = vst [vmem:[%s9990_s27 + $0x390] sm:$0xff] %v1448_v50  ;;  %1451 = vst [vmem:[%s9990_s27 + $0x398] sm:$0xff] %v1450_v51  ;;  %v1454_v53 = vld [vmem:[%s9985_s26 + $0x750] sm:$0xff] }
  0x4a   : > { %1453 = vst [vmem:[%s9990_s27 + $0x3a0] sm:$0xff] %v1452_v52  ;;  %v1456_v54 = vld [vmem:[%s9985_s26 + $0x760] sm:$0xff]  ;;  %v1458_v55 = vld [vmem:[%s9985_s26 + $0x770] sm:$0xff]  ;;  %1455 = vst [vmem:[%s9990_s27 + $0x3a8] sm:$0xff] %v1454_v53 }
  0x4b   : > { %1457 = vst [vmem:[%s9990_s27 + $0x3b0] sm:$0xff] %v1456_v54  ;;  %1459 = vst [vmem:[%s9990_s27 + $0x3b8] sm:$0xff] %v1458_v55  ;;  %v1460_v56 = vld [vmem:[%s9985_s26 + $0x780] sm:$0xff]  ;;  %v1462_v57 = vld [vmem:[%s9985_s26 + $0x790] sm:$0xff] }
  0x4c   : > { %v1464_v58 = vld [vmem:[%s9985_s26 + $0x7a0] sm:$0xff]  ;;  %1461 = vst [vmem:[%s9990_s27 + $0x3c0] sm:$0xff] %v1460_v56  ;;  %1463 = vst [vmem:[%s9990_s27 + $0x3c8] sm:$0xff] %v1462_v57  ;;  %v1466_v59 = vld [vmem:[%s9985_s26 + $0x7b0] sm:$0xff] }
  0x4d   : > { %1465 = vst [vmem:[%s9990_s27 + $0x3d0] sm:$0xff] %v1464_v58  ;;  %v1468_v60 = vld [vmem:[%s9985_s26 + $0x7c0] sm:$0xff]  ;;  %v1470_v61 = vld [vmem:[%s9985_s26 + $0x7d0] sm:$0xff]  ;;  %1467 = vst [vmem:[%s9990_s27 + $0x3d8] sm:$0xff] %v1466_v59 }
  0x4e   : > { %1469 = vst [vmem:[%s9990_s27 + $0x3e0] sm:$0xff] %v1468_v60  ;;  %1471 = vst [vmem:[%s9990_s27 + $0x3e8] sm:$0xff] %v1470_v61  ;;  %v1472_v62 = vld [vmem:[%s9985_s26 + $0x7e0] sm:$0xff]  ;;  %v1474_v63 = vld [vmem:[%s9985_s26 + $0x7f0] sm:$0xff] }
  0x4f   : > { %v1476_v0 = vld [vmem:[%s9985_s26 + $0x800] sm:$0xff]  ;;  %1473 = vst [vmem:[%s9990_s27 + $0x3f0] sm:$0xff] %v1472_v62  ;;  %1475 = vst [vmem:[%s9990_s27 + $0x3f8] sm:$0xff] %v1474_v63  ;;  %v1478_v1 = vld [vmem:[%s9985_s26 + $0x810] sm:$0xff] }
  0x50   : > { %1477 = vst [vmem:[%s9990_s27 + $0x400] sm:$0xff] %v1476_v0  ;;  %v1480_v2 = vld [vmem:[%s9985_s26 + $0x820] sm:$0xff]  ;;  %v1482_v3 = vld [vmem:[%s9985_s26 + $0x830] sm:$0xff]  ;;  %1479 = vst [vmem:[%s9990_s27 + $0x408] sm:$0xff] %v1478_v1 }
  0x51   : > { %1481 = vst [vmem:[%s9990_s27 + $0x410] sm:$0xff] %v1480_v2  ;;  %1483 = vst [vmem:[%s9990_s27 + $0x418] sm:$0xff] %v1482_v3  ;;  %v1484_v4 = vld [vmem:[%s9985_s26 + $0x840] sm:$0xff]  ;;  %v1486_v5 = vld [vmem:[%s9985_s26 + $0x850] sm:$0xff] }
  0x52   : > { %v1488_v6 = vld [vmem:[%s9985_s26 + $0x860] sm:$0xff]  ;;  %1485 = vst [vmem:[%s9990_s27 + $0x420] sm:$0xff] %v1484_v4  ;;  %1487 = vst [vmem:[%s9990_s27 + $0x428] sm:$0xff] %v1486_v5  ;;  %v1490_v7 = vld [vmem:[%s9985_s26 + $0x870] sm:$0xff] }
  0x53   : > { %1489 = vst [vmem:[%s9990_s27 + $0x430] sm:$0xff] %v1488_v6  ;;  %v1492_v8 = vld [vmem:[%s9985_s26 + $0x880] sm:$0xff]  ;;  %v1494_v9 = vld [vmem:[%s9985_s26 + $0x890] sm:$0xff]  ;;  %1491 = vst [vmem:[%s9990_s27 + $0x438] sm:$0xff] %v1490_v7 }
  0x54   : > { %1493 = vst [vmem:[%s9990_s27 + $0x440] sm:$0xff] %v1492_v8  ;;  %1495 = vst [vmem:[%s9990_s27 + $0x448] sm:$0xff] %v1494_v9  ;;  %v1496_v10 = vld [vmem:[%s9985_s26 + $0x8a0] sm:$0xff]  ;;  %v1498_v11 = vld [vmem:[%s9985_s26 + $0x8b0] sm:$0xff] }
  0x55   : > { %v1500_v12 = vld [vmem:[%s9985_s26 + $0x8c0] sm:$0xff]  ;;  %1497 = vst [vmem:[%s9990_s27 + $0x450] sm:$0xff] %v1496_v10  ;;  %1499 = vst [vmem:[%s9990_s27 + $0x458] sm:$0xff] %v1498_v11  ;;  %v1502_v13 = vld [vmem:[%s9985_s26 + $0x8d0] sm:$0xff] }
  0x56   : > { %1501 = vst [vmem:[%s9990_s27 + $0x460] sm:$0xff] %v1500_v12  ;;  %v1504_v14 = vld [vmem:[%s9985_s26 + $0x8e0] sm:$0xff]  ;;  %v1506_v15 = vld [vmem:[%s9985_s26 + $0x8f0] sm:$0xff]  ;;  %1503 = vst [vmem:[%s9990_s27 + $0x468] sm:$0xff] %v1502_v13 }
  0x57   : > { %1505 = vst [vmem:[%s9990_s27 + $0x470] sm:$0xff] %v1504_v14  ;;  %1507 = vst [vmem:[%s9990_s27 + $0x478] sm:$0xff] %v1506_v15  ;;  %v1508_v16 = vld [vmem:[%s9985_s26 + $0x900] sm:$0xff]  ;;  %v1510_v17 = vld [vmem:[%s9985_s26 + $0x910] sm:$0xff] }
  0x58   : > { %v1512_v18 = vld [vmem:[%s9985_s26 + $0x920] sm:$0xff]  ;;  %1509 = vst [vmem:[%s9990_s27 + $0x480] sm:$0xff] %v1508_v16  ;;  %1511 = vst [vmem:[%s9990_s27 + $0x488] sm:$0xff] %v1510_v17  ;;  %v1514_v19 = vld [vmem:[%s9985_s26 + $0x930] sm:$0xff] }
  0x59   : > { %1513 = vst [vmem:[%s9990_s27 + $0x490] sm:$0xff] %v1512_v18  ;;  %v1516_v20 = vld [vmem:[%s9985_s26 + $0x940] sm:$0xff]  ;;  %v1518_v21 = vld [vmem:[%s9985_s26 + $0x950] sm:$0xff]  ;;  %1515 = vst [vmem:[%s9990_s27 + $0x498] sm:$0xff] %v1514_v19 }
  0x5a   : > { %1517 = vst [vmem:[%s9990_s27 + $0x4a0] sm:$0xff] %v1516_v20  ;;  %1519 = vst [vmem:[%s9990_s27 + $0x4a8] sm:$0xff] %v1518_v21  ;;  %v1520_v22 = vld [vmem:[%s9985_s26 + $0x960] sm:$0xff]  ;;  %v1522_v23 = vld [vmem:[%s9985_s26 + $0x970] sm:$0xff] }
  0x5b   : > { %v1524_v24 = vld [vmem:[%s9985_s26 + $0x980] sm:$0xff]  ;;  %1521 = vst [vmem:[%s9990_s27 + $0x4b0] sm:$0xff] %v1520_v22  ;;  %1523 = vst [vmem:[%s9990_s27 + $0x4b8] sm:$0xff] %v1522_v23  ;;  %v1526_v25 = vld [vmem:[%s9985_s26 + $0x990] sm:$0xff] }
  0x5c   : > { %1525 = vst [vmem:[%s9990_s27 + $0x4c0] sm:$0xff] %v1524_v24  ;;  %v1528_v26 = vld [vmem:[%s9985_s26 + $0x9a0] sm:$0xff]  ;;  %v1530_v27 = vld [vmem:[%s9985_s26 + $0x9b0] sm:$0xff]  ;;  %1527 = vst [vmem:[%s9990_s27 + $0x4c8] sm:$0xff] %v1526_v25 }
  0x5d   : > { %1529 = vst [vmem:[%s9990_s27 + $0x4d0] sm:$0xff] %v1528_v26  ;;  %1531 = vst [vmem:[%s9990_s27 + $0x4d8] sm:$0xff] %v1530_v27  ;;  %v1532_v28 = vld [vmem:[%s9985_s26 + $0x9c0] sm:$0xff]  ;;  %v1534_v29 = vld [vmem:[%s9985_s26 + $0x9d0] sm:$0xff] }
  0x5e   : > { %v1536_v30 = vld [vmem:[%s9985_s26 + $0x9e0] sm:$0xff]  ;;  %1533 = vst [vmem:[%s9990_s27 + $0x4e0] sm:$0xff] %v1532_v28  ;;  %1535 = vst [vmem:[%s9990_s27 + $0x4e8] sm:$0xff] %v1534_v29  ;;  %v1538_v31 = vld [vmem:[%s9985_s26 + $0x9f0] sm:$0xff] }
  0x5f   : > { %1537 = vst [vmem:[%s9990_s27 + $0x4f0] sm:$0xff] %v1536_v30  ;;  %v1540_v32 = vld [vmem:[%s9985_s26 + $0xa00] sm:$0xff]  ;;  %v1542_v33 = vld [vmem:[%s9985_s26 + $0xa10] sm:$0xff]  ;;  %1539 = vst [vmem:[%s9990_s27 + $0x4f8] sm:$0xff] %v1538_v31 }
  0x60   : > { %1541 = vst [vmem:[%s9990_s27 + $0x500] sm:$0xff] %v1540_v32  ;;  %1543 = vst [vmem:[%s9990_s27 + $0x508] sm:$0xff] %v1542_v33  ;;  %v1544_v34 = vld [vmem:[%s9985_s26 + $0xa20] sm:$0xff]  ;;  %v1546_v35 = vld [vmem:[%s9985_s26 + $0xa30] sm:$0xff] }
  0x61   : > { %v1548_v36 = vld [vmem:[%s9985_s26 + $0xa40] sm:$0xff]  ;;  %1545 = vst [vmem:[%s9990_s27 + $0x510] sm:$0xff] %v1544_v34  ;;  %1547 = vst [vmem:[%s9990_s27 + $0x518] sm:$0xff] %v1546_v35  ;;  %v1550_v37 = vld [vmem:[%s9985_s26 + $0xa50] sm:$0xff] }
  0x62   : > { %1549 = vst [vmem:[%s9990_s27 + $0x520] sm:$0xff] %v1548_v36  ;;  %v1552_v38 = vld [vmem:[%s9985_s26 + $0xa60] sm:$0xff]  ;;  %v1554_v39 = vld [vmem:[%s9985_s26 + $0xa70] sm:$0xff]  ;;  %1551 = vst [vmem:[%s9990_s27 + $0x528] sm:$0xff] %v1550_v37 }
  0x63   : > { %1553 = vst [vmem:[%s9990_s27 + $0x530] sm:$0xff] %v1552_v38  ;;  %1555 = vst [vmem:[%s9990_s27 + $0x538] sm:$0xff] %v1554_v39  ;;  %v1556_v40 = vld [vmem:[%s9985_s26 + $0xa80] sm:$0xff]  ;;  %v1558_v41 = vld [vmem:[%s9985_s26 + $0xa90] sm:$0xff] }
  0x64   : > { %v1560_v42 = vld [vmem:[%s9985_s26 + $0xaa0] sm:$0xff]  ;;  %1557 = vst [vmem:[%s9990_s27 + $0x540] sm:$0xff] %v1556_v40  ;;  %1559 = vst [vmem:[%s9990_s27 + $0x548] sm:$0xff] %v1558_v41  ;;  %v1562_v43 = vld [vmem:[%s9985_s26 + $0xab0] sm:$0xff] }
  0x65   : > { %1561 = vst [vmem:[%s9990_s27 + $0x550] sm:$0xff] %v1560_v42  ;;  %v1564_v44 = vld [vmem:[%s9985_s26 + $0xac0] sm:$0xff]  ;;  %v1566_v45 = vld [vmem:[%s9985_s26 + $0xad0] sm:$0xff]  ;;  %1563 = vst [vmem:[%s9990_s27 + $0x558] sm:$0xff] %v1562_v43 }
  0x66   : > { %1565 = vst [vmem:[%s9990_s27 + $0x560] sm:$0xff] %v1564_v44  ;;  %1567 = vst [vmem:[%s9990_s27 + $0x568] sm:$0xff] %v1566_v45  ;;  %v1568_v46 = vld [vmem:[%s9985_s26 + $0xae0] sm:$0xff]  ;;  %v1570_v47 = vld [vmem:[%s9985_s26 + $0xaf0] sm:$0xff] }
  0x67   : > { %v1572_v48 = vld [vmem:[%s9985_s26 + $0xb00] sm:$0xff]  ;;  %1569 = vst [vmem:[%s9990_s27 + $0x570] sm:$0xff] %v1568_v46  ;;  %1571 = vst [vmem:[%s9990_s27 + $0x578] sm:$0xff] %v1570_v47  ;;  %v1574_v49 = vld [vmem:[%s9985_s26 + $0xb10] sm:$0xff] }
  0x68   : > { %1573 = vst [vmem:[%s9990_s27 + $0x580] sm:$0xff] %v1572_v48  ;;  %v1576_v50 = vld [vmem:[%s9985_s26 + $0xb20] sm:$0xff]  ;;  %v1578_v51 = vld [vmem:[%s9985_s26 + $0xb30] sm:$0xff]  ;;  %1575 = vst [vmem:[%s9990_s27 + $0x588] sm:$0xff] %v1574_v49 }
  0x69   : > { %1577 = vst [vmem:[%s9990_s27 + $0x590] sm:$0xff] %v1576_v50  ;;  %1579 = vst [vmem:[%s9990_s27 + $0x598] sm:$0xff] %v1578_v51  ;;  %v1580_v52 = vld [vmem:[%s9985_s26 + $0xb40] sm:$0xff]  ;;  %v1582_v53 = vld [vmem:[%s9985_s26 + $0xb50] sm:$0xff] }
  0x6a   : > { %v1584_v54 = vld [vmem:[%s9985_s26 + $0xb60] sm:$0xff]  ;;  %1581 = vst [vmem:[%s9990_s27 + $0x5a0] sm:$0xff] %v1580_v52  ;;  %1583 = vst [vmem:[%s9990_s27 + $0x5a8] sm:$0xff] %v1582_v53  ;;  %v1586_v55 = vld [vmem:[%s9985_s26 + $0xb70] sm:$0xff] }
  0x6b   : > { %1585 = vst [vmem:[%s9990_s27 + $0x5b0] sm:$0xff] %v1584_v54  ;;  %v1588_v56 = vld [vmem:[%s9985_s26 + $0xb80] sm:$0xff]  ;;  %v1590_v57 = vld [vmem:[%s9985_s26 + $0xb90] sm:$0xff]  ;;  %1587 = vst [vmem:[%s9990_s27 + $0x5b8] sm:$0xff] %v1586_v55 }
  0x6c   : > { %1589 = vst [vmem:[%s9990_s27 + $0x5c0] sm:$0xff] %v1588_v56  ;;  %1591 = vst [vmem:[%s9990_s27 + $0x5c8] sm:$0xff] %v1590_v57  ;;  %v1592_v58 = vld [vmem:[%s9985_s26 + $0xba0] sm:$0xff]  ;;  %v1594_v59 = vld [vmem:[%s9985_s26 + $0xbb0] sm:$0xff] }
  0x6d   : > { %v1596_v60 = vld [vmem:[%s9985_s26 + $0xbc0] sm:$0xff]  ;;  %1593 = vst [vmem:[%s9990_s27 + $0x5d0] sm:$0xff] %v1592_v58  ;;  %1595 = vst [vmem:[%s9990_s27 + $0x5d8] sm:$0xff] %v1594_v59  ;;  %v1598_v61 = vld [vmem:[%s9985_s26 + $0xbd0] sm:$0xff] }
  0x6e   : > { %1597 = vst [vmem:[%s9990_s27 + $0x5e0] sm:$0xff] %v1596_v60  ;;  %v1600_v62 = vld [vmem:[%s9985_s26 + $0xbe0] sm:$0xff]  ;;  %v1602_v63 = vld [vmem:[%s9985_s26 + $0xbf0] sm:$0xff]  ;;  %1599 = vst [vmem:[%s9990_s27 + $0x5e8] sm:$0xff] %v1598_v61 }
  0x6f   : > { %1601 = vst [vmem:[%s9990_s27 + $0x5f0] sm:$0xff] %v1600_v62  ;;  %1603 = vst [vmem:[%s9990_s27 + $0x5f8] sm:$0xff] %v1602_v63  ;;  %v1604_v0 = vld [vmem:[%s9985_s26 + $0xc00] sm:$0xff]  ;;  %v1606_v1 = vld [vmem:[%s9985_s26 + $0xc10] sm:$0xff] }
  0x70   : > { %v1608_v2 = vld [vmem:[%s9985_s26 + $0xc20] sm:$0xff]  ;;  %1605 = vst [vmem:[%s9990_s27 + $0x600] sm:$0xff] %v1604_v0  ;;  %1607 = vst [vmem:[%s9990_s27 + $0x608] sm:$0xff] %v1606_v1  ;;  %v1610_v3 = vld [vmem:[%s9985_s26 + $0xc30] sm:$0xff] }
  0x71   : > { %1609 = vst [vmem:[%s9990_s27 + $0x610] sm:$0xff] %v1608_v2  ;;  %v1612_v4 = vld [vmem:[%s9985_s26 + $0xc40] sm:$0xff]  ;;  %v1614_v5 = vld [vmem:[%s9985_s26 + $0xc50] sm:$0xff]  ;;  %1611 = vst [vmem:[%s9990_s27 + $0x618] sm:$0xff] %v1610_v3 }
  0x72   : > { %1613 = vst [vmem:[%s9990_s27 + $0x620] sm:$0xff] %v1612_v4  ;;  %1615 = vst [vmem:[%s9990_s27 + $0x628] sm:$0xff] %v1614_v5  ;;  %v1616_v6 = vld [vmem:[%s9985_s26 + $0xc60] sm:$0xff]  ;;  %v1618_v7 = vld [vmem:[%s9985_s26 + $0xc70] sm:$0xff] }
  0x73   : > { %v1620_v8 = vld [vmem:[%s9985_s26 + $0xc80] sm:$0xff]  ;;  %1617 = vst [vmem:[%s9990_s27 + $0x630] sm:$0xff] %v1616_v6  ;;  %1619 = vst [vmem:[%s9990_s27 + $0x638] sm:$0xff] %v1618_v7  ;;  %v1622_v9 = vld [vmem:[%s9985_s26 + $0xc90] sm:$0xff] }
  0x74   : > { %1621 = vst [vmem:[%s9990_s27 + $0x640] sm:$0xff] %v1620_v8  ;;  %v1624_v10 = vld [vmem:[%s9985_s26 + $0xca0] sm:$0xff]  ;;  %v1626_v11 = vld [vmem:[%s9985_s26 + $0xcb0] sm:$0xff]  ;;  %1623 = vst [vmem:[%s9990_s27 + $0x648] sm:$0xff] %v1622_v9 }
  0x75   : > { %1625 = vst [vmem:[%s9990_s27 + $0x650] sm:$0xff] %v1624_v10  ;;  %1627 = vst [vmem:[%s9990_s27 + $0x658] sm:$0xff] %v1626_v11  ;;  %v1628_v12 = vld [vmem:[%s9985_s26 + $0xcc0] sm:$0xff]  ;;  %v1630_v13 = vld [vmem:[%s9985_s26 + $0xcd0] sm:$0xff] }
  0x76   : > { %v1632_v14 = vld [vmem:[%s9985_s26 + $0xce0] sm:$0xff]  ;;  %1629 = vst [vmem:[%s9990_s27 + $0x660] sm:$0xff] %v1628_v12  ;;  %1631 = vst [vmem:[%s9990_s27 + $0x668] sm:$0xff] %v1630_v13  ;;  %v1634_v15 = vld [vmem:[%s9985_s26 + $0xcf0] sm:$0xff] }
  0x77   : > { %1633 = vst [vmem:[%s9990_s27 + $0x670] sm:$0xff] %v1632_v14  ;;  %v1636_v16 = vld [vmem:[%s9985_s26 + $0xd00] sm:$0xff]  ;;  %v1638_v17 = vld [vmem:[%s9985_s26 + $0xd10] sm:$0xff]  ;;  %1635 = vst [vmem:[%s9990_s27 + $0x678] sm:$0xff] %v1634_v15 }
  0x78   : > { %1637 = vst [vmem:[%s9990_s27 + $0x680] sm:$0xff] %v1636_v16  ;;  %1639 = vst [vmem:[%s9990_s27 + $0x688] sm:$0xff] %v1638_v17  ;;  %v1640_v18 = vld [vmem:[%s9985_s26 + $0xd20] sm:$0xff]  ;;  %v1642_v19 = vld [vmem:[%s9985_s26 + $0xd30] sm:$0xff] }
  0x79   : > { %v1644_v20 = vld [vmem:[%s9985_s26 + $0xd40] sm:$0xff]  ;;  %1641 = vst [vmem:[%s9990_s27 + $0x690] sm:$0xff] %v1640_v18  ;;  %1643 = vst [vmem:[%s9990_s27 + $0x698] sm:$0xff] %v1642_v19  ;;  %v1646_v21 = vld [vmem:[%s9985_s26 + $0xd50] sm:$0xff] }
  0x7a   : > { %1645 = vst [vmem:[%s9990_s27 + $0x6a0] sm:$0xff] %v1644_v20  ;;  %v1648_v22 = vld [vmem:[%s9985_s26 + $0xd60] sm:$0xff]  ;;  %v1650_v23 = vld [vmem:[%s9985_s26 + $0xd70] sm:$0xff]  ;;  %1647 = vst [vmem:[%s9990_s27 + $0x6a8] sm:$0xff] %v1646_v21 }
  0x7b   : > { %1649 = vst [vmem:[%s9990_s27 + $0x6b0] sm:$0xff] %v1648_v22  ;;  %1651 = vst [vmem:[%s9990_s27 + $0x6b8] sm:$0xff] %v1650_v23  ;;  %v1652_v24 = vld [vmem:[%s9985_s26 + $0xd80] sm:$0xff]  ;;  %v1654_v25 = vld [vmem:[%s9985_s26 + $0xd90] sm:$0xff] }
  0x7c   : > { %v1656_v26 = vld [vmem:[%s9985_s26 + $0xda0] sm:$0xff]  ;;  %1653 = vst [vmem:[%s9990_s27 + $0x6c0] sm:$0xff] %v1652_v24  ;;  %1655 = vst [vmem:[%s9990_s27 + $0x6c8] sm:$0xff] %v1654_v25  ;;  %v1658_v27 = vld [vmem:[%s9985_s26 + $0xdb0] sm:$0xff] }
  0x7d   : > { %1657 = vst [vmem:[%s9990_s27 + $0x6d0] sm:$0xff] %v1656_v26  ;;  %v1660_v28 = vld [vmem:[%s9985_s26 + $0xdc0] sm:$0xff]  ;;  %v1662_v29 = vld [vmem:[%s9985_s26 + $0xdd0] sm:$0xff]  ;;  %1659 = vst [vmem:[%s9990_s27 + $0x6d8] sm:$0xff] %v1658_v27 }
  0x7e   : > { %1661 = vst [vmem:[%s9990_s27 + $0x6e0] sm:$0xff] %v1660_v28  ;;  %1663 = vst [vmem:[%s9990_s27 + $0x6e8] sm:$0xff] %v1662_v29  ;;  %v1664_v30 = vld [vmem:[%s9985_s26 + $0xde0] sm:$0xff]  ;;  %v1666_v31 = vld [vmem:[%s9985_s26 + $0xdf0] sm:$0xff] }
  0x7f   : > { %v1668_v32 = vld [vmem:[%s9985_s26 + $0xe00] sm:$0xff]  ;;  %1665 = vst [vmem:[%s9990_s27 + $0x6f0] sm:$0xff] %v1664_v30  ;;  %1667 = vst [vmem:[%s9990_s27 + $0x6f8] sm:$0xff] %v1666_v31  ;;  %v1670_v33 = vld [vmem:[%s9985_s26 + $0xe10] sm:$0xff] }
  0x80   : > { %1669 = vst [vmem:[%s9990_s27 + $0x700] sm:$0xff] %v1668_v32  ;;  %v1672_v34 = vld [vmem:[%s9985_s26 + $0xe20] sm:$0xff]  ;;  %v1674_v35 = vld [vmem:[%s9985_s26 + $0xe30] sm:$0xff]  ;;  %1671 = vst [vmem:[%s9990_s27 + $0x708] sm:$0xff] %v1670_v33 }
  0x81   : > { %1673 = vst [vmem:[%s9990_s27 + $0x710] sm:$0xff] %v1672_v34  ;;  %1675 = vst [vmem:[%s9990_s27 + $0x718] sm:$0xff] %v1674_v35  ;;  %v1676_v36 = vld [vmem:[%s9985_s26 + $0xe40] sm:$0xff]  ;;  %v1678_v37 = vld [vmem:[%s9985_s26 + $0xe50] sm:$0xff] }
  0x82   : > { %v1680_v38 = vld [vmem:[%s9985_s26 + $0xe60] sm:$0xff]  ;;  %1677 = vst [vmem:[%s9990_s27 + $0x720] sm:$0xff] %v1676_v36  ;;  %1679 = vst [vmem:[%s9990_s27 + $0x728] sm:$0xff] %v1678_v37  ;;  %v1682_v39 = vld [vmem:[%s9985_s26 + $0xe70] sm:$0xff] }
  0x83   : > { %1681 = vst [vmem:[%s9990_s27 + $0x730] sm:$0xff] %v1680_v38  ;;  %v1684_v40 = vld [vmem:[%s9985_s26 + $0xe80] sm:$0xff]  ;;  %v1686_v41 = vld [vmem:[%s9985_s26 + $0xe90] sm:$0xff]  ;;  %1683 = vst [vmem:[%s9990_s27 + $0x738] sm:$0xff] %v1682_v39 }
  0x84   : > { %1685 = vst [vmem:[%s9990_s27 + $0x740] sm:$0xff] %v1684_v40  ;;  %1687 = vst [vmem:[%s9990_s27 + $0x748] sm:$0xff] %v1686_v41  ;;  %v1688_v42 = vld [vmem:[%s9985_s26 + $0xea0] sm:$0xff]  ;;  %v1690_v43 = vld [vmem:[%s9985_s26 + $0xeb0] sm:$0xff] }
  0x85   : > { %v1692_v44 = vld [vmem:[%s9985_s26 + $0xec0] sm:$0xff]  ;;  %1689 = vst [vmem:[%s9990_s27 + $0x750] sm:$0xff] %v1688_v42  ;;  %1691 = vst [vmem:[%s9990_s27 + $0x758] sm:$0xff] %v1690_v43  ;;  %v1694_v45 = vld [vmem:[%s9985_s26 + $0xed0] sm:$0xff] }
  0x86   : > { %1693 = vst [vmem:[%s9990_s27 + $0x760] sm:$0xff] %v1692_v44  ;;  %v1696_v46 = vld [vmem:[%s9985_s26 + $0xee0] sm:$0xff]  ;;  %v1698_v47 = vld [vmem:[%s9985_s26 + $0xef0] sm:$0xff]  ;;  %1695 = vst [vmem:[%s9990_s27 + $0x768] sm:$0xff] %v1694_v45 }
  0x87   : > { %1697 = vst [vmem:[%s9990_s27 + $0x770] sm:$0xff] %v1696_v46  ;;  %1699 = vst [vmem:[%s9990_s27 + $0x778] sm:$0xff] %v1698_v47  ;;  %v1700_v48 = vld [vmem:[%s9985_s26 + $0xf00] sm:$0xff]  ;;  %v1702_v49 = vld [vmem:[%s9985_s26 + $0xf10] sm:$0xff] }
  0x88   : > { %v1704_v50 = vld [vmem:[%s9985_s26 + $0xf20] sm:$0xff]  ;;  %1701 = vst [vmem:[%s9990_s27 + $0x780] sm:$0xff] %v1700_v48  ;;  %1703 = vst [vmem:[%s9990_s27 + $0x788] sm:$0xff] %v1702_v49  ;;  %v1706_v51 = vld [vmem:[%s9985_s26 + $0xf30] sm:$0xff] }
  0x89   : > { %1705 = vst [vmem:[%s9990_s27 + $0x790] sm:$0xff] %v1704_v50  ;;  %v1708_v52 = vld [vmem:[%s9985_s26 + $0xf40] sm:$0xff]  ;;  %v1710_v53 = vld [vmem:[%s9985_s26 + $0xf50] sm:$0xff]  ;;  %1707 = vst [vmem:[%s9990_s27 + $0x798] sm:$0xff] %v1706_v51 }
  0x8a   : > { %1709 = vst [vmem:[%s9990_s27 + $0x7a0] sm:$0xff] %v1708_v52  ;;  %1711 = vst [vmem:[%s9990_s27 + $0x7a8] sm:$0xff] %v1710_v53  ;;  %v1712_v54 = vld [vmem:[%s9985_s26 + $0xf60] sm:$0xff]  ;;  %v1714_v55 = vld [vmem:[%s9985_s26 + $0xf70] sm:$0xff] }
  0x8b   : > { %v1716_v56 = vld [vmem:[%s9985_s26 + $0xf80] sm:$0xff]  ;;  %1713 = vst [vmem:[%s9990_s27 + $0x7b0] sm:$0xff] %v1712_v54  ;;  %1715 = vst [vmem:[%s9990_s27 + $0x7b8] sm:$0xff] %v1714_v55  ;;  %v1718_v57 = vld [vmem:[%s9985_s26 + $0xf90] sm:$0xff] }
  0x8c   : > { %1717 = vst [vmem:[%s9990_s27 + $0x7c0] sm:$0xff] %v1716_v56  ;;  %v1720_v58 = vld [vmem:[%s9985_s26 + $0xfa0] sm:$0xff]  ;;  %v1722_v59 = vld [vmem:[%s9985_s26 + $0xfb0] sm:$0xff]  ;;  %1719 = vst [vmem:[%s9990_s27 + $0x7c8] sm:$0xff] %v1718_v57 }
  0x8d   : > { %1721 = vst [vmem:[%s9990_s27 + $0x7d0] sm:$0xff] %v1720_v58  ;;  %1723 = vst [vmem:[%s9990_s27 + $0x7d8] sm:$0xff] %v1722_v59  ;;  %v1724_v60 = vld [vmem:[%s9985_s26 + $0xfc0] sm:$0xff]  ;;  %v1726_v61 = vld [vmem:[%s9985_s26 + $0xfd0] sm:$0xff] }
  0x8e   : > { %v1728_v62 = vld [vmem:[%s9985_s26 + $0xfe0] sm:$0xff]  ;;  %1725 = vst [vmem:[%s9990_s27 + $0x7e0] sm:$0xff] %v1724_v60  ;;  %1727 = vst [vmem:[%s9990_s27 + $0x7e8] sm:$0xff] %v1726_v61  ;;  %v1730_v63 = vld [vmem:[%s9985_s26 + $0xff0] sm:$0xff] }
  0x8f   : > { %1729 = vst [vmem:[%s9990_s27 + $0x7f0] sm:$0xff] %v1728_v62  ;;  %v1732_v0 = vld [vmem:[%s9985_s26 + $0x1000] sm:$0xff]  ;;  %v1734_v1 = vld [vmem:[%s9985_s26 + $0x1010] sm:$0xff]  ;;  %1731 = vst [vmem:[%s9990_s27 + $0x7f8] sm:$0xff] %v1730_v63 }
  0x90   : > { %1733 = vst [vmem:[%s9990_s27 + $0x800] sm:$0xff] %v1732_v0  ;;  %1735 = vst [vmem:[%s9990_s27 + $0x808] sm:$0xff] %v1734_v1  ;;  %v1736_v2 = vld [vmem:[%s9985_s26 + $0x1020] sm:$0xff]  ;;  %v1738_v3 = vld [vmem:[%s9985_s26 + $0x1030] sm:$0xff] }
  0x91   : > { %v1740_v4 = vld [vmem:[%s9985_s26 + $0x1040] sm:$0xff]  ;;  %1737 = vst [vmem:[%s9990_s27 + $0x810] sm:$0xff] %v1736_v2  ;;  %1739 = vst [vmem:[%s9990_s27 + $0x818] sm:$0xff] %v1738_v3  ;;  %v1742_v5 = vld [vmem:[%s9985_s26 + $0x1050] sm:$0xff] }
  0x92   : > { %1741 = vst [vmem:[%s9990_s27 + $0x820] sm:$0xff] %v1740_v4  ;;  %v1744_v6 = vld [vmem:[%s9985_s26 + $0x1060] sm:$0xff]  ;;  %v1746_v7 = vld [vmem:[%s9985_s26 + $0x1070] sm:$0xff]  ;;  %1743 = vst [vmem:[%s9990_s27 + $0x828] sm:$0xff] %v1742_v5 }
  0x93   : > { %1745 = vst [vmem:[%s9990_s27 + $0x830] sm:$0xff] %v1744_v6  ;;  %1747 = vst [vmem:[%s9990_s27 + $0x838] sm:$0xff] %v1746_v7  ;;  %v1748_v8 = vld [vmem:[%s9985_s26 + $0x1080] sm:$0xff]  ;;  %v1750_v9 = vld [vmem:[%s9985_s26 + $0x1090] sm:$0xff] }
  0x94   : > { %v1752_v10 = vld [vmem:[%s9985_s26 + $0x10a0] sm:$0xff]  ;;  %1749 = vst [vmem:[%s9990_s27 + $0x840] sm:$0xff] %v1748_v8  ;;  %1751 = vst [vmem:[%s9990_s27 + $0x848] sm:$0xff] %v1750_v9  ;;  %v1754_v11 = vld [vmem:[%s9985_s26 + $0x10b0] sm:$0xff] }
  0x95   : > { %1753 = vst [vmem:[%s9990_s27 + $0x850] sm:$0xff] %v1752_v10  ;;  %v1756_v12 = vld [vmem:[%s9985_s26 + $0x10c0] sm:$0xff]  ;;  %v1758_v13 = vld [vmem:[%s9985_s26 + $0x10d0] sm:$0xff]  ;;  %1755 = vst [vmem:[%s9990_s27 + $0x858] sm:$0xff] %v1754_v11 }
  0x96   : > { %1757 = vst [vmem:[%s9990_s27 + $0x860] sm:$0xff] %v1756_v12  ;;  %1759 = vst [vmem:[%s9990_s27 + $0x868] sm:$0xff] %v1758_v13  ;;  %v1760_v14 = vld [vmem:[%s9985_s26 + $0x10e0] sm:$0xff]  ;;  %v1762_v15 = vld [vmem:[%s9985_s26 + $0x10f0] sm:$0xff] }
  0x97   : > { %v1764_v16 = vld [vmem:[%s9985_s26 + $0x1100] sm:$0xff]  ;;  %1761 = vst [vmem:[%s9990_s27 + $0x870] sm:$0xff] %v1760_v14  ;;  %1763 = vst [vmem:[%s9990_s27 + $0x878] sm:$0xff] %v1762_v15  ;;  %v1766_v17 = vld [vmem:[%s9985_s26 + $0x1110] sm:$0xff] }
  0x98   : > { %1765 = vst [vmem:[%s9990_s27 + $0x880] sm:$0xff] %v1764_v16  ;;  %v1768_v18 = vld [vmem:[%s9985_s26 + $0x1120] sm:$0xff]  ;;  %v1770_v19 = vld [vmem:[%s9985_s26 + $0x1130] sm:$0xff]  ;;  %1767 = vst [vmem:[%s9990_s27 + $0x888] sm:$0xff] %v1766_v17 }
  0x99   : > { %1769 = vst [vmem:[%s9990_s27 + $0x890] sm:$0xff] %v1768_v18  ;;  %1771 = vst [vmem:[%s9990_s27 + $0x898] sm:$0xff] %v1770_v19  ;;  %v1772_v20 = vld [vmem:[%s9985_s26 + $0x1140] sm:$0xff]  ;;  %v1774_v21 = vld [vmem:[%s9985_s26 + $0x1150] sm:$0xff] }
  0x9a   : > { %v1776_v22 = vld [vmem:[%s9985_s26 + $0x1160] sm:$0xff]  ;;  %1773 = vst [vmem:[%s9990_s27 + $0x8a0] sm:$0xff] %v1772_v20  ;;  %1775 = vst [vmem:[%s9990_s27 + $0x8a8] sm:$0xff] %v1774_v21  ;;  %v1778_v23 = vld [vmem:[%s9985_s26 + $0x1170] sm:$0xff] }
  0x9b   : > { %1777 = vst [vmem:[%s9990_s27 + $0x8b0] sm:$0xff] %v1776_v22  ;;  %v1780_v24 = vld [vmem:[%s9985_s26 + $0x1180] sm:$0xff]  ;;  %v1782_v25 = vld [vmem:[%s9985_s26 + $0x1190] sm:$0xff]  ;;  %1779 = vst [vmem:[%s9990_s27 + $0x8b8] sm:$0xff] %v1778_v23 }
  0x9c   : > { %1781 = vst [vmem:[%s9990_s27 + $0x8c0] sm:$0xff] %v1780_v24  ;;  %1783 = vst [vmem:[%s9990_s27 + $0x8c8] sm:$0xff] %v1782_v25  ;;  %v1784_v26 = vld [vmem:[%s9985_s26 + $0x11a0] sm:$0xff]  ;;  %v1786_v27 = vld [vmem:[%s9985_s26 + $0x11b0] sm:$0xff] }
  0x9d   : > { %v1788_v28 = vld [vmem:[%s9985_s26 + $0x11c0] sm:$0xff]  ;;  %1785 = vst [vmem:[%s9990_s27 + $0x8d0] sm:$0xff] %v1784_v26  ;;  %1787 = vst [vmem:[%s9990_s27 + $0x8d8] sm:$0xff] %v1786_v27  ;;  %v1790_v29 = vld [vmem:[%s9985_s26 + $0x11d0] sm:$0xff] }
  0x9e   : > { %1789 = vst [vmem:[%s9990_s27 + $0x8e0] sm:$0xff] %v1788_v28  ;;  %v1792_v30 = vld [vmem:[%s9985_s26 + $0x11e0] sm:$0xff]  ;;  %v1794_v31 = vld [vmem:[%s9985_s26 + $0x11f0] sm:$0xff]  ;;  %1791 = vst [vmem:[%s9990_s27 + $0x8e8] sm:$0xff] %v1790_v29 }
  0x9f   : > { %1793 = vst [vmem:[%s9990_s27 + $0x8f0] sm:$0xff] %v1792_v30  ;;  %1795 = vst [vmem:[%s9990_s27 + $0x8f8] sm:$0xff] %v1794_v31  ;;  %v1796_v32 = vld [vmem:[%s9985_s26 + $0x1200] sm:$0xff]  ;;  %v1798_v33 = vld [vmem:[%s9985_s26 + $0x1210] sm:$0xff] }
  0xa0   : > { %v1800_v34 = vld [vmem:[%s9985_s26 + $0x1220] sm:$0xff]  ;;  %1797 = vst [vmem:[%s9990_s27 + $0x900] sm:$0xff] %v1796_v32  ;;  %1799 = vst [vmem:[%s9990_s27 + $0x908] sm:$0xff] %v1798_v33  ;;  %v1802_v35 = vld [vmem:[%s9985_s26 + $0x1230] sm:$0xff] }
  0xa1   : > { %1801 = vst [vmem:[%s9990_s27 + $0x910] sm:$0xff] %v1800_v34  ;;  %v1804_v36 = vld [vmem:[%s9985_s26 + $0x1240] sm:$0xff]  ;;  %v1806_v37 = vld [vmem:[%s9985_s26 + $0x1250] sm:$0xff]  ;;  %1803 = vst [vmem:[%s9990_s27 + $0x918] sm:$0xff] %v1802_v35 }
  0xa2   : > { %1805 = vst [vmem:[%s9990_s27 + $0x920] sm:$0xff] %v1804_v36  ;;  %1807 = vst [vmem:[%s9990_s27 + $0x928] sm:$0xff] %v1806_v37  ;;  %v1808_v38 = vld [vmem:[%s9985_s26 + $0x1260] sm:$0xff]  ;;  %v1810_v39 = vld [vmem:[%s9985_s26 + $0x1270] sm:$0xff] }
  0xa3   : > { %v1812_v40 = vld [vmem:[%s9985_s26 + $0x1280] sm:$0xff]  ;;  %1809 = vst [vmem:[%s9990_s27 + $0x930] sm:$0xff] %v1808_v38  ;;  %1811 = vst [vmem:[%s9990_s27 + $0x938] sm:$0xff] %v1810_v39  ;;  %v1814_v41 = vld [vmem:[%s9985_s26 + $0x1290] sm:$0xff] }
  0xa4   : > { %1813 = vst [vmem:[%s9990_s27 + $0x940] sm:$0xff] %v1812_v40  ;;  %v1816_v42 = vld [vmem:[%s9985_s26 + $0x12a0] sm:$0xff]  ;;  %v1818_v43 = vld [vmem:[%s9985_s26 + $0x12b0] sm:$0xff]  ;;  %1815 = vst [vmem:[%s9990_s27 + $0x948] sm:$0xff] %v1814_v41 }
  0xa5   : > { %1817 = vst [vmem:[%s9990_s27 + $0x950] sm:$0xff] %v1816_v42  ;;  %1819 = vst [vmem:[%s9990_s27 + $0x958] sm:$0xff] %v1818_v43  ;;  %v1820_v44 = vld [vmem:[%s9985_s26 + $0x12c0] sm:$0xff]  ;;  %v1822_v45 = vld [vmem:[%s9985_s26 + $0x12d0] sm:$0xff] }
  0xa6   : > { %v1824_v46 = vld [vmem:[%s9985_s26 + $0x12e0] sm:$0xff]  ;;  %1821 = vst [vmem:[%s9990_s27 + $0x960] sm:$0xff] %v1820_v44  ;;  %1823 = vst [vmem:[%s9990_s27 + $0x968] sm:$0xff] %v1822_v45  ;;  %v1826_v47 = vld [vmem:[%s9985_s26 + $0x12f0] sm:$0xff] }
  0xa7   : > { %1825 = vst [vmem:[%s9990_s27 + $0x970] sm:$0xff] %v1824_v46  ;;  %v1828_v48 = vld [vmem:[%s9985_s26 + $0x1300] sm:$0xff]  ;;  %v1830_v49 = vld [vmem:[%s9985_s26 + $0x1310] sm:$0xff]  ;;  %1827 = vst [vmem:[%s9990_s27 + $0x978] sm:$0xff] %v1826_v47 }
  0xa8   : > { %1829 = vst [vmem:[%s9990_s27 + $0x980] sm:$0xff] %v1828_v48  ;;  %1831 = vst [vmem:[%s9990_s27 + $0x988] sm:$0xff] %v1830_v49  ;;  %v1832_v50 = vld [vmem:[%s9985_s26 + $0x1320] sm:$0xff]  ;;  %v1834_v51 = vld [vmem:[%s9985_s26 + $0x1330] sm:$0xff] }
  0xa9   : > { %v1836_v52 = vld [vmem:[%s9985_s26 + $0x1340] sm:$0xff]  ;;  %1833 = vst [vmem:[%s9990_s27 + $0x990] sm:$0xff] %v1832_v50  ;;  %1835 = vst [vmem:[%s9990_s27 + $0x998] sm:$0xff] %v1834_v51  ;;  %v1838_v53 = vld [vmem:[%s9985_s26 + $0x1350] sm:$0xff] }
  0xaa   : > { %1837 = vst [vmem:[%s9990_s27 + $0x9a0] sm:$0xff] %v1836_v52  ;;  %v1840_v54 = vld [vmem:[%s9985_s26 + $0x1360] sm:$0xff]  ;;  %v1842_v55 = vld [vmem:[%s9985_s26 + $0x1370] sm:$0xff]  ;;  %1839 = vst [vmem:[%s9990_s27 + $0x9a8] sm:$0xff] %v1838_v53 }
  0xab   : > { %1841 = vst [vmem:[%s9990_s27 + $0x9b0] sm:$0xff] %v1840_v54  ;;  %1843 = vst [vmem:[%s9990_s27 + $0x9b8] sm:$0xff] %v1842_v55  ;;  %v1844_v56 = vld [vmem:[%s9985_s26 + $0x1380] sm:$0xff]  ;;  %v1846_v57 = vld [vmem:[%s9985_s26 + $0x1390] sm:$0xff] }
  0xac   : > { %v1848_v58 = vld [vmem:[%s9985_s26 + $0x13a0] sm:$0xff]  ;;  %1845 = vst [vmem:[%s9990_s27 + $0x9c0] sm:$0xff] %v1844_v56  ;;  %1847 = vst [vmem:[%s9990_s27 + $0x9c8] sm:$0xff] %v1846_v57  ;;  %v1850_v59 = vld [vmem:[%s9985_s26 + $0x13b0] sm:$0xff] }
  0xad   : > { %1849 = vst [vmem:[%s9990_s27 + $0x9d0] sm:$0xff] %v1848_v58  ;;  %v1852_v60 = vld [vmem:[%s9985_s26 + $0x13c0] sm:$0xff]  ;;  %v1854_v61 = vld [vmem:[%s9985_s26 + $0x13d0] sm:$0xff]  ;;  %1851 = vst [vmem:[%s9990_s27 + $0x9d8] sm:$0xff] %v1850_v59 }
  0xae   : > { %1853 = vst [vmem:[%s9990_s27 + $0x9e0] sm:$0xff] %v1852_v60  ;;  %1855 = vst [vmem:[%s9990_s27 + $0x9e8] sm:$0xff] %v1854_v61  ;;  %v1856_v62 = vld [vmem:[%s9985_s26 + $0x13e0] sm:$0xff]  ;;  %v1858_v63 = vld [vmem:[%s9985_s26 + $0x13f0] sm:$0xff] }
  0xaf   : > { %v1860_v0 = vld [vmem:[%s9985_s26 + $0x1400] sm:$0xff]  ;;  %1857 = vst [vmem:[%s9990_s27 + $0x9f0] sm:$0xff] %v1856_v62  ;;  %1859 = vst [vmem:[%s9990_s27 + $0x9f8] sm:$0xff] %v1858_v63  ;;  %v1862_v1 = vld [vmem:[%s9985_s26 + $0x1410] sm:$0xff] }
  0xb0   : > { %1861 = vst [vmem:[%s9990_s27 + $0xa00] sm:$0xff] %v1860_v0  ;;  %v1864_v2 = vld [vmem:[%s9985_s26 + $0x1420] sm:$0xff]  ;;  %v1866_v3 = vld [vmem:[%s9985_s26 + $0x1430] sm:$0xff]  ;;  %1863 = vst [vmem:[%s9990_s27 + $0xa08] sm:$0xff] %v1862_v1 }
  0xb1   : > { %1865 = vst [vmem:[%s9990_s27 + $0xa10] sm:$0xff] %v1864_v2  ;;  %1867 = vst [vmem:[%s9990_s27 + $0xa18] sm:$0xff] %v1866_v3  ;;  %v1868_v4 = vld [vmem:[%s9985_s26 + $0x1440] sm:$0xff]  ;;  %v1870_v5 = vld [vmem:[%s9985_s26 + $0x1450] sm:$0xff] }
  0xb2   : > { %v1872_v6 = vld [vmem:[%s9985_s26 + $0x1460] sm:$0xff]  ;;  %1869 = vst [vmem:[%s9990_s27 + $0xa20] sm:$0xff] %v1868_v4  ;;  %1871 = vst [vmem:[%s9990_s27 + $0xa28] sm:$0xff] %v1870_v5  ;;  %v1874_v7 = vld [vmem:[%s9985_s26 + $0x1470] sm:$0xff] }
  0xb3   : > { %1873 = vst [vmem:[%s9990_s27 + $0xa30] sm:$0xff] %v1872_v6  ;;  %v1876_v8 = vld [vmem:[%s9985_s26 + $0x1480] sm:$0xff]  ;;  %v1878_v9 = vld [vmem:[%s9985_s26 + $0x1490] sm:$0xff]  ;;  %1875 = vst [vmem:[%s9990_s27 + $0xa38] sm:$0xff] %v1874_v7 }
  0xb4   : > { %1877 = vst [vmem:[%s9990_s27 + $0xa40] sm:$0xff] %v1876_v8  ;;  %1879 = vst [vmem:[%s9990_s27 + $0xa48] sm:$0xff] %v1878_v9  ;;  %v1880_v10 = vld [vmem:[%s9985_s26 + $0x14a0] sm:$0xff]  ;;  %v1882_v11 = vld [vmem:[%s9985_s26 + $0x14b0] sm:$0xff] }
  0xb5   : > { %v1884_v12 = vld [vmem:[%s9985_s26 + $0x14c0] sm:$0xff]  ;;  %1881 = vst [vmem:[%s9990_s27 + $0xa50] sm:$0xff] %v1880_v10  ;;  %1883 = vst [vmem:[%s9990_s27 + $0xa58] sm:$0xff] %v1882_v11  ;;  %v1886_v13 = vld [vmem:[%s9985_s26 + $0x14d0] sm:$0xff] }
  0xb6   : > { %1885 = vst [vmem:[%s9990_s27 + $0xa60] sm:$0xff] %v1884_v12  ;;  %v1888_v14 = vld [vmem:[%s9985_s26 + $0x14e0] sm:$0xff]  ;;  %v1890_v15 = vld [vmem:[%s9985_s26 + $0x14f0] sm:$0xff]  ;;  %1887 = vst [vmem:[%s9990_s27 + $0xa68] sm:$0xff] %v1886_v13 }
  0xb7   : > { %1889 = vst [vmem:[%s9990_s27 + $0xa70] sm:$0xff] %v1888_v14  ;;  %1891 = vst [vmem:[%s9990_s27 + $0xa78] sm:$0xff] %v1890_v15  ;;  %v1892_v16 = vld [vmem:[%s9985_s26 + $0x1500] sm:$0xff]  ;;  %v1894_v17 = vld [vmem:[%s9985_s26 + $0x1510] sm:$0xff] }
  0xb8   : > { %v1896_v18 = vld [vmem:[%s9985_s26 + $0x1520] sm:$0xff]  ;;  %1893 = vst [vmem:[%s9990_s27 + $0xa80] sm:$0xff] %v1892_v16  ;;  %1895 = vst [vmem:[%s9990_s27 + $0xa88] sm:$0xff] %v1894_v17  ;;  %v1898_v19 = vld [vmem:[%s9985_s26 + $0x1530] sm:$0xff] }
  0xb9   : > { %1897 = vst [vmem:[%s9990_s27 + $0xa90] sm:$0xff] %v1896_v18  ;;  %v1900_v20 = vld [vmem:[%s9985_s26 + $0x1540] sm:$0xff]  ;;  %v1902_v21 = vld [vmem:[%s9985_s26 + $0x1550] sm:$0xff]  ;;  %1899 = vst [vmem:[%s9990_s27 + $0xa98] sm:$0xff] %v1898_v19 }
  0xba   : > { %1901 = vst [vmem:[%s9990_s27 + $0xaa0] sm:$0xff] %v1900_v20  ;;  %1903 = vst [vmem:[%s9990_s27 + $0xaa8] sm:$0xff] %v1902_v21  ;;  %v1904_v22 = vld [vmem:[%s9985_s26 + $0x1560] sm:$0xff]  ;;  %v1906_v23 = vld [vmem:[%s9985_s26 + $0x1570] sm:$0xff] }
  0xbb   : > { %v1908_v24 = vld [vmem:[%s9985_s26 + $0x1580] sm:$0xff]  ;;  %1905 = vst [vmem:[%s9990_s27 + $0xab0] sm:$0xff] %v1904_v22  ;;  %1907 = vst [vmem:[%s9990_s27 + $0xab8] sm:$0xff] %v1906_v23  ;;  %v1910_v25 = vld [vmem:[%s9985_s26 + $0x1590] sm:$0xff] }
  0xbc   : > { %1909 = vst [vmem:[%s9990_s27 + $0xac0] sm:$0xff] %v1908_v24  ;;  %v1912_v26 = vld [vmem:[%s9985_s26 + $0x15a0] sm:$0xff]  ;;  %v1914_v27 = vld [vmem:[%s9985_s26 + $0x15b0] sm:$0xff]  ;;  %1911 = vst [vmem:[%s9990_s27 + $0xac8] sm:$0xff] %v1910_v25 }
  0xbd   : > { %1913 = vst [vmem:[%s9990_s27 + $0xad0] sm:$0xff] %v1912_v26  ;;  %1915 = vst [vmem:[%s9990_s27 + $0xad8] sm:$0xff] %v1914_v27  ;;  %v1916_v28 = vld [vmem:[%s9985_s26 + $0x15c0] sm:$0xff]  ;;  %v1918_v29 = vld [vmem:[%s9985_s26 + $0x15d0] sm:$0xff] }
  0xbe   : > { %v1920_v30 = vld [vmem:[%s9985_s26 + $0x15e0] sm:$0xff]  ;;  %1917 = vst [vmem:[%s9990_s27 + $0xae0] sm:$0xff] %v1916_v28  ;;  %1919 = vst [vmem:[%s9990_s27 + $0xae8] sm:$0xff] %v1918_v29  ;;  %v1922_v31 = vld [vmem:[%s9985_s26 + $0x15f0] sm:$0xff] }
  0xbf   : > { %1921 = vst [vmem:[%s9990_s27 + $0xaf0] sm:$0xff] %v1920_v30  ;;  %v1924_v32 = vld [vmem:[%s9985_s26 + $0x1600] sm:$0xff]  ;;  %v1926_v33 = vld [vmem:[%s9985_s26 + $0x1610] sm:$0xff]  ;;  %1923 = vst [vmem:[%s9990_s27 + $0xaf8] sm:$0xff] %v1922_v31 }
  0xc0   : > { %1925 = vst [vmem:[%s9990_s27 + $0xb00] sm:$0xff] %v1924_v32  ;;  %1927 = vst [vmem:[%s9990_s27 + $0xb08] sm:$0xff] %v1926_v33  ;;  %v1928_v34 = vld [vmem:[%s9985_s26 + $0x1620] sm:$0xff]  ;;  %v1930_v35 = vld [vmem:[%s9985_s26 + $0x1630] sm:$0xff] }
  0xc1   : > { %v1932_v36 = vld [vmem:[%s9985_s26 + $0x1640] sm:$0xff]  ;;  %1929 = vst [vmem:[%s9990_s27 + $0xb10] sm:$0xff] %v1928_v34  ;;  %1931 = vst [vmem:[%s9990_s27 + $0xb18] sm:$0xff] %v1930_v35  ;;  %v1934_v37 = vld [vmem:[%s9985_s26 + $0x1650] sm:$0xff] }
  0xc2   : > { %1933 = vst [vmem:[%s9990_s27 + $0xb20] sm:$0xff] %v1932_v36  ;;  %v1936_v38 = vld [vmem:[%s9985_s26 + $0x1660] sm:$0xff]  ;;  %v1938_v39 = vld [vmem:[%s9985_s26 + $0x1670] sm:$0xff]  ;;  %1935 = vst [vmem:[%s9990_s27 + $0xb28] sm:$0xff] %v1934_v37 }
  0xc3   : > { %1937 = vst [vmem:[%s9990_s27 + $0xb30] sm:$0xff] %v1936_v38  ;;  %1939 = vst [vmem:[%s9990_s27 + $0xb38] sm:$0xff] %v1938_v39  ;;  %v1940_v40 = vld [vmem:[%s9985_s26 + $0x1680] sm:$0xff]  ;;  %v1942_v41 = vld [vmem:[%s9985_s26 + $0x1690] sm:$0xff] }
  0xc4   : > { %v1944_v42 = vld [vmem:[%s9985_s26 + $0x16a0] sm:$0xff]  ;;  %1941 = vst [vmem:[%s9990_s27 + $0xb40] sm:$0xff] %v1940_v40  ;;  %1943 = vst [vmem:[%s9990_s27 + $0xb48] sm:$0xff] %v1942_v41  ;;  %v1946_v43 = vld [vmem:[%s9985_s26 + $0x16b0] sm:$0xff] }
  0xc5   : > { %1945 = vst [vmem:[%s9990_s27 + $0xb50] sm:$0xff] %v1944_v42  ;;  %v1948_v44 = vld [vmem:[%s9985_s26 + $0x16c0] sm:$0xff]  ;;  %v1950_v45 = vld [vmem:[%s9985_s26 + $0x16d0] sm:$0xff]  ;;  %1947 = vst [vmem:[%s9990_s27 + $0xb58] sm:$0xff] %v1946_v43 }
  0xc6   : > { %1949 = vst [vmem:[%s9990_s27 + $0xb60] sm:$0xff] %v1948_v44  ;;  %1951 = vst [vmem:[%s9990_s27 + $0xb68] sm:$0xff] %v1950_v45  ;;  %v1952_v46 = vld [vmem:[%s9985_s26 + $0x16e0] sm:$0xff]  ;;  %v1954_v47 = vld [vmem:[%s9985_s26 + $0x16f0] sm:$0xff] }
  0xc7   : > { %v1956_v48 = vld [vmem:[%s9985_s26 + $0x1700] sm:$0xff]  ;;  %1953 = vst [vmem:[%s9990_s27 + $0xb70] sm:$0xff] %v1952_v46  ;;  %1955 = vst [vmem:[%s9990_s27 + $0xb78] sm:$0xff] %v1954_v47  ;;  %v1958_v49 = vld [vmem:[%s9985_s26 + $0x1710] sm:$0xff] }
  0xc8   : > { %1957 = vst [vmem:[%s9990_s27 + $0xb80] sm:$0xff] %v1956_v48  ;;  %v1960_v50 = vld [vmem:[%s9985_s26 + $0x1720] sm:$0xff]  ;;  %v1962_v51 = vld [vmem:[%s9985_s26 + $0x1730] sm:$0xff]  ;;  %1959 = vst [vmem:[%s9990_s27 + $0xb88] sm:$0xff] %v1958_v49 }
  0xc9   : > { %1961 = vst [vmem:[%s9990_s27 + $0xb90] sm:$0xff] %v1960_v50  ;;  %1963 = vst [vmem:[%s9990_s27 + $0xb98] sm:$0xff] %v1962_v51  ;;  %v1964_v52 = vld [vmem:[%s9985_s26 + $0x1740] sm:$0xff]  ;;  %v1966_v53 = vld [vmem:[%s9985_s26 + $0x1750] sm:$0xff] }
  0xca   : > { %v1968_v54 = vld [vmem:[%s9985_s26 + $0x1760] sm:$0xff]  ;;  %1965 = vst [vmem:[%s9990_s27 + $0xba0] sm:$0xff] %v1964_v52  ;;  %1967 = vst [vmem:[%s9990_s27 + $0xba8] sm:$0xff] %v1966_v53  ;;  %v1970_v55 = vld [vmem:[%s9985_s26 + $0x1770] sm:$0xff] }
  0xcb   : > { %1969 = vst [vmem:[%s9990_s27 + $0xbb0] sm:$0xff] %v1968_v54  ;;  %v1972_v56 = vld [vmem:[%s9985_s26 + $0x1780] sm:$0xff]  ;;  %v1974_v57 = vld [vmem:[%s9985_s26 + $0x1790] sm:$0xff]  ;;  %1971 = vst [vmem:[%s9990_s27 + $0xbb8] sm:$0xff] %v1970_v55 }
  0xcc   : > { %1973 = vst [vmem:[%s9990_s27 + $0xbc0] sm:$0xff] %v1972_v56  ;;  %1975 = vst [vmem:[%s9990_s27 + $0xbc8] sm:$0xff] %v1974_v57  ;;  %v1976_v58 = vld [vmem:[%s9985_s26 + $0x17a0] sm:$0xff]  ;;  %v1978_v59 = vld [vmem:[%s9985_s26 + $0x17b0] sm:$0xff] }
  0xcd   : > { %v1980_v60 = vld [vmem:[%s9985_s26 + $0x17c0] sm:$0xff]  ;;  %1977 = vst [vmem:[%s9990_s27 + $0xbd0] sm:$0xff] %v1976_v58  ;;  %1979 = vst [vmem:[%s9990_s27 + $0xbd8] sm:$0xff] %v1978_v59  ;;  %v1982_v61 = vld [vmem:[%s9985_s26 + $0x17d0] sm:$0xff] }
  0xce   : > { %1981 = vst [vmem:[%s9990_s27 + $0xbe0] sm:$0xff] %v1980_v60  ;;  %v1984_v62 = vld [vmem:[%s9985_s26 + $0x17e0] sm:$0xff]  ;;  %v1986_v63 = vld [vmem:[%s9985_s26 + $0x17f0] sm:$0xff]  ;;  %1983 = vst [vmem:[%s9990_s27 + $0xbe8] sm:$0xff] %v1982_v61 }
  0xcf   : > { %1985 = vst [vmem:[%s9990_s27 + $0xbf0] sm:$0xff] %v1984_v62  ;;  %1987 = vst [vmem:[%s9990_s27 + $0xbf8] sm:$0xff] %v1986_v63  ;;  %v1988_v0 = vld [vmem:[%s9985_s26 + $0x1800] sm:$0xff]  ;;  %v1990_v1 = vld [vmem:[%s9985_s26 + $0x1810] sm:$0xff] }
  0xd0   : > { %v1992_v2 = vld [vmem:[%s9985_s26 + $0x1820] sm:$0xff]  ;;  %1989 = vst [vmem:[%s9990_s27 + $0xc00] sm:$0xff] %v1988_v0  ;;  %1991 = vst [vmem:[%s9990_s27 + $0xc08] sm:$0xff] %v1990_v1  ;;  %v1994_v3 = vld [vmem:[%s9985_s26 + $0x1830] sm:$0xff] }
  0xd1   : > { %1993 = vst [vmem:[%s9990_s27 + $0xc10] sm:$0xff] %v1992_v2  ;;  %v1996_v4 = vld [vmem:[%s9985_s26 + $0x1840] sm:$0xff]  ;;  %v1998_v5 = vld [vmem:[%s9985_s26 + $0x1850] sm:$0xff]  ;;  %1995 = vst [vmem:[%s9990_s27 + $0xc18] sm:$0xff] %v1994_v3 }
  0xd2   : > { %1997 = vst [vmem:[%s9990_s27 + $0xc20] sm:$0xff] %v1996_v4  ;;  %1999 = vst [vmem:[%s9990_s27 + $0xc28] sm:$0xff] %v1998_v5  ;;  %v2000_v6 = vld [vmem:[%s9985_s26 + $0x1860] sm:$0xff]  ;;  %v2002_v7 = vld [vmem:[%s9985_s26 + $0x1870] sm:$0xff] }
  0xd3   : > { %v2004_v8 = vld [vmem:[%s9985_s26 + $0x1880] sm:$0xff]  ;;  %2001 = vst [vmem:[%s9990_s27 + $0xc30] sm:$0xff] %v2000_v6  ;;  %2003 = vst [vmem:[%s9990_s27 + $0xc38] sm:$0xff] %v2002_v7  ;;  %v2006_v9 = vld [vmem:[%s9985_s26 + $0x1890] sm:$0xff] }
  0xd4   : > { %2005 = vst [vmem:[%s9990_s27 + $0xc40] sm:$0xff] %v2004_v8  ;;  %v2008_v10 = vld [vmem:[%s9985_s26 + $0x18a0] sm:$0xff]  ;;  %v2010_v11 = vld [vmem:[%s9985_s26 + $0x18b0] sm:$0xff]  ;;  %2007 = vst [vmem:[%s9990_s27 + $0xc48] sm:$0xff] %v2006_v9 }
  0xd5   : > { %2009 = vst [vmem:[%s9990_s27 + $0xc50] sm:$0xff] %v2008_v10  ;;  %2011 = vst [vmem:[%s9990_s27 + $0xc58] sm:$0xff] %v2010_v11  ;;  %v2012_v12 = vld [vmem:[%s9985_s26 + $0x18c0] sm:$0xff]  ;;  %v2014_v13 = vld [vmem:[%s9985_s26 + $0x18d0] sm:$0xff] }
  0xd6   : > { %v2016_v14 = vld [vmem:[%s9985_s26 + $0x18e0] sm:$0xff]  ;;  %2013 = vst [vmem:[%s9990_s27 + $0xc60] sm:$0xff] %v2012_v12  ;;  %2015 = vst [vmem:[%s9990_s27 + $0xc68] sm:$0xff] %v2014_v13  ;;  %v2018_v15 = vld [vmem:[%s9985_s26 + $0x18f0] sm:$0xff] }
  0xd7   : > { %2017 = vst [vmem:[%s9990_s27 + $0xc70] sm:$0xff] %v2016_v14  ;;  %v2020_v16 = vld [vmem:[%s9985_s26 + $0x1900] sm:$0xff]  ;;  %v2022_v17 = vld [vmem:[%s9985_s26 + $0x1910] sm:$0xff]  ;;  %2019 = vst [vmem:[%s9990_s27 + $0xc78] sm:$0xff] %v2018_v15 }
  0xd8   : > { %2021 = vst [vmem:[%s9990_s27 + $0xc80] sm:$0xff] %v2020_v16  ;;  %2023 = vst [vmem:[%s9990_s27 + $0xc88] sm:$0xff] %v2022_v17  ;;  %v2024_v18 = vld [vmem:[%s9985_s26 + $0x1920] sm:$0xff]  ;;  %v2026_v19 = vld [vmem:[%s9985_s26 + $0x1930] sm:$0xff] }
  0xd9   : > { %v2028_v20 = vld [vmem:[%s9985_s26 + $0x1940] sm:$0xff]  ;;  %2025 = vst [vmem:[%s9990_s27 + $0xc90] sm:$0xff] %v2024_v18  ;;  %2027 = vst [vmem:[%s9990_s27 + $0xc98] sm:$0xff] %v2026_v19  ;;  %v2030_v21 = vld [vmem:[%s9985_s26 + $0x1950] sm:$0xff] }
  0xda   : > { %2029 = vst [vmem:[%s9990_s27 + $0xca0] sm:$0xff] %v2028_v20  ;;  %v2032_v22 = vld [vmem:[%s9985_s26 + $0x1960] sm:$0xff]  ;;  %v2034_v23 = vld [vmem:[%s9985_s26 + $0x1970] sm:$0xff]  ;;  %2031 = vst [vmem:[%s9990_s27 + $0xca8] sm:$0xff] %v2030_v21 }
  0xdb   : > { %2033 = vst [vmem:[%s9990_s27 + $0xcb0] sm:$0xff] %v2032_v22  ;;  %2035 = vst [vmem:[%s9990_s27 + $0xcb8] sm:$0xff] %v2034_v23  ;;  %v2036_v24 = vld [vmem:[%s9985_s26 + $0x1980] sm:$0xff]  ;;  %v2038_v25 = vld [vmem:[%s9985_s26 + $0x1990] sm:$0xff] }
  0xdc   : > { %v2040_v26 = vld [vmem:[%s9985_s26 + $0x19a0] sm:$0xff]  ;;  %2037 = vst [vmem:[%s9990_s27 + $0xcc0] sm:$0xff] %v2036_v24  ;;  %2039 = vst [vmem:[%s9990_s27 + $0xcc8] sm:$0xff] %v2038_v25  ;;  %v2042_v27 = vld [vmem:[%s9985_s26 + $0x19b0] sm:$0xff] }
  0xdd   : > { %2041 = vst [vmem:[%s9990_s27 + $0xcd0] sm:$0xff] %v2040_v26  ;;  %v2044_v28 = vld [vmem:[%s9985_s26 + $0x19c0] sm:$0xff]  ;;  %v2046_v29 = vld [vmem:[%s9985_s26 + $0x19d0] sm:$0xff]  ;;  %2043 = vst [vmem:[%s9990_s27 + $0xcd8] sm:$0xff] %v2042_v27 }
  0xde   : > { %2045 = vst [vmem:[%s9990_s27 + $0xce0] sm:$0xff] %v2044_v28  ;;  %2047 = vst [vmem:[%s9990_s27 + $0xce8] sm:$0xff] %v2046_v29  ;;  %v2048_v30 = vld [vmem:[%s9985_s26 + $0x19e0] sm:$0xff]  ;;  %v2050_v31 = vld [vmem:[%s9985_s26 + $0x19f0] sm:$0xff] }
  0xdf   : > { %v2052_v32 = vld [vmem:[%s9985_s26 + $0x1a00] sm:$0xff]  ;;  %2049 = vst [vmem:[%s9990_s27 + $0xcf0] sm:$0xff] %v2048_v30  ;;  %2051 = vst [vmem:[%s9990_s27 + $0xcf8] sm:$0xff] %v2050_v31  ;;  %v2054_v33 = vld [vmem:[%s9985_s26 + $0x1a10] sm:$0xff] }
  0xe0   : > { %2053 = vst [vmem:[%s9990_s27 + $0xd00] sm:$0xff] %v2052_v32  ;;  %v2056_v34 = vld [vmem:[%s9985_s26 + $0x1a20] sm:$0xff]  ;;  %v2058_v35 = vld [vmem:[%s9985_s26 + $0x1a30] sm:$0xff]  ;;  %2055 = vst [vmem:[%s9990_s27 + $0xd08] sm:$0xff] %v2054_v33 }
  0xe1   : > { %2057 = vst [vmem:[%s9990_s27 + $0xd10] sm:$0xff] %v2056_v34  ;;  %2059 = vst [vmem:[%s9990_s27 + $0xd18] sm:$0xff] %v2058_v35  ;;  %v2060_v36 = vld [vmem:[%s9985_s26 + $0x1a40] sm:$0xff]  ;;  %v2062_v37 = vld [vmem:[%s9985_s26 + $0x1a50] sm:$0xff] }
  0xe2   : > { %v2064_v38 = vld [vmem:[%s9985_s26 + $0x1a60] sm:$0xff]  ;;  %2061 = vst [vmem:[%s9990_s27 + $0xd20] sm:$0xff] %v2060_v36  ;;  %2063 = vst [vmem:[%s9990_s27 + $0xd28] sm:$0xff] %v2062_v37  ;;  %v2066_v39 = vld [vmem:[%s9985_s26 + $0x1a70] sm:$0xff] }
  0xe3   : > { %2065 = vst [vmem:[%s9990_s27 + $0xd30] sm:$0xff] %v2064_v38  ;;  %v2068_v40 = vld [vmem:[%s9985_s26 + $0x1a80] sm:$0xff]  ;;  %v2070_v41 = vld [vmem:[%s9985_s26 + $0x1a90] sm:$0xff]  ;;  %2067 = vst [vmem:[%s9990_s27 + $0xd38] sm:$0xff] %v2066_v39 }
  0xe4   : > { %2069 = vst [vmem:[%s9990_s27 + $0xd40] sm:$0xff] %v2068_v40  ;;  %2071 = vst [vmem:[%s9990_s27 + $0xd48] sm:$0xff] %v2070_v41  ;;  %v2072_v42 = vld [vmem:[%s9985_s26 + $0x1aa0] sm:$0xff]  ;;  %v2074_v43 = vld [vmem:[%s9985_s26 + $0x1ab0] sm:$0xff] }
  0xe5   : > { %v2076_v44 = vld [vmem:[%s9985_s26 + $0x1ac0] sm:$0xff]  ;;  %2073 = vst [vmem:[%s9990_s27 + $0xd50] sm:$0xff] %v2072_v42  ;;  %2075 = vst [vmem:[%s9990_s27 + $0xd58] sm:$0xff] %v2074_v43  ;;  %v2078_v45 = vld [vmem:[%s9985_s26 + $0x1ad0] sm:$0xff] }
  0xe6   : > { %2077 = vst [vmem:[%s9990_s27 + $0xd60] sm:$0xff] %v2076_v44  ;;  %v2080_v46 = vld [vmem:[%s9985_s26 + $0x1ae0] sm:$0xff]  ;;  %v2082_v47 = vld [vmem:[%s9985_s26 + $0x1af0] sm:$0xff]  ;;  %2079 = vst [vmem:[%s9990_s27 + $0xd68] sm:$0xff] %v2078_v45 }
  0xe7   : > { %2081 = vst [vmem:[%s9990_s27 + $0xd70] sm:$0xff] %v2080_v46  ;;  %2083 = vst [vmem:[%s9990_s27 + $0xd78] sm:$0xff] %v2082_v47  ;;  %v2084_v48 = vld [vmem:[%s9985_s26 + $0x1b00] sm:$0xff]  ;;  %v2086_v49 = vld [vmem:[%s9985_s26 + $0x1b10] sm:$0xff] }
  0xe8   : > { %v2088_v50 = vld [vmem:[%s9985_s26 + $0x1b20] sm:$0xff]  ;;  %2085 = vst [vmem:[%s9990_s27 + $0xd80] sm:$0xff] %v2084_v48  ;;  %2087 = vst [vmem:[%s9990_s27 + $0xd88] sm:$0xff] %v2086_v49  ;;  %v2090_v51 = vld [vmem:[%s9985_s26 + $0x1b30] sm:$0xff] }
  0xe9   : > { %2089 = vst [vmem:[%s9990_s27 + $0xd90] sm:$0xff] %v2088_v50  ;;  %v2092_v52 = vld [vmem:[%s9985_s26 + $0x1b40] sm:$0xff]  ;;  %v2094_v53 = vld [vmem:[%s9985_s26 + $0x1b50] sm:$0xff]  ;;  %2091 = vst [vmem:[%s9990_s27 + $0xd98] sm:$0xff] %v2090_v51 }
  0xea   : > { %2093 = vst [vmem:[%s9990_s27 + $0xda0] sm:$0xff] %v2092_v52  ;;  %2095 = vst [vmem:[%s9990_s27 + $0xda8] sm:$0xff] %v2094_v53  ;;  %v2096_v54 = vld [vmem:[%s9985_s26 + $0x1b60] sm:$0xff]  ;;  %v2098_v55 = vld [vmem:[%s9985_s26 + $0x1b70] sm:$0xff] }
  0xeb   : > { %v2100_v56 = vld [vmem:[%s9985_s26 + $0x1b80] sm:$0xff]  ;;  %2097 = vst [vmem:[%s9990_s27 + $0xdb0] sm:$0xff] %v2096_v54  ;;  %2099 = vst [vmem:[%s9990_s27 + $0xdb8] sm:$0xff] %v2098_v55  ;;  %v2102_v57 = vld [vmem:[%s9985_s26 + $0x1b90] sm:$0xff] }
  0xec   : > { %2101 = vst [vmem:[%s9990_s27 + $0xdc0] sm:$0xff] %v2100_v56  ;;  %v2104_v58 = vld [vmem:[%s9985_s26 + $0x1ba0] sm:$0xff]  ;;  %v2106_v59 = vld [vmem:[%s9985_s26 + $0x1bb0] sm:$0xff]  ;;  %2103 = vst [vmem:[%s9990_s27 + $0xdc8] sm:$0xff] %v2102_v57 }
  0xed   : > { %2105 = vst [vmem:[%s9990_s27 + $0xdd0] sm:$0xff] %v2104_v58  ;;  %2107 = vst [vmem:[%s9990_s27 + $0xdd8] sm:$0xff] %v2106_v59  ;;  %v2108_v60 = vld [vmem:[%s9985_s26 + $0x1bc0] sm:$0xff]  ;;  %v2110_v61 = vld [vmem:[%s9985_s26 + $0x1bd0] sm:$0xff] }
  0xee   : > { %v2112_v62 = vld [vmem:[%s9985_s26 + $0x1be0] sm:$0xff]  ;;  %2109 = vst [vmem:[%s9990_s27 + $0xde0] sm:$0xff] %v2108_v60  ;;  %2111 = vst [vmem:[%s9990_s27 + $0xde8] sm:$0xff] %v2110_v61  ;;  %v2114_v63 = vld [vmem:[%s9985_s26 + $0x1bf0] sm:$0xff] }
  0xef   : > { %2113 = vst [vmem:[%s9990_s27 + $0xdf0] sm:$0xff] %v2112_v62  ;;  %v2116_v0 = vld [vmem:[%s9985_s26 + $0x1c00] sm:$0xff]  ;;  %v2118_v1 = vld [vmem:[%s9985_s26 + $0x1c10] sm:$0xff]  ;;  %2115 = vst [vmem:[%s9990_s27 + $0xdf8] sm:$0xff] %v2114_v63 }
  0xf0   : > { %2117 = vst [vmem:[%s9990_s27 + $0xe00] sm:$0xff] %v2116_v0  ;;  %2119 = vst [vmem:[%s9990_s27 + $0xe08] sm:$0xff] %v2118_v1  ;;  %v2120_v2 = vld [vmem:[%s9985_s26 + $0x1c20] sm:$0xff]  ;;  %v2122_v3 = vld [vmem:[%s9985_s26 + $0x1c30] sm:$0xff] }
  0xf1   : > { %v2124_v4 = vld [vmem:[%s9985_s26 + $0x1c40] sm:$0xff]  ;;  %2121 = vst [vmem:[%s9990_s27 + $0xe10] sm:$0xff] %v2120_v2  ;;  %2123 = vst [vmem:[%s9990_s27 + $0xe18] sm:$0xff] %v2122_v3  ;;  %v2126_v5 = vld [vmem:[%s9985_s26 + $0x1c50] sm:$0xff] }
  0xf2   : > { %2125 = vst [vmem:[%s9990_s27 + $0xe20] sm:$0xff] %v2124_v4  ;;  %v2128_v6 = vld [vmem:[%s9985_s26 + $0x1c60] sm:$0xff]  ;;  %v2130_v7 = vld [vmem:[%s9985_s26 + $0x1c70] sm:$0xff]  ;;  %2127 = vst [vmem:[%s9990_s27 + $0xe28] sm:$0xff] %v2126_v5 }
  0xf3   : > { %2129 = vst [vmem:[%s9990_s27 + $0xe30] sm:$0xff] %v2128_v6  ;;  %2131 = vst [vmem:[%s9990_s27 + $0xe38] sm:$0xff] %v2130_v7  ;;  %v2132_v8 = vld [vmem:[%s9985_s26 + $0x1c80] sm:$0xff]  ;;  %v2134_v9 = vld [vmem:[%s9985_s26 + $0x1c90] sm:$0xff] }
  0xf4   : > { %v2136_v10 = vld [vmem:[%s9985_s26 + $0x1ca0] sm:$0xff]  ;;  %2133 = vst [vmem:[%s9990_s27 + $0xe40] sm:$0xff] %v2132_v8  ;;  %2135 = vst [vmem:[%s9990_s27 + $0xe48] sm:$0xff] %v2134_v9  ;;  %v2138_v11 = vld [vmem:[%s9985_s26 + $0x1cb0] sm:$0xff] }
  0xf5   : > { %2137 = vst [vmem:[%s9990_s27 + $0xe50] sm:$0xff] %v2136_v10  ;;  %v2140_v12 = vld [vmem:[%s9985_s26 + $0x1cc0] sm:$0xff]  ;;  %v2142_v13 = vld [vmem:[%s9985_s26 + $0x1cd0] sm:$0xff]  ;;  %2139 = vst [vmem:[%s9990_s27 + $0xe58] sm:$0xff] %v2138_v11 }
  0xf6   : > { %2141 = vst [vmem:[%s9990_s27 + $0xe60] sm:$0xff] %v2140_v12  ;;  %2143 = vst [vmem:[%s9990_s27 + $0xe68] sm:$0xff] %v2142_v13  ;;  %v2144_v14 = vld [vmem:[%s9985_s26 + $0x1ce0] sm:$0xff]  ;;  %v2146_v15 = vld [vmem:[%s9985_s26 + $0x1cf0] sm:$0xff] }
  0xf7   : > { %v2148_v16 = vld [vmem:[%s9985_s26 + $0x1d00] sm:$0xff]  ;;  %2145 = vst [vmem:[%s9990_s27 + $0xe70] sm:$0xff] %v2144_v14  ;;  %2147 = vst [vmem:[%s9990_s27 + $0xe78] sm:$0xff] %v2146_v15  ;;  %v2150_v17 = vld [vmem:[%s9985_s26 + $0x1d10] sm:$0xff] }
  0xf8   : > { %2149 = vst [vmem:[%s9990_s27 + $0xe80] sm:$0xff] %v2148_v16  ;;  %v2152_v18 = vld [vmem:[%s9985_s26 + $0x1d20] sm:$0xff]  ;;  %v2154_v19 = vld [vmem:[%s9985_s26 + $0x1d30] sm:$0xff]  ;;  %2151 = vst [vmem:[%s9990_s27 + $0xe88] sm:$0xff] %v2150_v17 }
  0xf9   : > { %2153 = vst [vmem:[%s9990_s27 + $0xe90] sm:$0xff] %v2152_v18  ;;  %2155 = vst [vmem:[%s9990_s27 + $0xe98] sm:$0xff] %v2154_v19  ;;  %v2156_v20 = vld [vmem:[%s9985_s26 + $0x1d40] sm:$0xff]  ;;  %v2158_v21 = vld [vmem:[%s9985_s26 + $0x1d50] sm:$0xff] }
  0xfa   : > { %v2160_v22 = vld [vmem:[%s9985_s26 + $0x1d60] sm:$0xff]  ;;  %2157 = vst [vmem:[%s9990_s27 + $0xea0] sm:$0xff] %v2156_v20  ;;  %2159 = vst [vmem:[%s9990_s27 + $0xea8] sm:$0xff] %v2158_v21  ;;  %v2162_v23 = vld [vmem:[%s9985_s26 + $0x1d70] sm:$0xff] }
  0xfb   : > { %2161 = vst [vmem:[%s9990_s27 + $0xeb0] sm:$0xff] %v2160_v22  ;;  %v2164_v24 = vld [vmem:[%s9985_s26 + $0x1d80] sm:$0xff]  ;;  %v2166_v25 = vld [vmem:[%s9985_s26 + $0x1d90] sm:$0xff]  ;;  %2163 = vst [vmem:[%s9990_s27 + $0xeb8] sm:$0xff] %v2162_v23 }
  0xfc   : > { %2165 = vst [vmem:[%s9990_s27 + $0xec0] sm:$0xff] %v2164_v24  ;;  %2167 = vst [vmem:[%s9990_s27 + $0xec8] sm:$0xff] %v2166_v25  ;;  %v2168_v26 = vld [vmem:[%s9985_s26 + $0x1da0] sm:$0xff]  ;;  %v2170_v27 = vld [vmem:[%s9985_s26 + $0x1db0] sm:$0xff] }
  0xfd   : > { %v2172_v28 = vld [vmem:[%s9985_s26 + $0x1dc0] sm:$0xff]  ;;  %2169 = vst [vmem:[%s9990_s27 + $0xed0] sm:$0xff] %v2168_v26  ;;  %2171 = vst [vmem:[%s9990_s27 + $0xed8] sm:$0xff] %v2170_v27  ;;  %v2174_v29 = vld [vmem:[%s9985_s26 + $0x1dd0] sm:$0xff] }
  0xfe   : > { %2173 = vst [vmem:[%s9990_s27 + $0xee0] sm:$0xff] %v2172_v28  ;;  %v2176_v30 = vld [vmem:[%s9985_s26 + $0x1de0] sm:$0xff]  ;;  %v2178_v31 = vld [vmem:[%s9985_s26 + $0x1df0] sm:$0xff]  ;;  %2175 = vst [vmem:[%s9990_s27 + $0xee8] sm:$0xff] %v2174_v29 }
  0xff   : > { %2177 = vst [vmem:[%s9990_s27 + $0xef0] sm:$0xff] %v2176_v30  ;;  %2179 = vst [vmem:[%s9990_s27 + $0xef8] sm:$0xff] %v2178_v31  ;;  %v2180_v32 = vld [vmem:[%s9985_s26 + $0x1e00] sm:$0xff]  ;;  %v2182_v33 = vld [vmem:[%s9985_s26 + $0x1e10] sm:$0xff] }
 0x100   : > { %v2184_v34 = vld [vmem:[%s9985_s26 + $0x1e20] sm:$0xff]  ;;  %2181 = vst [vmem:[%s9990_s27 + $0xf00] sm:$0xff] %v2180_v32  ;;  %2183 = vst [vmem:[%s9990_s27 + $0xf08] sm:$0xff] %v2182_v33  ;;  %v2186_v35 = vld [vmem:[%s9985_s26 + $0x1e30] sm:$0xff] }
 0x101   : > { %2185 = vst [vmem:[%s9990_s27 + $0xf10] sm:$0xff] %v2184_v34  ;;  %v2188_v36 = vld [vmem:[%s9985_s26 + $0x1e40] sm:$0xff]  ;;  %v2190_v37 = vld [vmem:[%s9985_s26 + $0x1e50] sm:$0xff]  ;;  %2187 = vst [vmem:[%s9990_s27 + $0xf18] sm:$0xff] %v2186_v35 }
 0x102   : > { %2189 = vst [vmem:[%s9990_s27 + $0xf20] sm:$0xff] %v2188_v36  ;;  %2191 = vst [vmem:[%s9990_s27 + $0xf28] sm:$0xff] %v2190_v37  ;;  %v2192_v38 = vld [vmem:[%s9985_s26 + $0x1e60] sm:$0xff]  ;;  %v2194_v39 = vld [vmem:[%s9985_s26 + $0x1e70] sm:$0xff] }
 0x103   : > { %v2196_v40 = vld [vmem:[%s9985_s26 + $0x1e80] sm:$0xff]  ;;  %2193 = vst [vmem:[%s9990_s27 + $0xf30] sm:$0xff] %v2192_v38  ;;  %2195 = vst [vmem:[%s9990_s27 + $0xf38] sm:$0xff] %v2194_v39  ;;  %v2198_v41 = vld [vmem:[%s9985_s26 + $0x1e90] sm:$0xff] }
 0x104   : > { %2197 = vst [vmem:[%s9990_s27 + $0xf40] sm:$0xff] %v2196_v40  ;;  %v2200_v42 = vld [vmem:[%s9985_s26 + $0x1ea0] sm:$0xff]  ;;  %v2202_v43 = vld [vmem:[%s9985_s26 + $0x1eb0] sm:$0xff]  ;;  %2199 = vst [vmem:[%s9990_s27 + $0xf48] sm:$0xff] %v2198_v41 }
 0x105   : > { %2201 = vst [vmem:[%s9990_s27 + $0xf50] sm:$0xff] %v2200_v42  ;;  %2203 = vst [vmem:[%s9990_s27 + $0xf58] sm:$0xff] %v2202_v43  ;;  %v2204_v44 = vld [vmem:[%s9985_s26 + $0x1ec0] sm:$0xff]  ;;  %v2206_v45 = vld [vmem:[%s9985_s26 + $0x1ed0] sm:$0xff] }
 0x106   : > { %v2208_v46 = vld [vmem:[%s9985_s26 + $0x1ee0] sm:$0xff]  ;;  %2205 = vst [vmem:[%s9990_s27 + $0xf60] sm:$0xff] %v2204_v44  ;;  %2207 = vst [vmem:[%s9990_s27 + $0xf68] sm:$0xff] %v2206_v45  ;;  %v2210_v47 = vld [vmem:[%s9985_s26 + $0x1ef0] sm:$0xff] }
 0x107   : > { %2209 = vst [vmem:[%s9990_s27 + $0xf70] sm:$0xff] %v2208_v46  ;;  %v2212_v48 = vld [vmem:[%s9985_s26 + $0x1f00] sm:$0xff]  ;;  %v2214_v49 = vld [vmem:[%s9985_s26 + $0x1f10] sm:$0xff]  ;;  %2211 = vst [vmem:[%s9990_s27 + $0xf78] sm:$0xff] %v2210_v47 }
 0x108   : > { %2213 = vst [vmem:[%s9990_s27 + $0xf80] sm:$0xff] %v2212_v48  ;;  %2215 = vst [vmem:[%s9990_s27 + $0xf88] sm:$0xff] %v2214_v49  ;;  %v2216_v50 = vld [vmem:[%s9985_s26 + $0x1f20] sm:$0xff]  ;;  %v2218_v51 = vld [vmem:[%s9985_s26 + $0x1f30] sm:$0xff] }
 0x109   : > { %v2220_v52 = vld [vmem:[%s9985_s26 + $0x1f40] sm:$0xff]  ;;  %2217 = vst [vmem:[%s9990_s27 + $0xf90] sm:$0xff] %v2216_v50  ;;  %2219 = vst [vmem:[%s9990_s27 + $0xf98] sm:$0xff] %v2218_v51  ;;  %v2222_v53 = vld [vmem:[%s9985_s26 + $0x1f50] sm:$0xff] }
 0x10a   : > { %2221 = vst [vmem:[%s9990_s27 + $0xfa0] sm:$0xff] %v2220_v52  ;;  %v2224_v54 = vld [vmem:[%s9985_s26 + $0x1f60] sm:$0xff]  ;;  %v2226_v55 = vld [vmem:[%s9985_s26 + $0x1f70] sm:$0xff]  ;;  %2223 = vst [vmem:[%s9990_s27 + $0xfa8] sm:$0xff] %v2222_v53 }
 0x10b   : > { %2225 = vst [vmem:[%s9990_s27 + $0xfb0] sm:$0xff] %v2224_v54  ;;  %2227 = vst [vmem:[%s9990_s27 + $0xfb8] sm:$0xff] %v2226_v55  ;;  %v2228_v56 = vld [vmem:[%s9985_s26 + $0x1f80] sm:$0xff]  ;;  %v2230_v57 = vld [vmem:[%s9985_s26 + $0x1f90] sm:$0xff] }
 0x10c   : > { %v2232_v58 = vld [vmem:[%s9985_s26 + $0x1fa0] sm:$0xff]  ;;  %2229 = vst [vmem:[%s9990_s27 + $0xfc0] sm:$0xff] %v2228_v56  ;;  %2231 = vst [vmem:[%s9990_s27 + $0xfc8] sm:$0xff] %v2230_v57  ;;  %v2234_v59 = vld [vmem:[%s9985_s26 + $0x1fb0] sm:$0xff] }
 0x10d   : > { %2233 = vst [vmem:[%s9990_s27 + $0xfd0] sm:$0xff] %v2232_v58  ;;  %v2236_v60 = vld [vmem:[%s9985_s26 + $0x1fc0] sm:$0xff]  ;;  %v2238_v61 = vld [vmem:[%s9985_s26 + $0x1fd0] sm:$0xff]  ;;  %2235 = vst [vmem:[%s9990_s27 + $0xfd8] sm:$0xff] %v2234_v59 }
 0x10e   : > { %2237 = vst [vmem:[%s9990_s27 + $0xfe0] sm:$0xff] %v2236_v60  ;;  %2239 = vst [vmem:[%s9990_s27 + $0xfe8] sm:$0xff] %v2238_v61  ;;  %v2240_v62 = vld [vmem:[%s9985_s26 + $0x1fe0] sm:$0xff]  ;;  %v2242_v63 = vld [vmem:[%s9985_s26 + $0x1ff0] sm:$0xff] }
 0x10f   : > { %2241 = vst [vmem:[%s9990_s27 + $0xff0] sm:$0xff] %v2240_v62  ;;  %2243 = vst [vmem:[%s9990_s27 + $0xff8] sm:$0xff] %v2242_v63 }
 0x110 PF: > { %p8543_p6 = scmp.ge.s32.totalorder %s9917_s16, 1  ;;  %p4341_p7 = scmp.lt.s32.totalorder %s9917_s16, 3 }
 0x112   : > { %p4342_p8 = pnand %p8543_p6, %p4341_p7 }
 0x113   : > { %s4348_s28 = sand.u32 (!%p4342_p8), 1, %s9901_s12   ;;  %s8545_s12 = sshll.u32 (!%p4342_p8), %s9909_s14, 1 }
 0x114   : > { %4345 = sbr.rel (%p4342_p8) target bundleno = 1022 (0x3fe), region = 80  ;;  %s8544_s29 = sshll.u32 (!%p4342_p8), %s4348_s28, 12 }
 0x115   : > { %s11023_s5 = scalar_lea.vmem (!%p4342_p8), [#allocation3], %s8544_s29  ;;  %p4386_p9 = scmp.lt.s32.totalorder (!%p4342_p8), %s8545_s12, 3 }
 0x119   : > { %v4925_v0 = vlaneseq  ;;  %v9919_v1 = vmov 1966171168   ;;  %v11019_v3 = vld [vmem:[%s11685_s0] sm:$0xff]  ;;  %v9111_v8 = vld [vmem:[%s11023_s5 + $0x70] ss:$8 sps:$4 sm:$0xff]   ;;  %s11696_s12 = smov (!%p4386_p9, %s8545_s12), 3 }
 0x11a   : > { %v4923_v2 = vunpack.c.l.s4 %v9919_v1  ;;  %v9107_v5 = vld [vmem:[%s11023_s5 + $0x74] ss:$8 sps:$4 sm:$0xff]   ;;  %v9112_v9 = vld [vmem:[%s11023_s5 + $0x170] ss:$8 sps:$4 sm:$0xff]   ;;  %v9113_v11 = vld [vmem:[%s11023_s5 + $0x64] ss:$8 sps:$4 sm:$0xff]   ;;  %v4921_v1 = vcombine.high %v11019_v3, %v11019_v3  ;;  %s4388_s21 = scalar_lea.vmem %s11687_s2, %s11696_s12  ;;  %s4393_s23 = scalar_lea.vmem %s11688_s3, %s11696_s12 }
 0x11b   : > { %v11021_v4 = vshrl.u32 %v4925_v0, 7  ;;  %v9109_v7 = vld [vmem:[%s11023_s5 + $0x174] ss:$8 sps:$4 sm:$0xff]   ;;  %7709 = vmatprep.subr.bf16.mxu0 %v9107_v5  ;;  %v9115_v12 = vld [vmem:[%s11023_s5 + $0x164] ss:$8 sps:$4 sm:$0xff]  }
 0x11c   : > { %v4924_v6 = vunpack.c.0.s8 %v4923_v2  ;;  %7750 = vmatprep.subr.bf16.mxu1 %v9109_v7  ;;  %7710 = vmatpush1.bf16.msra.mxu0 %v9111_v8  ;;  %v9117_v13 = vld [vmem:[%s11023_s5 + $0x60] ss:$8 sps:$4 sm:$0xff]   ;;  %v9119_v16 = vld [vmem:[%s11023_s5 + $0x54] ss:$8 sps:$4 sm:$0xff]   ;;  %v9123_v19 = vld [vmem:[%s11023_s5 + $0x50] ss:$8 sps:$4 sm:$0xff]  }
 0x11d   : > { %7751 = vmatpush1.bf16.msra.mxu1 %v9112_v9  ;;  %7711 = vmatprep.subr.bf16.mxu0 %v9113_v11  ;;  %v9118_v15 = vld [vmem:[%s11023_s5 + $0x160] ss:$8 sps:$4 sm:$0xff]   ;;  %v9121_v18 = vld [vmem:[%s11023_s5 + $0x154] ss:$8 sps:$4 sm:$0xff]   ;;  %v9124_v20 = vld [vmem:[%s11023_s5 + $0x150] ss:$8 sps:$4 sm:$0xff]  }
 0x11e   : > { %v11030_v10 = vsub.s32 %v4924_v6, %v11021_v4  ;;  %7752 = vmatprep.subr.bf16.mxu1 %v9115_v12  ;;  %v9125_v21 = vld [vmem:[%s11023_s5 + $0x44] ss:$8 sps:$4 sm:$0xff]   ;;  %v9129_v25 = vld [vmem:[%s11023_s5 + $0x40] ss:$8 sps:$4 sm:$0xff]   ;;  %v9131_v27 = vld [vmem:[%s11023_s5 + $0x34] ss:$8 sps:$4 sm:$0xff]  }
 0x11f   : > { %v9127_v23 = vld [vmem:[%s11023_s5 + $0x144] ss:$8 sps:$4 sm:$0xff]   ;;  %v9130_v26 = vld [vmem:[%s11023_s5 + $0x140] ss:$8 sps:$4 sm:$0xff]   ;;  %v9133_v28 = vld [vmem:[%s11023_s5 + $0x134] ss:$8 sps:$4 sm:$0xff]  }
 0x120   : > { %v11037_v14 = vrot.slane %v11019_v3, %v11030_v10  ;;  %7712 = vmatpush1.bf16.msra.mxu0 %v9117_v13  ;;  %v9135_v29 = vld [vmem:[%s11023_s5 + $0x30] ss:$8 sps:$4 sm:$0xff]   ;;  %v9137_v31 = vld [vmem:[%s11023_s5 + $0x24] ss:$8 sps:$4 sm:$0xff]   ;;  %v9141_v33 = vld [vmem:[%s11023_s5 + $0x20] ss:$8 sps:$4 sm:$0xff]   ;;  %v11096_v8 = vrot.slane %v4921_v1, %v11030_v10 }
 0x121   : > { %7753 = vmatpush1.bf16.msra.mxu1 %v9118_v15  ;;  %7713 = vmatprep.subr.bf16.mxu0 %v9119_v16  ;;  %v9136_v30 = vld [vmem:[%s11023_s5 + $0x130] ss:$8 sps:$4 sm:$0xff]   ;;  %v9139_v32 = vld [vmem:[%s11023_s5 + $0x124] ss:$8 sps:$4 sm:$0xff]   ;;  %v9142_v34 = vld [vmem:[%s11023_s5 + $0x120] ss:$8 sps:$4 sm:$0xff]  }
 0x122   : > { %v4936_v17 = vcombine.high %v11037_v14, %v11037_v14  ;;  %7754 = vmatprep.subr.bf16.mxu1 %v9121_v18  ;;  %v9143_v35 = vld [vmem:[%s11023_s5 + $0x14] ss:$8 sps:$4 sm:$0xff]   ;;  %v9147_v37 = vld [vmem:[%s11023_s5 + $0x10] ss:$8 sps:$4 sm:$0xff]   ;;  %v9149_v39 = vld [vmem:[%s11023_s5 + $0x4] ss:$8 sps:$4 sm:$0xff]   ;;  %v4937_v13 = vcombine.high %v11096_v8, %v11096_v8 }
 0x123   : > { %v9145_v36 = vld [vmem:[%s11023_s5 + $0x114] ss:$8 sps:$4 sm:$0xff]   ;;  %v9148_v38 = vld [vmem:[%s11023_s5 + $0x110] ss:$8 sps:$4 sm:$0xff]   ;;  %v9151_v40 = vld [vmem:[%s11023_s5 + $0x104] ss:$8 sps:$4 sm:$0xff]  }
 0x124   : > { %v4958_v22 = vrot.slane %v4936_v17, %v11030_v10  ;;  %7714 = vmatpush1.bf16.msra.mxu0 %v9123_v19  ;;  %v9153_v41 = vld [vmem:[%s11023_s5] ss:$8 sps:$4 sm:$0xff]   ;;  %v9155_v43 = vld [vmem:[%s11023_s5 + $0xf4] ss:$8 sps:$4 sm:$0xff]   ;;  %v9159_v45 = vld [vmem:[%s11023_s5 + $0xf0] ss:$8 sps:$4 sm:$0xff]   ;;  %v4944_v17 = vrot.slane %v11037_v14, %v11030_v10 }
 0x125   : > { %7755 = vmatpush1.bf16.msra.mxu1 %v9124_v20  ;;  %7715 = vmatprep.subr.bf16.mxu0 %v9125_v21  ;;  %v9154_v42 = vld [vmem:[%s11023_s5 + $0x100] ss:$8 sps:$4 sm:$0xff]   ;;  %v9157_v44 = vld [vmem:[%s11023_s5 + $0x1f4] ss:$8 sps:$4 sm:$0xff]   ;;  %v9160_v46 = vld [vmem:[%s11023_s5 + $0x1f0] ss:$8 sps:$4 sm:$0xff]   ;;  %v4965_v20 = vrot.slane %v4937_v13, %v11030_v10 }
 0x126   : > { %7741 = vmatprep.mubr.bf16.mxu0 %v4958_v22  ;;  %v4968_v24 = vcombine.high %v4958_v22, %v4958_v22  ;;  %7756 = vmatprep.subr.bf16.mxu1 %v9127_v23  ;;  %v9161_v47 = vld [vmem:[%s11023_s5 + $0xe4] ss:$8 sps:$4 sm:$0xff]   ;;  %v9165_v49 = vld [vmem:[%s11023_s5 + $0xe0] ss:$8 sps:$4 sm:$0xff]   ;;  %v9167_v51 = vld [vmem:[%s11023_s5 + $0xd4] ss:$8 sps:$4 sm:$0xff]   ;;  %v4966_v21 = vcombine.high %v4944_v17, %v4944_v17 }
 0x127   : > { %v9163_v48 = vld [vmem:[%s11023_s5 + $0x1e4] ss:$8 sps:$4 sm:$0xff]   ;;  %v9166_v50 = vld [vmem:[%s11023_s5 + $0x1e0] ss:$8 sps:$4 sm:$0xff]   ;;  %v9169_v52 = vld [vmem:[%s11023_s5 + $0x1d4] ss:$8 sps:$4 sm:$0xff]  }
 0x128   : > { %7782 = vmatprep.mubr.bf16.mxu1 %v4968_v24  ;;  %7716 = vmatpush1.bf16.msra.mxu0 %v9129_v25  ;;  %v9171_v53 = vld [vmem:[%s11023_s5 + $0xd0] ss:$8 sps:$4 sm:$0xff]   ;;  %v9173_v55 = vld [vmem:[%s11023_s5 + $0xc4] ss:$8 sps:$4 sm:$0xff]   ;;  %v9177_v57 = vld [vmem:[%s11023_s5 + $0xc0] ss:$8 sps:$4 sm:$0xff]   ;;  %v4969_v25 = vcombine.high %v4965_v20, %v4965_v20 }
 0x129   : > { %7757 = vmatpush1.bf16.msra.mxu1 %v9130_v26  ;;  %7717 = vmatprep.subr.bf16.mxu0 %v9131_v27  ;;  %v9172_v54 = vld [vmem:[%s11023_s5 + $0x1d0] ss:$8 sps:$4 sm:$0xff]   ;;  %v9175_v56 = vld [vmem:[%s11023_s5 + $0x1c4] ss:$8 sps:$4 sm:$0xff]   ;;  %v9178_v58 = vld [vmem:[%s11023_s5 + $0x1c0] ss:$8 sps:$4 sm:$0xff]  }
 0x12a   : > { %7758 = vmatprep.subr.bf16.mxu1 %v9133_v28  ;;  %v9179_v59 = vld [vmem:[%s11023_s5 + $0xb4] ss:$8 sps:$4 sm:$0xff]   ;;  %v9183_v61 = vld [vmem:[%s11023_s5 + $0xb0] ss:$8 sps:$4 sm:$0xff]   ;;  %v9185_v63 = vld [vmem:[%s11023_s5 + $0xa4] ss:$8 sps:$4 sm:$0xff]  }
 0x12b   : > { %v9181_v60 = vld [vmem:[%s11023_s5 + $0x1b4] ss:$8 sps:$4 sm:$0xff]   ;;  %v9184_v62 = vld [vmem:[%s11023_s5 + $0x1b0] ss:$8 sps:$4 sm:$0xff]   ;;  %v9187_v0 = vld [vmem:[%s11023_s5 + $0x1a4] ss:$8 sps:$4 sm:$0xff]  }
 0x12c   : > { %7718 = vmatpush1.bf16.msra.mxu0 %v9135_v29  ;;  %v9189_v2 = vld [vmem:[%s11023_s5 + $0xa0] ss:$8 sps:$4 sm:$0xff]   ;;  %v9191_v6 = vld [vmem:[%s11023_s5 + $0x94] ss:$8 sps:$4 sm:$0xff]   ;;  %v9195_v9 = vld [vmem:[%s11023_s5 + $0x90] ss:$8 sps:$4 sm:$0xff]  }
 0x12d   : > { %7759 = vmatpush1.bf16.msra.mxu1 %v9136_v30  ;;  %7719 = vmatprep.subr.bf16.mxu0 %v9137_v31  ;;  %v9190_v5 = vld [vmem:[%s11023_s5 + $0x1a0] ss:$8 sps:$4 sm:$0xff]   ;;  %v9193_v7 = vld [vmem:[%s11023_s5 + $0x194] ss:$8 sps:$4 sm:$0xff]   ;;  %v9196_v11 = vld [vmem:[%s11023_s5 + $0x190] ss:$8 sps:$4 sm:$0xff]  }
 0x12e   : > { %7760 = vmatprep.subr.bf16.mxu1 %v9139_v32  ;;  %v9197_v3 = vld [vmem:[%s11023_s5 + $0x84] ss:$8 sps:$4 sm:$0xff]   ;;  %v9201_v15 = vld [vmem:[%s11023_s5 + $0x80] ss:$8 sps:$4 sm:$0xff]   ;;  %v9206_v18 = vld [vmem:[%s11023_s5 + $0x274] ss:$8 sps:$4 sm:$0xff]  }
 0x12f   : > { %v9199_v12 = vld [vmem:[%s11023_s5 + $0x184] ss:$8 sps:$4 sm:$0xff]   ;;  %v9202_v16 = vld [vmem:[%s11023_s5 + $0x180] ss:$8 sps:$4 sm:$0xff]   ;;  %v9209_v19 = vld [vmem:[%s11023_s5 + $0x374] ss:$8 sps:$4 sm:$0xff]  }
 0x130   : > { %7720 = vmatpush1.bf16.msra.mxu0 %v9141_v33  ;;  %v9204_v22 = vld [vmem:[%s11023_s5 + $0x270] ss:$8 sps:$4 sm:$0xff]   ;;  %v9212_v24 = vld [vmem:[%s11023_s5 + $0x264] ss:$8 sps:$4 sm:$0xff]   ;;  %v9210_v26 = vld [vmem:[%s11023_s5 + $0x260] ss:$8 sps:$4 sm:$0xff]  }
 0x131   : > { %7761 = vmatpush1.bf16.msra.mxu1 %v9142_v34  ;;  %7721 = vmatprep.subr.bf16.mxu0 %v9143_v35  ;;  %v9207_v23 = vld [vmem:[%s11023_s5 + $0x370] ss:$8 sps:$4 sm:$0xff]   ;;  %v9215_v14 = vld [vmem:[%s11023_s5 + $0x364] ss:$8 sps:$4 sm:$0xff]   ;;  %v9213_v27 = vld [vmem:[%s11023_s5 + $0x360] ss:$8 sps:$4 sm:$0xff]  }
 0x132   : > { %7762 = vmatprep.subr.bf16.mxu1 %v9145_v36  ;;  %v9218_v28 = vld [vmem:[%s11023_s5 + $0x254] ss:$8 sps:$4 sm:$0xff]   ;;  %v9216_v30 = vld [vmem:[%s11023_s5 + $0x250] ss:$8 sps:$4 sm:$0xff]   ;;  %v9224_v32 = vld [vmem:[%s11023_s5 + $0x244] ss:$8 sps:$4 sm:$0xff]  }
 0x133   : > { %v9221_v29 = vld [vmem:[%s11023_s5 + $0x354] ss:$8 sps:$4 sm:$0xff]   ;;  %v9219_v31 = vld [vmem:[%s11023_s5 + $0x350] ss:$8 sps:$4 sm:$0xff]   ;;  %v9227_v33 = vld [vmem:[%s11023_s5 + $0x344] ss:$8 sps:$4 sm:$0xff]  }
 0x134   : > { %7722 = vmatpush1.bf16.msra.mxu0 %v9147_v37  ;;  %v9222_v34 = vld [vmem:[%s11023_s5 + $0x240] ss:$8 sps:$4 sm:$0xff]   ;;  %v9230_v36 = vld [vmem:[%s11023_s5 + $0x234] ss:$8 sps:$4 sm:$0xff]   ;;  %v9275_v1 = vld [vmem:[%s11023_s5 + $0x3c4] ss:$8 sps:$4 sm:$0xff]  }
 0x135   : > { %7763 = vmatpush1.bf16.msra.mxu1 %v9148_v38  ;;  %7723 = vmatprep.subr.bf16.mxu0 %v9149_v39  ;;  %v9225_v35 = vld [vmem:[%s11023_s5 + $0x340] ss:$8 sps:$4 sm:$0xff]   ;;  %v9233_v37 = vld [vmem:[%s11023_s5 + $0x334] ss:$8 sps:$4 sm:$0xff]   ;;  %v9228_v38 = vld [vmem:[%s11023_s5 + $0x230] ss:$8 sps:$4 sm:$0xff]  }
 0x136   : > { %7764 = vmatprep.subr.bf16.mxu1 %v9151_v40  ;;  %v9231_v39 = vld [vmem:[%s11023_s5 + $0x330] ss:$8 sps:$4 sm:$0xff]   ;;  %v9236_v40 = vld [vmem:[%s11023_s5 + $0x224] ss:$8 sps:$4 sm:$0xff]   ;;  %v9282_v13 = vld [vmem:[%s11023_s5 + $0x2a0] ss:$8 sps:$4 sm:$0xff]  }
 0x138   : > { %7724 = vmatpush1.bf16.msra.mxu0 %v9153_v41  ;;  %v9239_v41 = vld [vmem:[%s11023_s5 + $0x324] ss:$8 sps:$4 sm:$0xff]  }
 0x139   : > { %7765 = vmatpush1.bf16.msra.mxu1 %v9154_v42  ;;  %7725 = vmatprep.subr.bf16.mxu0 %v9155_v43  ;;  %v9234_v42 = vld [vmem:[%s11023_s5 + $0x220] ss:$8 sps:$4 sm:$0xff]  }
 0x13a   : > { %7766 = vmatprep.subr.bf16.mxu1 %v9157_v44  ;;  %v9237_v43 = vld [vmem:[%s11023_s5 + $0x320] ss:$8 sps:$4 sm:$0xff]   ;;  %v9242_v44 = vld [vmem:[%s11023_s5 + $0x214] ss:$8 sps:$4 sm:$0xff]  }
 0x13c   : > { %7726 = vmatpush2.bf16.msra.mxu0 %v9159_v45  ;;  %v9245_v45 = vld [vmem:[%s11023_s5 + $0x314] ss:$8 sps:$4 sm:$0xff]  }
 0x13d   : > { %7767 = vmatpush2.bf16.msra.mxu1 %v9160_v46  ;;  %7727 = vmatprep.subr.bf16.mxu0 %v9161_v47  ;;  %v9240_v46 = vld [vmem:[%s11023_s5 + $0x210] ss:$8 sps:$4 sm:$0xff]  }
 0x13e   : > { %7768 = vmatprep.subr.bf16.mxu1 %v9163_v48  ;;  %v9243_v47 = vld [vmem:[%s11023_s5 + $0x310] ss:$8 sps:$4 sm:$0xff]   ;;  %v9248_v48 = vld [vmem:[%s11023_s5 + $0x204] ss:$8 sps:$4 sm:$0xff]  }
 0x140   : > { %7728 = vmatpush2.bf16.msra.mxu0 %v9165_v49  ;;  %v9251_v49 = vld [vmem:[%s11023_s5 + $0x304] ss:$8 sps:$4 sm:$0xff]  }
 0x141   : > { %7769 = vmatpush2.bf16.msra.mxu1 %v9166_v50  ;;  %7729 = vmatprep.subr.bf16.mxu0 %v9167_v51  ;;  %v9246_v50 = vld [vmem:[%s11023_s5 + $0x200] ss:$8 sps:$4 sm:$0xff]  }
 0x142   : > { %7770 = vmatprep.subr.bf16.mxu1 %v9169_v52  ;;  %v9249_v51 = vld [vmem:[%s11023_s5 + $0x300] ss:$8 sps:$4 sm:$0xff]   ;;  %v9254_v52 = vld [vmem:[%s11023_s5 + $0x2f4] ss:$8 sps:$4 sm:$0xff]  }
 0x144   : > { %7730 = vmatpush2.bf16.msra.mxu0 %v9171_v53  ;;  %v9257_v53 = vld [vmem:[%s11023_s5 + $0x3f4] ss:$8 sps:$4 sm:$0xff]  }
 0x145   : > { %7771 = vmatpush2.bf16.msra.mxu1 %v9172_v54  ;;  %7731 = vmatprep.subr.bf16.mxu0 %v9173_v55  ;;  %v9252_v54 = vld [vmem:[%s11023_s5 + $0x2f0] ss:$8 sps:$4 sm:$0xff]  }
 0x146   : > { %7772 = vmatprep.subr.bf16.mxu1 %v9175_v56  ;;  %v9255_v55 = vld [vmem:[%s11023_s5 + $0x3f0] ss:$8 sps:$4 sm:$0xff]   ;;  %v9260_v56 = vld [vmem:[%s11023_s5 + $0x2e4] ss:$8 sps:$4 sm:$0xff]  }
 0x148   : > { %7732 = vmatpush2.bf16.msra.mxu0 %v9177_v57  ;;  %v9263_v57 = vld [vmem:[%s11023_s5 + $0x3e4] ss:$8 sps:$4 sm:$0xff]  }
 0x149   : > { %7773 = vmatpush2.bf16.msra.mxu1 %v9178_v58  ;;  %7733 = vmatprep.subr.bf16.mxu0 %v9179_v59  ;;  %v9258_v58 = vld [vmem:[%s11023_s5 + $0x2e0] ss:$8 sps:$4 sm:$0xff]  }
 0x14a   : > { %7774 = vmatprep.subr.bf16.mxu1 %v9181_v60  ;;  %v9261_v59 = vld [vmem:[%s11023_s5 + $0x3e0] ss:$8 sps:$4 sm:$0xff]   ;;  %v9266_v60 = vld [vmem:[%s11023_s5 + $0x2d4] ss:$8 sps:$4 sm:$0xff]  }
 0x14c   : > { %7734 = vmatpush2.bf16.msra.mxu0 %v9183_v61  ;;  %v9269_v61 = vld [vmem:[%s11023_s5 + $0x3d4] ss:$8 sps:$4 sm:$0xff]  }
 0x14d   : > { %7775 = vmatpush2.bf16.msra.mxu1 %v9184_v62  ;;  %7735 = vmatprep.subr.bf16.mxu0 %v9185_v63  ;;  %v9264_v62 = vld [vmem:[%s11023_s5 + $0x2d0] ss:$8 sps:$4 sm:$0xff]  }
 0x14e   : > { %7776 = vmatprep.subr.bf16.mxu1 %v9187_v0  ;;  %v9267_v63 = vld [vmem:[%s11023_s5 + $0x3d0] ss:$8 sps:$4 sm:$0xff]   ;;  %v9272_v0 = vld [vmem:[%s11023_s5 + $0x2c4] ss:$8 sps:$4 sm:$0xff]  }
 0x150   : > { %7736 = vmatpush2.bf16.msra.mxu0 %v9189_v2  ;;  %v9270_v2 = vld [vmem:[%s11023_s5 + $0x2c0] ss:$8 sps:$4 sm:$0xff]  }
 0x151   : > { %7777 = vmatpush2.bf16.msra.mxu1 %v9190_v5  ;;  %7737 = vmatprep.subr.bf16.mxu0 %v9191_v6  ;;  %v9273_v5 = vld [vmem:[%s11023_s5 + $0x3c0] ss:$8 sps:$4 sm:$0xff]   ;;  %v9278_v6 = vld [vmem:[%s11023_s5 + $0x2b4] ss:$8 sps:$4 sm:$0xff]  }
 0x152   : > { %7778 = vmatprep.subr.bf16.mxu1 %v9193_v7  ;;  %v9281_v7 = vld [vmem:[%s11023_s5 + $0x3b4] ss:$8 sps:$4 sm:$0xff]  }
 0x154   : > { %7738 = vmatpush2.bf16.msra.mxu0 %v9195_v9  ;;  %v9276_v9 = vld [vmem:[%s11023_s5 + $0x2b0] ss:$8 sps:$4 sm:$0xff]  }
 0x155   : > { %7779 = vmatpush2.bf16.msra.mxu1 %v9196_v11  ;;  %7739 = vmatprep.subr.bf16.mxu0 %v9197_v3  ;;  %v9279_v11 = vld [vmem:[%s11023_s5 + $0x3b0] ss:$8 sps:$4 sm:$0xff]   ;;  %v9284_v3 = vld [vmem:[%s11023_s5 + $0x2a4] ss:$8 sps:$4 sm:$0xff]  }
 0x156   : > { %7780 = vmatprep.subr.bf16.mxu1 %v9199_v12  ;;  %v9287_v12 = vld [vmem:[%s11023_s5 + $0x3a4] ss:$8 sps:$4 sm:$0xff]  }
 0x158   : > { %7740 = vmatpush2.bf16.msra.mxu0 %v9201_v15  ;;  %v9285_v15 = vld [vmem:[%s11023_s5 + $0x3a0] ss:$8 sps:$4 sm:$0xff]  }
 0x159   : > { %7781 = vmatpush2.bf16.msra.mxu1 %v9202_v16  ;;  %7791 = vmatprep.subr.bf16.mxu0 %v9206_v18  ;;  %v9290_v16 = vld [vmem:[%s11023_s5 + $0x294] ss:$8 sps:$4 sm:$0xff]   ;;  %v9288_v18 = vld [vmem:[%s11023_s5 + $0x290] ss:$8 sps:$4 sm:$0xff]  }
 0x15a   : > { %7832 = vmatprep.subr.bf16.mxu1 %v9209_v19  ;;  %v9291_v19 = vld [vmem:[%s11023_s5 + $0x390] ss:$8 sps:$4 sm:$0xff]  }
 0x15b   : > { %7742 = vmatmul.mubr.bf16.vlgmr.msra.gmra.mxu0 %v4944_v17  ;;  %v9293_v17 = vld [vmem:[%s11023_s5 + $0x394] ss:$8 sps:$4 sm:$0xff]  }
 0x15c   : > { %7783 = vmatmul.mubr.bf16.vlgmr.msra.gmra.mxu1 %v4966_v21  ;;  %7792 = vmatpush1.bf16.msra.mxu0 %v9204_v22  ;;  %v9299_v21 = vld [vmem:[%s11023_s5 + $0x384] ss:$8 sps:$4 sm:$0xff]   ;;  %v9294_v22 = vld [vmem:[%s11023_s5 + $0x280] ss:$8 sps:$4 sm:$0xff]  }
 0x15d   : > { %7833 = vmatpush1.bf16.msra.mxu1 %v9207_v23  ;;  %7793 = vmatprep.subr.bf16.mxu0 %v9212_v24  ;;  %v9297_v23 = vld [vmem:[%s11023_s5 + $0x380] ss:$8 sps:$4 sm:$0xff]   ;;  %v4951_v24 = vrot.slane %v11096_v8, %v11030_v10  ;;  %v9308_v8 = vld [vmem:[%s11023_s5 + $0x464] ss:$8 sps:$4 sm:$0xff]  }
 0x15e   : > { %7834 = vmatprep.subr.bf16.mxu1 %v9215_v14  ;;  %7823 = vmatprep.mubr.bf16.mxu0 %v4965_v20  ;;  %v9296_v20 = vld [vmem:[%s11023_s5 + $0x284] ss:$8 sps:$4 sm:$0xff]   ;;  %v9302_v14 = vld [vmem:[%s11023_s5 + $0x474] ss:$8 sps:$4 sm:$0xff]  }
 0x15f   : > { %7864 = vmatprep.mubr.bf16.mxu1 %v4969_v25  ;;  %v9305_v25 = vld [vmem:[%s11023_s5 + $0x574] ss:$8 sps:$4 sm:$0xff]  }
 0x160   : > { %7794 = vmatpush1.bf16.msra.mxu0 %v9210_v26  ;;  %v4967_v26 = vcombine.high %v4951_v24, %v4951_v24 }
 0x161   : > { %7835 = vmatpush1.bf16.msra.mxu1 %v9213_v27  ;;  %7795 = vmatprep.subr.bf16.mxu0 %v9218_v28  ;;  %v9300_v27 = vld [vmem:[%s11023_s5 + $0x470] ss:$8 sps:$4 sm:$0xff]  }
 0x162   : > { %7836 = vmatprep.subr.bf16.mxu1 %v9221_v29  ;;  %v9303_v28 = vld [vmem:[%s11023_s5 + $0x570] ss:$8 sps:$4 sm:$0xff]   ;;  %v11182_v29 = vld [vmem:[%s11685_s0 + $0x8] sm:$0xff] }
 0x164   : > { %7796 = vmatpush1.bf16.msra.mxu0 %v9216_v30  ;;  %v9311_v30 = vld [vmem:[%s11023_s5 + $0x564] ss:$8 sps:$4 sm:$0xff]  }
 0x165   : > { %7837 = vmatpush1.bf16.msra.mxu1 %v9219_v31  ;;  %7797 = vmatprep.subr.bf16.mxu0 %v9224_v32  ;;  %v11188_v31 = vrot.slane %v11182_v29, %v11030_v10  ;;  %v9306_v32 = vld [vmem:[%s11023_s5 + $0x460] ss:$8 sps:$4 sm:$0xff]  }
 0x166   : > { %7838 = vmatprep.subr.bf16.mxu1 %v9227_v33 }
 0x167   : > { %v4985_v33 = vcombine.high %v11188_v31, %v11188_v31 }
 0x168   : > { %7798 = vmatpush1.bf16.msra.mxu0 %v9222_v34  ;;  %v9309_v34 = vld [vmem:[%s11023_s5 + $0x560] ss:$8 sps:$4 sm:$0xff]  }
 0x169   : > { %7839 = vmatpush1.bf16.msra.mxu1 %v9225_v35  ;;  %7799 = vmatprep.subr.bf16.mxu0 %v9230_v36  ;;  %v9314_v35 = vld [vmem:[%s11023_s5 + $0x454] ss:$8 sps:$4 sm:$0xff]  }
 0x16a   : > { %7840 = vmatprep.subr.bf16.mxu1 %v9233_v37  ;;  %v9317_v36 = vld [vmem:[%s11023_s5 + $0x554] ss:$8 sps:$4 sm:$0xff]   ;;  %v5007_v37 = vrot.slane %v4985_v33, %v11030_v10  ;;  %v9390_v33 = vld [vmem:[%s11023_s5 + $0x480] ss:$8 sps:$4 sm:$0xff]  }
 0x16c   : > { %7800 = vmatpush1.bf16.msra.mxu0 %v9228_v38  ;;  %v9312_v38 = vld [vmem:[%s11023_s5 + $0x450] ss:$8 sps:$4 sm:$0xff]  }
 0x16d   : > { %7841 = vmatpush1.bf16.msra.mxu1 %v9231_v39  ;;  %7801 = vmatprep.subr.bf16.mxu0 %v9236_v40  ;;  %v5017_v39 = vcombine.high %v5007_v37, %v5007_v37  ;;  %v9315_v40 = vld [vmem:[%s11023_s5 + $0x550] ss:$8 sps:$4 sm:$0xff]  }
 0x16e   : > { %7842 = vmatprep.subr.bf16.mxu1 %v9239_v41  ;;  %v9320_v41 = vld [vmem:[%s11023_s5 + $0x444] ss:$8 sps:$4 sm:$0xff]  }
 0x170   : > { %7802 = vmatpush1.bf16.msra.mxu0 %v9234_v42  ;;  %v9323_v42 = vld [vmem:[%s11023_s5 + $0x544] ss:$8 sps:$4 sm:$0xff]  }
 0x171   : > { %7843 = vmatpush1.bf16.msra.mxu1 %v9237_v43  ;;  %7803 = vmatprep.subr.bf16.mxu0 %v9242_v44  ;;  %v9318_v43 = vld [vmem:[%s11023_s5 + $0x440] ss:$8 sps:$4 sm:$0xff]  }
 0x172   : > { %7844 = vmatprep.subr.bf16.mxu1 %v9245_v45  ;;  %v9321_v44 = vld [vmem:[%s11023_s5 + $0x540] ss:$8 sps:$4 sm:$0xff]   ;;  %v9326_v45 = vld [vmem:[%s11023_s5 + $0x434] ss:$8 sps:$4 sm:$0xff]  }
 0x174   : > { %7804 = vmatpush1.bf16.msra.mxu0 %v9240_v46  ;;  %v9329_v46 = vld [vmem:[%s11023_s5 + $0x534] ss:$8 sps:$4 sm:$0xff]  }
 0x175   : > { %7845 = vmatpush1.bf16.msra.mxu1 %v9243_v47  ;;  %7805 = vmatprep.subr.bf16.mxu0 %v9248_v48  ;;  %v9324_v47 = vld [vmem:[%s11023_s5 + $0x430] ss:$8 sps:$4 sm:$0xff]  }
 0x176   : > { %7846 = vmatprep.subr.bf16.mxu1 %v9251_v49  ;;  %v9327_v48 = vld [vmem:[%s11023_s5 + $0x530] ss:$8 sps:$4 sm:$0xff]   ;;  %v9332_v49 = vld [vmem:[%s11023_s5 + $0x424] ss:$8 sps:$4 sm:$0xff]  }
 0x178   : > { %7806 = vmatpush1.bf16.msra.mxu0 %v9246_v50  ;;  %v9335_v50 = vld [vmem:[%s11023_s5 + $0x524] ss:$8 sps:$4 sm:$0xff]  }
 0x179   : > { %7847 = vmatpush1.bf16.msra.mxu1 %v9249_v51  ;;  %7807 = vmatprep.subr.bf16.mxu0 %v9254_v52  ;;  %v9330_v51 = vld [vmem:[%s11023_s5 + $0x420] ss:$8 sps:$4 sm:$0xff]  }
 0x17a   : > { %7848 = vmatprep.subr.bf16.mxu1 %v9257_v53  ;;  %v9333_v52 = vld [vmem:[%s11023_s5 + $0x520] ss:$8 sps:$4 sm:$0xff]   ;;  %v9338_v53 = vld [vmem:[%s11023_s5 + $0x414] ss:$8 sps:$4 sm:$0xff]  }
 0x17c   : > { %7808 = vmatpush2.bf16.msra.mxu0 %v9252_v54  ;;  %v9341_v54 = vld [vmem:[%s11023_s5 + $0x514] ss:$8 sps:$4 sm:$0xff]  }
 0x17d   : > { %7849 = vmatpush2.bf16.msra.mxu1 %v9255_v55  ;;  %7809 = vmatprep.subr.bf16.mxu0 %v9260_v56  ;;  %v9336_v55 = vld [vmem:[%s11023_s5 + $0x410] ss:$8 sps:$4 sm:$0xff]  }
 0x17e   : > { %7850 = vmatprep.subr.bf16.mxu1 %v9263_v57  ;;  %v9339_v56 = vld [vmem:[%s11023_s5 + $0x510] ss:$8 sps:$4 sm:$0xff]   ;;  %v9344_v57 = vld [vmem:[%s11023_s5 + $0x404] ss:$8 sps:$4 sm:$0xff]  }
 0x180   : > { %7810 = vmatpush2.bf16.msra.mxu0 %v9258_v58  ;;  %v9347_v58 = vld [vmem:[%s11023_s5 + $0x504] ss:$8 sps:$4 sm:$0xff]  }
 0x181   : > { %7851 = vmatpush2.bf16.msra.mxu1 %v9261_v59  ;;  %7811 = vmatprep.subr.bf16.mxu0 %v9266_v60  ;;  %v9342_v59 = vld [vmem:[%s11023_s5 + $0x400] ss:$8 sps:$4 sm:$0xff]  }
 0x182   : > { %7852 = vmatprep.subr.bf16.mxu1 %v9269_v61  ;;  %v9345_v60 = vld [vmem:[%s11023_s5 + $0x500] ss:$8 sps:$4 sm:$0xff]   ;;  %v9350_v61 = vld [vmem:[%s11023_s5 + $0x4f4] ss:$8 sps:$4 sm:$0xff]  }
 0x184   : > { %7812 = vmatpush2.bf16.msra.mxu0 %v9264_v62  ;;  %v9353_v62 = vld [vmem:[%s11023_s5 + $0x5f4] ss:$8 sps:$4 sm:$0xff]  }
 0x185   : > { %7853 = vmatpush2.bf16.msra.mxu1 %v9267_v63  ;;  %7813 = vmatprep.subr.bf16.mxu0 %v9272_v0  ;;  %v9348_v63 = vld [vmem:[%s11023_s5 + $0x4f0] ss:$8 sps:$4 sm:$0xff]  }
 0x186   : > { %7854 = vmatprep.subr.bf16.mxu1 %v9275_v1  ;;  %v9351_v0 = vld [vmem:[%s11023_s5 + $0x5f0] ss:$8 sps:$4 sm:$0xff]   ;;  %v9356_v1 = vld [vmem:[%s11023_s5 + $0x4e4] ss:$8 sps:$4 sm:$0xff]  }
 0x188   : > { %7814 = vmatpush2.bf16.msra.mxu0 %v9270_v2  ;;  %v9359_v2 = vld [vmem:[%s11023_s5 + $0x5e4] ss:$8 sps:$4 sm:$0xff]  }
 0x189   : > { %7855 = vmatpush2.bf16.msra.mxu1 %v9273_v5  ;;  %7815 = vmatprep.subr.bf16.mxu0 %v9278_v6  ;;  %v9354_v5 = vld [vmem:[%s11023_s5 + $0x4e0] ss:$8 sps:$4 sm:$0xff]  }
 0x18a   : > { %7856 = vmatprep.subr.bf16.mxu1 %v9281_v7  ;;  %v9357_v6 = vld [vmem:[%s11023_s5 + $0x5e0] ss:$8 sps:$4 sm:$0xff]   ;;  %v9362_v7 = vld [vmem:[%s11023_s5 + $0x4d4] ss:$8 sps:$4 sm:$0xff]  }
 0x18c   : > { %7816 = vmatpush2.bf16.msra.mxu0 %v9276_v9  ;;  %v9365_v9 = vld [vmem:[%s11023_s5 + $0x5d4] ss:$8 sps:$4 sm:$0xff]  }
 0x18d   : > { %7857 = vmatpush2.bf16.msra.mxu1 %v9279_v11  ;;  %7817 = vmatprep.subr.bf16.mxu0 %v9284_v3  ;;  %v9360_v11 = vld [vmem:[%s11023_s5 + $0x4d0] ss:$8 sps:$4 sm:$0xff]  }
 0x18e   : > { %7858 = vmatprep.subr.bf16.mxu1 %v9287_v12  ;;  %v9363_v3 = vld [vmem:[%s11023_s5 + $0x5d0] ss:$8 sps:$4 sm:$0xff]   ;;  %v9368_v12 = vld [vmem:[%s11023_s5 + $0x4c4] ss:$8 sps:$4 sm:$0xff]  }
 0x190   : > { %7818 = vmatpush2.bf16.msra.mxu0 %v9282_v13  ;;  %v9371_v13 = vld [vmem:[%s11023_s5 + $0x5c4] ss:$8 sps:$4 sm:$0xff]  }
 0x191   : > { %7859 = vmatpush2.bf16.msra.mxu1 %v9285_v15  ;;  %7819 = vmatprep.subr.bf16.mxu0 %v9290_v16  ;;  %v9366_v15 = vld [vmem:[%s11023_s5 + $0x4c0] ss:$8 sps:$4 sm:$0xff]  }
 0x192   : > { %7860 = vmatprep.subr.bf16.mxu1 %v9293_v17  ;;  %v9369_v16 = vld [vmem:[%s11023_s5 + $0x5c0] ss:$8 sps:$4 sm:$0xff]   ;;  %v9374_v17 = vld [vmem:[%s11023_s5 + $0x4b4] ss:$8 sps:$4 sm:$0xff]  }
 0x194   : > { %7820 = vmatpush2.bf16.msra.mxu0 %v9288_v18  ;;  %v9377_v18 = vld [vmem:[%s11023_s5 + $0x5b4] ss:$8 sps:$4 sm:$0xff]  }
 0x195   : > { %7861 = vmatpush2.bf16.msra.mxu1 %v9291_v19  ;;  %7821 = vmatprep.subr.bf16.mxu0 %v9296_v20  ;;  %v9372_v19 = vld [vmem:[%s11023_s5 + $0x4b0] ss:$8 sps:$4 sm:$0xff]  }
 0x196   : > { %7862 = vmatprep.subr.bf16.mxu1 %v9299_v21  ;;  %v9375_v20 = vld [vmem:[%s11023_s5 + $0x5b0] ss:$8 sps:$4 sm:$0xff]   ;;  %v9380_v21 = vld [vmem:[%s11023_s5 + $0x4a4] ss:$8 sps:$4 sm:$0xff]  }
 0x198   : > { %7822 = vmatpush2.bf16.msra.mxu0 %v9294_v22  ;;  %v9383_v22 = vld [vmem:[%s11023_s5 + $0x5a4] ss:$8 sps:$4 sm:$0xff]  }
 0x199   : > { %7863 = vmatpush2.bf16.msra.mxu1 %v9297_v23  ;;  %7873 = vmatprep.subr.bf16.mxu0 %v9302_v14  ;;  %v4970_v23 = vcombine.high %v11182_v29, %v11182_v29  ;;  %v9381_v14 = vld [vmem:[%s11023_s5 + $0x5a0] ss:$8 sps:$4 sm:$0xff]   ;;  %v9387_v29 = vld [vmem:[%s11023_s5 + $0x590] ss:$8 sps:$4 sm:$0xff]  }
 0x19a   : > { %7914 = vmatprep.subr.bf16.mxu1 %v9305_v25  ;;  %v9386_v25 = vld [vmem:[%s11023_s5 + $0x494] ss:$8 sps:$4 sm:$0xff]  }
 0x19b   : > { %7824 = vmatmul.mubr.bf16.vlgmr.msra.gmra.mxu0 %v4951_v24  ;;  %v9378_v24 = vld [vmem:[%s11023_s5 + $0x4a0] ss:$8 sps:$4 sm:$0xff]  }
 0x19c   : > { %7865 = vmatmul.mubr.bf16.vlgmr.msra.gmra.mxu1 %v4967_v26  ;;  %7874 = vmatpush1.bf16.msra.mxu0 %v9300_v27  ;;  %v9389_v26 = vld [vmem:[%s11023_s5 + $0x594] ss:$8 sps:$4 sm:$0xff]   ;;  %v11248_v27 = vrot.slane %v4970_v23, %v11030_v10  ;;  %v9467_v23 = vld [vmem:[%s11023_s5 + $0x7c4] ss:$8 sps:$4 sm:$0xff]  }
 0x19d   : > { %7915 = vmatpush1.bf16.msra.mxu1 %v9303_v28  ;;  %7875 = vmatprep.subr.bf16.mxu0 %v9308_v8  ;;  %v9384_v28 = vld [vmem:[%s11023_s5 + $0x490] ss:$8 sps:$4 sm:$0xff]   ;;  %v9392_v8 = vld [vmem:[%s11023_s5 + $0x484] ss:$8 sps:$4 sm:$0xff]  }
 0x19e   : > { %7916 = vmatprep.subr.bf16.mxu1 %v9311_v30  ;;  %7905 = vmatprep.mubr.bf16.mxu0 %v5007_v37  ;;  %v9395_v30 = vld [vmem:[%s11023_s5 + $0x584] ss:$8 sps:$4 sm:$0xff]   ;;  %v9401_v37 = vld [vmem:[%s11023_s5 + $0x774] ss:$8 sps:$4 sm:$0xff]  }
 0x19f   : > { %7946 = vmatprep.mubr.bf16.mxu1 %v5017_v39 }
 0x1a0   : > { %7876 = vmatpush1.bf16.msra.mxu0 %v9306_v32  ;;  %v4986_v32 = vcombine.high %v11248_v27, %v11248_v27 }
 0x1a1   : > { %7917 = vmatpush1.bf16.msra.mxu1 %v9309_v34  ;;  %7877 = vmatprep.subr.bf16.mxu0 %v9314_v35  ;;  %v4993_v34 = vrot.slane %v11188_v31, %v11030_v10  ;;  %v9393_v35 = vld [vmem:[%s11023_s5 + $0x580] ss:$8 sps:$4 sm:$0xff]   ;;  %v9399_v31 = vld [vmem:[%s11023_s5 + $0x770] ss:$8 sps:$4 sm:$0xff]  }
 0x1a2   : > { %7918 = vmatprep.subr.bf16.mxu1 %v9317_v36  ;;  %v9398_v36 = vld [vmem:[%s11023_s5 + $0x674] ss:$8 sps:$4 sm:$0xff]  }
 0x1a3   : > { %v5015_v39 = vcombine.high %v4993_v34, %v4993_v34 }
 0x1a4   : > { %7878 = vmatpush1.bf16.msra.mxu0 %v9312_v38  ;;  %v5014_v38 = vrot.slane %v4986_v32, %v11030_v10  ;;  %v11318_v32 = vld [vmem:[%s11685_s0 + $0x10] sm:$0xff] }
 0x1a5   : > { %7919 = vmatpush1.bf16.msra.mxu1 %v9315_v40  ;;  %7879 = vmatprep.subr.bf16.mxu0 %v9320_v41  ;;  %v9396_v40 = vld [vmem:[%s11023_s5 + $0x670] ss:$8 sps:$4 sm:$0xff]   ;;  %v9404_v41 = vld [vmem:[%s11023_s5 + $0x664] ss:$8 sps:$4 sm:$0xff]  }
 0x1a6   : > { %7920 = vmatprep.subr.bf16.mxu1 %v9323_v42  ;;  %v9407_v42 = vld [vmem:[%s11023_s5 + $0x764] ss:$8 sps:$4 sm:$0xff]  }
 0x1a8   : > { %7880 = vmatpush1.bf16.msra.mxu0 %v9318_v43  ;;  %v5018_v43 = vcombine.high %v5014_v38, %v5014_v38 }
 0x1a9   : > { %7921 = vmatpush1.bf16.msra.mxu1 %v9321_v44  ;;  %7881 = vmatprep.subr.bf16.mxu0 %v9326_v45  ;;  %v9402_v44 = vld [vmem:[%s11023_s5 + $0x660] ss:$8 sps:$4 sm:$0xff]  }
 0x1aa   : > { %7922 = vmatprep.subr.bf16.mxu1 %v9329_v46  ;;  %v9405_v45 = vld [vmem:[%s11023_s5 + $0x760] ss:$8 sps:$4 sm:$0xff]   ;;  %v9410_v46 = vld [vmem:[%s11023_s5 + $0x654] ss:$8 sps:$4 sm:$0xff]  }
 0x1ac   : > { %7882 = vmatpush1.bf16.msra.mxu0 %v9324_v47  ;;  %v9413_v47 = vld [vmem:[%s11023_s5 + $0x754] ss:$8 sps:$4 sm:$0xff]  }
 0x1ad   : > { %7923 = vmatpush1.bf16.msra.mxu1 %v9327_v48  ;;  %7883 = vmatprep.subr.bf16.mxu0 %v9332_v49  ;;  %v9408_v48 = vld [vmem:[%s11023_s5 + $0x650] ss:$8 sps:$4 sm:$0xff]  }
 0x1ae   : > { %7924 = vmatprep.subr.bf16.mxu1 %v9335_v50  ;;  %v9411_v49 = vld [vmem:[%s11023_s5 + $0x750] ss:$8 sps:$4 sm:$0xff]   ;;  %v9416_v50 = vld [vmem:[%s11023_s5 + $0x644] ss:$8 sps:$4 sm:$0xff]  }
 0x1b0   : > { %7884 = vmatpush1.bf16.msra.mxu0 %v9330_v51  ;;  %v9419_v51 = vld [vmem:[%s11023_s5 + $0x744] ss:$8 sps:$4 sm:$0xff]  }
 0x1b1   : > { %7925 = vmatpush1.bf16.msra.mxu1 %v9333_v52  ;;  %7885 = vmatprep.subr.bf16.mxu0 %v9338_v53  ;;  %v9414_v52 = vld [vmem:[%s11023_s5 + $0x640] ss:$8 sps:$4 sm:$0xff]  }
 0x1b2   : > { %7926 = vmatprep.subr.bf16.mxu1 %v9341_v54  ;;  %v9417_v53 = vld [vmem:[%s11023_s5 + $0x740] ss:$8 sps:$4 sm:$0xff]   ;;  %v9422_v54 = vld [vmem:[%s11023_s5 + $0x634] ss:$8 sps:$4 sm:$0xff]  }
 0x1b4   : > { %7886 = vmatpush1.bf16.msra.mxu0 %v9336_v55  ;;  %v9425_v55 = vld [vmem:[%s11023_s5 + $0x734] ss:$8 sps:$4 sm:$0xff]  }
 0x1b5   : > { %7927 = vmatpush1.bf16.msra.mxu1 %v9339_v56  ;;  %7887 = vmatprep.subr.bf16.mxu0 %v9344_v57  ;;  %v9420_v56 = vld [vmem:[%s11023_s5 + $0x630] ss:$8 sps:$4 sm:$0xff]  }
 0x1b6   : > { %7928 = vmatprep.subr.bf16.mxu1 %v9347_v58  ;;  %v9423_v57 = vld [vmem:[%s11023_s5 + $0x730] ss:$8 sps:$4 sm:$0xff]   ;;  %v9428_v58 = vld [vmem:[%s11023_s5 + $0x624] ss:$8 sps:$4 sm:$0xff]  }
 0x1b8   : > { %7888 = vmatpush1.bf16.msra.mxu0 %v9342_v59  ;;  %v9431_v59 = vld [vmem:[%s11023_s5 + $0x724] ss:$8 sps:$4 sm:$0xff]  }
 0x1b9   : > { %7929 = vmatpush1.bf16.msra.mxu1 %v9345_v60  ;;  %7889 = vmatprep.subr.bf16.mxu0 %v9350_v61  ;;  %v9426_v60 = vld [vmem:[%s11023_s5 + $0x620] ss:$8 sps:$4 sm:$0xff]  }
 0x1ba   : > { %7930 = vmatprep.subr.bf16.mxu1 %v9353_v62  ;;  %v9429_v61 = vld [vmem:[%s11023_s5 + $0x720] ss:$8 sps:$4 sm:$0xff]   ;;  %v9434_v62 = vld [vmem:[%s11023_s5 + $0x614] ss:$8 sps:$4 sm:$0xff]  }
 0x1bc   : > { %7890 = vmatpush2.bf16.msra.mxu0 %v9348_v63  ;;  %v9437_v63 = vld [vmem:[%s11023_s5 + $0x714] ss:$8 sps:$4 sm:$0xff]  }
 0x1bd   : > { %7931 = vmatpush2.bf16.msra.mxu1 %v9351_v0  ;;  %7891 = vmatprep.subr.bf16.mxu0 %v9356_v1  ;;  %v9432_v0 = vld [vmem:[%s11023_s5 + $0x610] ss:$8 sps:$4 sm:$0xff]  }
 0x1be   : > { %7932 = vmatprep.subr.bf16.mxu1 %v9359_v2  ;;  %v9435_v1 = vld [vmem:[%s11023_s5 + $0x710] ss:$8 sps:$4 sm:$0xff]   ;;  %v9440_v2 = vld [vmem:[%s11023_s5 + $0x604] ss:$8 sps:$4 sm:$0xff]  }
 0x1c0   : > { %7892 = vmatpush2.bf16.msra.mxu0 %v9354_v5  ;;  %v9443_v5 = vld [vmem:[%s11023_s5 + $0x704] ss:$8 sps:$4 sm:$0xff]  }
 0x1c1   : > { %7933 = vmatpush2.bf16.msra.mxu1 %v9357_v6  ;;  %7893 = vmatprep.subr.bf16.mxu0 %v9362_v7  ;;  %v9438_v6 = vld [vmem:[%s11023_s5 + $0x600] ss:$8 sps:$4 sm:$0xff]  }
 0x1c2   : > { %7934 = vmatprep.subr.bf16.mxu1 %v9365_v9  ;;  %v9441_v7 = vld [vmem:[%s11023_s5 + $0x700] ss:$8 sps:$4 sm:$0xff]   ;;  %v9446_v9 = vld [vmem:[%s11023_s5 + $0x6f4] ss:$8 sps:$4 sm:$0xff]  }
 0x1c4   : > { %7894 = vmatpush2.bf16.msra.mxu0 %v9360_v11  ;;  %v9449_v11 = vld [vmem:[%s11023_s5 + $0x7f4] ss:$8 sps:$4 sm:$0xff]  }
 0x1c5   : > { %7935 = vmatpush2.bf16.msra.mxu1 %v9363_v3  ;;  %7895 = vmatprep.subr.bf16.mxu0 %v9368_v12  ;;  %v9444_v3 = vld [vmem:[%s11023_s5 + $0x6f0] ss:$8 sps:$4 sm:$0xff]  }
 0x1c6   : > { %7936 = vmatprep.subr.bf16.mxu1 %v9371_v13  ;;  %v9447_v12 = vld [vmem:[%s11023_s5 + $0x7f0] ss:$8 sps:$4 sm:$0xff]   ;;  %v9452_v13 = vld [vmem:[%s11023_s5 + $0x6e4] ss:$8 sps:$4 sm:$0xff]  }
 0x1c8   : > { %7896 = vmatpush2.bf16.msra.mxu0 %v9366_v15  ;;  %v9455_v15 = vld [vmem:[%s11023_s5 + $0x7e4] ss:$8 sps:$4 sm:$0xff]  }
 0x1c9   : > { %7937 = vmatpush2.bf16.msra.mxu1 %v9369_v16  ;;  %7897 = vmatprep.subr.bf16.mxu0 %v9374_v17  ;;  %v9450_v16 = vld [vmem:[%s11023_s5 + $0x6e0] ss:$8 sps:$4 sm:$0xff]  }
 0x1ca   : > { %7938 = vmatprep.subr.bf16.mxu1 %v9377_v18  ;;  %v9453_v17 = vld [vmem:[%s11023_s5 + $0x7e0] ss:$8 sps:$4 sm:$0xff]   ;;  %v9458_v18 = vld [vmem:[%s11023_s5 + $0x6d4] ss:$8 sps:$4 sm:$0xff]  }
 0x1cc   : > { %7898 = vmatpush2.bf16.msra.mxu0 %v9372_v19  ;;  %v9461_v19 = vld [vmem:[%s11023_s5 + $0x7d4] ss:$8 sps:$4 sm:$0xff]  }
 0x1cd   : > { %7939 = vmatpush2.bf16.msra.mxu1 %v9375_v20  ;;  %7899 = vmatprep.subr.bf16.mxu0 %v9380_v21  ;;  %v9456_v20 = vld [vmem:[%s11023_s5 + $0x6d0] ss:$8 sps:$4 sm:$0xff]  }
 0x1ce   : > { %7940 = vmatprep.subr.bf16.mxu1 %v9383_v22  ;;  %v9459_v21 = vld [vmem:[%s11023_s5 + $0x7d0] ss:$8 sps:$4 sm:$0xff]   ;;  %v9464_v22 = vld [vmem:[%s11023_s5 + $0x6c4] ss:$8 sps:$4 sm:$0xff]  }
 0x1d0   : > { %7900 = vmatpush2.bf16.msra.mxu0 %v9378_v24  ;;  %v9462_v24 = vld [vmem:[%s11023_s5 + $0x6c0] ss:$8 sps:$4 sm:$0xff]  }
 0x1d1   : > { %7941 = vmatpush2.bf16.msra.mxu1 %v9381_v14  ;;  %7901 = vmatprep.subr.bf16.mxu0 %v9386_v25  ;;  %v9465_v14 = vld [vmem:[%s11023_s5 + $0x7c0] ss:$8 sps:$4 sm:$0xff]   ;;  %v9470_v25 = vld [vmem:[%s11023_s5 + $0x6b4] ss:$8 sps:$4 sm:$0xff]  }
 0x1d2   : > { %7942 = vmatprep.subr.bf16.mxu1 %v9389_v26  ;;  %v9473_v26 = vld [vmem:[%s11023_s5 + $0x7b4] ss:$8 sps:$4 sm:$0xff]  }
 0x1d4   : > { %7902 = vmatpush2.bf16.msra.mxu0 %v9384_v28  ;;  %v9468_v28 = vld [vmem:[%s11023_s5 + $0x6b0] ss:$8 sps:$4 sm:$0xff]  }
 0x1d5   : > { %7943 = vmatpush2.bf16.msra.mxu1 %v9387_v29  ;;  %7903 = vmatprep.subr.bf16.mxu0 %v9392_v8  ;;  %v9471_v29 = vld [vmem:[%s11023_s5 + $0x7b0] ss:$8 sps:$4 sm:$0xff]   ;;  %v9476_v8 = vld [vmem:[%s11023_s5 + $0x6a4] ss:$8 sps:$4 sm:$0xff]  }
 0x1d6   : > { %7944 = vmatprep.subr.bf16.mxu1 %v9395_v30  ;;  %v9479_v30 = vld [vmem:[%s11023_s5 + $0x7a4] ss:$8 sps:$4 sm:$0xff]  }
 0x1d8   : > { %7904 = vmatpush2.bf16.msra.mxu0 %v9390_v33  ;;  %v9474_v33 = vld [vmem:[%s11023_s5 + $0x6a0] ss:$8 sps:$4 sm:$0xff]  }
 0x1d9   : > { %7945 = vmatpush2.bf16.msra.mxu1 %v9393_v35  ;;  %7955 = vmatprep.subr.bf16.mxu0 %v9398_v36  ;;  %v9482_v35 = vld [vmem:[%s11023_s5 + $0x694] ss:$8 sps:$4 sm:$0xff]  }
 0x1da   : > { %7996 = vmatprep.subr.bf16.mxu1 %v9401_v37  ;;  %v9485_v36 = vld [vmem:[%s11023_s5 + $0x794] ss:$8 sps:$4 sm:$0xff]   ;;  %v11326_v37 = vrot.slane %v11318_v32, %v11030_v10 }
 0x1db   : > { %7906 = vmatmul.mubr.bf16.vlgmr.msra.gmra.mxu0 %v4993_v34  ;;  %v9477_v34 = vld [vmem:[%s11023_s5 + $0x7a0] ss:$8 sps:$4 sm:$0xff]  }
 0x1dc   : > { %7947 = vmatmul.mubr.bf16.vlgmr.msra.gmra.mxu1 %v5015_v39  ;;  %7956 = vmatpush1.bf16.msra.mxu0 %v9396_v40  ;;  %v9483_v39 = vld [vmem:[%s11023_s5 + $0x790] ss:$8 sps:$4 sm:$0xff]   ;;  %v9488_v40 = vld [vmem:[%s11023_s5 + $0x684] ss:$8 sps:$4 sm:$0xff]  }
 0x1dd   : > { %7997 = vmatpush1.bf16.msra.mxu1 %v9399_v31  ;;  %7957 = vmatprep.subr.bf16.mxu0 %v9404_v41  ;;  %v9491_v31 = vld [vmem:[%s11023_s5 + $0x784] ss:$8 sps:$4 sm:$0xff]   ;;  %v5034_v41 = vcombine.high %v11326_v37, %v11326_v37 }
 0x1de   : > { %7998 = vmatprep.subr.bf16.mxu1 %v9407_v42  ;;  %7987 = vmatprep.mubr.bf16.mxu0 %v5014_v38  ;;  %v9480_v38 = vld [vmem:[%s11023_s5 + $0x690] ss:$8 sps:$4 sm:$0xff]   ;;  %v5000_v42 = vrot.slane %v11248_v27, %v11030_v10  ;;  %v9504_v27 = vld [vmem:[%s11023_s5 + $0x964] ss:$8 sps:$4 sm:$0xff]  }
 0x1df   : > { %8028 = vmatprep.mubr.bf16.mxu1 %v5018_v43  ;;  %v9486_v43 = vld [vmem:[%s11023_s5 + $0x680] ss:$8 sps:$4 sm:$0xff]  }
 0x1e0   : > { %7958 = vmatpush1.bf16.msra.mxu0 %v9402_v44  ;;  %v9489_v44 = vld [vmem:[%s11023_s5 + $0x780] ss:$8 sps:$4 sm:$0xff]  }
 0x1e1   : > { %7999 = vmatpush1.bf16.msra.mxu1 %v9405_v45  ;;  %7959 = vmatprep.subr.bf16.mxu0 %v9410_v46  ;;  %v9495_v45 = vld [vmem:[%s11023_s5 + $0x874] ss:$8 sps:$4 sm:$0xff]  }
 0x1e2   : > { %8000 = vmatprep.subr.bf16.mxu1 %v9413_v47  ;;  %v9498_v46 = vld [vmem:[%s11023_s5 + $0x974] ss:$8 sps:$4 sm:$0xff]   ;;  %v5056_v47 = vrot.slane %v5034_v41, %v11030_v10  ;;  %v9556_v41 = vld [vmem:[%s11023_s5 + $0x9d0] ss:$8 sps:$4 sm:$0xff]  }
 0x1e4   : > { %7960 = vmatpush1.bf16.msra.mxu0 %v9408_v48  ;;  %v5016_v48 = vcombine.high %v5000_v42, %v5000_v42 }
 0x1e5   : > { %8001 = vmatpush1.bf16.msra.mxu1 %v9411_v49  ;;  %7961 = vmatprep.subr.bf16.mxu0 %v9416_v50  ;;  %v9493_v49 = vld [vmem:[%s11023_s5 + $0x870] ss:$8 sps:$4 sm:$0xff]  }
 0x1e6   : > { %8002 = vmatprep.subr.bf16.mxu1 %v9419_v51  ;;  %v9496_v50 = vld [vmem:[%s11023_s5 + $0x970] ss:$8 sps:$4 sm:$0xff]   ;;  %v9501_v51 = vld [vmem:[%s11023_s5 + $0x864] ss:$8 sps:$4 sm:$0xff]  }
 0x1e8   : > { %7962 = vmatpush1.bf16.msra.mxu0 %v9414_v52  ;;  %v9499_v52 = vld [vmem:[%s11023_s5 + $0x860] ss:$8 sps:$4 sm:$0xff]  }
 0x1e9   : > { %8003 = vmatpush1.bf16.msra.mxu1 %v9417_v53  ;;  %7963 = vmatprep.subr.bf16.mxu0 %v9422_v54  ;;  %v5066_v53 = vcombine.high %v5056_v47, %v5056_v47 }
 0x1ea   : > { %8004 = vmatprep.subr.bf16.mxu1 %v9425_v55 }
 0x1ec   : > { %7964 = vmatpush1.bf16.msra.mxu0 %v9420_v56  ;;  %v9502_v56 = vld [vmem:[%s11023_s5 + $0x960] ss:$8 sps:$4 sm:$0xff]  }
 0x1ed   : > { %8005 = vmatpush1.bf16.msra.mxu1 %v9423_v57  ;;  %7965 = vmatprep.subr.bf16.mxu0 %v9428_v58 }
 0x1ee   : > { %8006 = vmatprep.subr.bf16.mxu1 %v9431_v59 }
 0x1f0   : > { %7966 = vmatpush1.bf16.msra.mxu0 %v9426_v60  ;;  %v9507_v60 = vld [vmem:[%s11023_s5 + $0x854] ss:$8 sps:$4 sm:$0xff]  }
 0x1f1   : > { %8007 = vmatpush1.bf16.msra.mxu1 %v9429_v61  ;;  %7967 = vmatprep.subr.bf16.mxu0 %v9434_v62  ;;  %v9510_v61 = vld [vmem:[%s11023_s5 + $0x954] ss:$8 sps:$4 sm:$0xff]  }
 0x1f2   : > { %8008 = vmatprep.subr.bf16.mxu1 %v9437_v63  ;;  %v9505_v63 = vld [vmem:[%s11023_s5 + $0x850] ss:$8 sps:$4 sm:$0xff]  }
 0x1f4   : > { %7968 = vmatpush1.bf16.msra.mxu0 %v9432_v0  ;;  %v9508_v0 = vld [vmem:[%s11023_s5 + $0x950] ss:$8 sps:$4 sm:$0xff]  }
 0x1f5   : > { %8009 = vmatpush1.bf16.msra.mxu1 %v9435_v1  ;;  %7969 = vmatprep.subr.bf16.mxu0 %v9440_v2 }
 0x1f6   : > { %8010 = vmatprep.subr.bf16.mxu1 %v9443_v5 }
 0x1f8   : > { %7970 = vmatpush1.bf16.msra.mxu0 %v9438_v6 }
 0x1f9   : > { %8011 = vmatpush1.bf16.msra.mxu1 %v9441_v7  ;;  %7971 = vmatprep.subr.bf16.mxu0 %v9446_v9  ;;  %v9513_v7 = vld [vmem:[%s11023_s5 + $0x844] ss:$8 sps:$4 sm:$0xff]  }
 0x1fa   : > { %8012 = vmatprep.subr.bf16.mxu1 %v9449_v11  ;;  %v9516_v9 = vld [vmem:[%s11023_s5 + $0x944] ss:$8 sps:$4 sm:$0xff]   ;;  %v9511_v11 = vld [vmem:[%s11023_s5 + $0x840] ss:$8 sps:$4 sm:$0xff]  }
 0x1fc   : > { %7972 = vmatpush2.bf16.msra.mxu0 %v9444_v3  ;;  %v9514_v3 = vld [vmem:[%s11023_s5 + $0x940] ss:$8 sps:$4 sm:$0xff]  }
 0x1fd   : > { %8013 = vmatpush2.bf16.msra.mxu1 %v9447_v12  ;;  %7973 = vmatprep.subr.bf16.mxu0 %v9452_v13  ;;  %v9519_v12 = vld [vmem:[%s11023_s5 + $0x834] ss:$8 sps:$4 sm:$0xff]  }
 0x1fe   : > { %8014 = vmatprep.subr.bf16.mxu1 %v9455_v15  ;;  %v9522_v13 = vld [vmem:[%s11023_s5 + $0x934] ss:$8 sps:$4 sm:$0xff]   ;;  %v9517_v15 = vld [vmem:[%s11023_s5 + $0x830] ss:$8 sps:$4 sm:$0xff]  }
 0x200   : > { %7974 = vmatpush2.bf16.msra.mxu0 %v9450_v16  ;;  %v9520_v16 = vld [vmem:[%s11023_s5 + $0x930] ss:$8 sps:$4 sm:$0xff]  }
 0x201   : > { %8015 = vmatpush2.bf16.msra.mxu1 %v9453_v17  ;;  %7975 = vmatprep.subr.bf16.mxu0 %v9458_v18  ;;  %v9525_v17 = vld [vmem:[%s11023_s5 + $0x824] ss:$8 sps:$4 sm:$0xff]  }
 0x202   : > { %8016 = vmatprep.subr.bf16.mxu1 %v9461_v19  ;;  %v9528_v18 = vld [vmem:[%s11023_s5 + $0x924] ss:$8 sps:$4 sm:$0xff]   ;;  %v9523_v19 = vld [vmem:[%s11023_s5 + $0x820] ss:$8 sps:$4 sm:$0xff]  }
 0x204   : > { %7976 = vmatpush2.bf16.msra.mxu0 %v9456_v20  ;;  %v9526_v20 = vld [vmem:[%s11023_s5 + $0x920] ss:$8 sps:$4 sm:$0xff]  }
 0x205   : > { %8017 = vmatpush2.bf16.msra.mxu1 %v9459_v21  ;;  %7977 = vmatprep.subr.bf16.mxu0 %v9464_v22  ;;  %v9531_v21 = vld [vmem:[%s11023_s5 + $0x814] ss:$8 sps:$4 sm:$0xff]  }
 0x206   : > { %8018 = vmatprep.subr.bf16.mxu1 %v9467_v23  ;;  %v9534_v22 = vld [vmem:[%s11023_s5 + $0x914] ss:$8 sps:$4 sm:$0xff]   ;;  %v9529_v23 = vld [vmem:[%s11023_s5 + $0x810] ss:$8 sps:$4 sm:$0xff]  }
 0x208   : > { %7978 = vmatpush2.bf16.msra.mxu0 %v9462_v24  ;;  %v9532_v24 = vld [vmem:[%s11023_s5 + $0x910] ss:$8 sps:$4 sm:$0xff]  }
 0x209   : > { %8019 = vmatpush2.bf16.msra.mxu1 %v9465_v14  ;;  %7979 = vmatprep.subr.bf16.mxu0 %v9470_v25  ;;  %v9537_v14 = vld [vmem:[%s11023_s5 + $0x804] ss:$8 sps:$4 sm:$0xff]  }
 0x20a   : > { %8020 = vmatprep.subr.bf16.mxu1 %v9473_v26  ;;  %v9540_v25 = vld [vmem:[%s11023_s5 + $0x904] ss:$8 sps:$4 sm:$0xff]   ;;  %v9535_v26 = vld [vmem:[%s11023_s5 + $0x800] ss:$8 sps:$4 sm:$0xff]  }
 0x20c   : > { %7980 = vmatpush2.bf16.msra.mxu0 %v9468_v28  ;;  %v9538_v28 = vld [vmem:[%s11023_s5 + $0x900] ss:$8 sps:$4 sm:$0xff]  }
 0x20d   : > { %8021 = vmatpush2.bf16.msra.mxu1 %v9471_v29  ;;  %7981 = vmatprep.subr.bf16.mxu0 %v9476_v8  ;;  %v9543_v29 = vld [vmem:[%s11023_s5 + $0x8f4] ss:$8 sps:$4 sm:$0xff]  }
 0x20e   : > { %8022 = vmatprep.subr.bf16.mxu1 %v9479_v30  ;;  %v9546_v8 = vld [vmem:[%s11023_s5 + $0x9f4] ss:$8 sps:$4 sm:$0xff]   ;;  %v9541_v30 = vld [vmem:[%s11023_s5 + $0x8f0] ss:$8 sps:$4 sm:$0xff]  }
 0x210   : > { %7982 = vmatpush2.bf16.msra.mxu0 %v9474_v33  ;;  %v9544_v33 = vld [vmem:[%s11023_s5 + $0x9f0] ss:$8 sps:$4 sm:$0xff]  }
 0x211   : > { %8023 = vmatpush2.bf16.msra.mxu1 %v9477_v34  ;;  %7983 = vmatprep.subr.bf16.mxu0 %v9482_v35  ;;  %v9549_v34 = vld [vmem:[%s11023_s5 + $0x8e4] ss:$8 sps:$4 sm:$0xff]  }
 0x212   : > { %8024 = vmatprep.subr.bf16.mxu1 %v9485_v36  ;;  %v9552_v35 = vld [vmem:[%s11023_s5 + $0x9e4] ss:$8 sps:$4 sm:$0xff]   ;;  %v9547_v36 = vld [vmem:[%s11023_s5 + $0x8e0] ss:$8 sps:$4 sm:$0xff]  }
 0x214   : > { %7984 = vmatpush2.bf16.msra.mxu0 %v9480_v38  ;;  %v9550_v38 = vld [vmem:[%s11023_s5 + $0x9e0] ss:$8 sps:$4 sm:$0xff]  }
 0x215   : > { %8025 = vmatpush2.bf16.msra.mxu1 %v9483_v39  ;;  %7985 = vmatprep.subr.bf16.mxu0 %v9488_v40  ;;  %v9555_v39 = vld [vmem:[%s11023_s5 + $0x8d4] ss:$8 sps:$4 sm:$0xff]  }
 0x216   : > { %8026 = vmatprep.subr.bf16.mxu1 %v9491_v31  ;;  %v9558_v40 = vld [vmem:[%s11023_s5 + $0x9d4] ss:$8 sps:$4 sm:$0xff]   ;;  %v9553_v31 = vld [vmem:[%s11023_s5 + $0x8d0] ss:$8 sps:$4 sm:$0xff]  }
 0x218   : > { %7986 = vmatpush2.bf16.msra.mxu0 %v9486_v43  ;;  %v9564_v43 = vld [vmem:[%s11023_s5 + $0x9c4] ss:$8 sps:$4 sm:$0xff]  }
 0x219   : > { %8027 = vmatpush2.bf16.msra.mxu1 %v9489_v44  ;;  %8037 = vmatprep.subr.bf16.mxu0 %v9495_v45  ;;  %v9559_v44 = vld [vmem:[%s11023_s5 + $0x8c0] ss:$8 sps:$4 sm:$0xff]  }
 0x21a   : > { %8078 = vmatprep.subr.bf16.mxu1 %v9498_v46  ;;  %v9562_v45 = vld [vmem:[%s11023_s5 + $0x9c0] ss:$8 sps:$4 sm:$0xff]   ;;  %v9567_v46 = vld [vmem:[%s11023_s5 + $0x8b4] ss:$8 sps:$4 sm:$0xff]  }
 0x21b   : > { %v7743_v54 = vpop.f32.mrf.mxu0  ;;  %7988 = vmatmul.mubr.bf16.vlgmr.msra.gmra.mxu0 %v5000_v42  ;;  %v9561_v42 = vld [vmem:[%s11023_s5 + $0x8c4] ss:$8 sps:$4 sm:$0xff]  }
 0x21c   : > { %v7784_v55 = vpop.f32.mrf.mxu1  ;;  %8029 = vmatmul.mubr.bf16.vlgmr.msra.gmra.mxu1 %v5016_v48  ;;  %8038 = vmatpush1.bf16.msra.mxu0 %v9493_v49  ;;  %v9565_v48 = vld [vmem:[%s11023_s5 + $0x8b0] ss:$8 sps:$4 sm:$0xff]  }
 0x21d   : > { %v11347_v57 = vadd.f32 %v7784_v55, %v7743_v54  ;;  %8079 = vmatpush1.bf16.msra.mxu1 %v9496_v50  ;;  %v7745_v58 = vpop.f32.mrf.mxu0  ;;  %8039 = vmatprep.subr.bf16.mxu0 %v9501_v51  ;;  %v9568_v49 = vld [vmem:[%s11023_s5 + $0x9b0] ss:$8 sps:$4 sm:$0xff]   ;;  %v9573_v50 = vld [vmem:[%s11023_s5 + $0x8a4] ss:$8 sps:$4 sm:$0xff]   ;;  %v9579_v54 = vld [vmem:[%s11023_s5 + $0x894] ss:$8 sps:$4 sm:$0xff]  }
 0x21e   : > { %v7786_v59 = vpop.f32.mrf.mxu1  ;;  %8080 = vmatprep.subr.bf16.mxu1 %v9504_v27  ;;  %8069 = vmatprep.mubr.bf16.mxu0 %v5056_v47  ;;  %v9570_v47 = vld [vmem:[%s11023_s5 + $0x9b4] ss:$8 sps:$4 sm:$0xff]   ;;  %v9576_v51 = vld [vmem:[%s11023_s5 + $0x9a4] ss:$8 sps:$4 sm:$0xff]   ;;  %v5019_v27 = vcombine.high %v11318_v32, %v11318_v32  ;;  %v9577_v32 = vld [vmem:[%s11023_s5 + $0x890] ss:$8 sps:$4 sm:$0xff]  }
 0x21f   : > { %v11351_v62 = vadd.f32 %v7786_v59, %v7745_v58  ;;  %8110 = vmatprep.mubr.bf16.mxu1 %v5066_v53  ;;  %v7747_v1 = vpop.f32.mrf.mxu0  ;;  %v9574_v53 = vld [vmem:[%s11023_s5 + $0x9a0] ss:$8 sps:$4 sm:$0xff]   ;;  %v9582_v55 = vld [vmem:[%s11023_s5 + $0x994] ss:$8 sps:$4 sm:$0xff]   ;;  %v9580_v58 = vld [vmem:[%s11023_s5 + $0x990] ss:$8 sps:$4 sm:$0xff]  }
 0x220   : > { %v7788_v2 = vpop.f32.mrf.mxu1  ;;  %8040 = vmatpush1.bf16.msra.mxu0 %v9499_v52  ;;  %v9571_v52 = vld [vmem:[%s11023_s5 + $0x8a0] ss:$8 sps:$4 sm:$0xff]   ;;  %v9585_v59 = vld [vmem:[%s11023_s5 + $0x884] ss:$8 sps:$4 sm:$0xff]  }
 0x221   : > { %8081 = vmatpush1.bf16.msra.mxu1 %v9502_v56  ;;  %v7748_v5 = vpop.f32.mrf.mxu0  ;;  %8041 = vmatprep.subr.bf16.mxu0 %v9507_v60  ;;  %v11404_v56 = vrot.slane %v5019_v27, %v11030_v10  ;;  %v9588_v60 = vld [vmem:[%s11023_s5 + $0x984] ss:$8 sps:$4 sm:$0xff]   ;;  %v9586_v1 = vld [vmem:[%s11023_s5 + $0x980] ss:$8 sps:$4 sm:$0xff]   ;;  %v9591_v2 = vld [vmem:[%s11023_s5 + $0xa74] ss:$8 sps:$4 sm:$0xff]  }
 0x222   : > { %v7789_v6 = vpop.f32.mrf.mxu1  ;;  %8082 = vmatprep.subr.bf16.mxu1 %v9510_v61  ;;  %v9594_v5 = vld [vmem:[%s11023_s5 + $0xb74] ss:$8 sps:$4 sm:$0xff]  }
 0x223   : > { %v5035_v61 = vcombine.high %v11404_v56, %v11404_v56  ;;  %v9589_v6 = vld [vmem:[%s11023_s5 + $0xa70] ss:$8 sps:$4 sm:$0xff]   ;;  %v9642_v27 = vld [vmem:[%s11023_s5 + $0xbf4] ss:$8 sps:$4 sm:$0xff]  }
 0x224   : > { %8042 = vmatpush1.bf16.msra.mxu0 %v9505_v63  ;;  %v5042_v63 = vrot.slane %v11326_v37, %v11030_v10  ;;  %v9597_v37 = vld [vmem:[%s11023_s5 + $0xa64] ss:$8 sps:$4 sm:$0xff]  }
 0x225   : > { %8083 = vmatpush1.bf16.msra.mxu1 %v9508_v0  ;;  %8043 = vmatprep.subr.bf16.mxu0 %v9513_v7  ;;  %v9583_v0 = vld [vmem:[%s11023_s5 + $0x880] ss:$8 sps:$4 sm:$0xff]   ;;  %v9592_v7 = vld [vmem:[%s11023_s5 + $0xb70] ss:$8 sps:$4 sm:$0xff]  }
 0x226   : > { %8084 = vmatprep.subr.bf16.mxu1 %v9516_v9  ;;  %v5063_v9 = vrot.slane %v5035_v61, %v11030_v10  ;;  %v9649_v61 = vld [vmem:[%s11023_s5 + $0xad0] ss:$8 sps:$4 sm:$0xff]  }
 0x228   : > { %8044 = vmatpush1.bf16.msra.mxu0 %v9511_v11  ;;  %v5064_v11 = vcombine.high %v5042_v63, %v5042_v63 }
 0x229   : > { %8085 = vmatpush1.bf16.msra.mxu1 %v9514_v3  ;;  %8045 = vmatprep.subr.bf16.mxu0 %v9519_v12  ;;  %v9600_v3 = vld [vmem:[%s11023_s5 + $0xb64] ss:$8 sps:$4 sm:$0xff]   ;;  %v5067_v12 = vcombine.high %v5063_v9, %v5063_v9 }
 0x22a   : > { %8086 = vmatprep.subr.bf16.mxu1 %v9522_v13 }
 0x22c   : > { %8046 = vmatpush1.bf16.msra.mxu0 %v9517_v15 }
 0x22d   : > { %8087 = vmatpush1.bf16.msra.mxu1 %v9520_v16  ;;  %8047 = vmatprep.subr.bf16.mxu0 %v9525_v17  ;;  %v9595_v17 = vld [vmem:[%s11023_s5 + $0xa60] ss:$8 sps:$4 sm:$0xff]  }
 0x22e   : > { %8088 = vmatprep.subr.bf16.mxu1 %v9528_v18  ;;  %v9598_v18 = vld [vmem:[%s11023_s5 + $0xb60] ss:$8 sps:$4 sm:$0xff]  }
 0x230   : > { %8048 = vmatpush1.bf16.msra.mxu0 %v9523_v19 }
 0x231   : > { %8089 = vmatpush1.bf16.msra.mxu1 %v9526_v20  ;;  %8049 = vmatprep.subr.bf16.mxu0 %v9531_v21  ;;  %v9603_v21 = vld [vmem:[%s11023_s5 + $0xa54] ss:$8 sps:$4 sm:$0xff]  }
 0x232   : > { %8090 = vmatprep.subr.bf16.mxu1 %v9534_v22  ;;  %v9606_v22 = vld [vmem:[%s11023_s5 + $0xb54] ss:$8 sps:$4 sm:$0xff]  }
 0x234   : > { %8050 = vmatpush1.bf16.msra.mxu0 %v9529_v23 }
 0x235   : > { %8091 = vmatpush1.bf16.msra.mxu1 %v9532_v24  ;;  %8051 = vmatprep.subr.bf16.mxu0 %v9537_v14 }
 0x236   : > { %8092 = vmatprep.subr.bf16.mxu1 %v9540_v25 }
 0x238   : > { %8052 = vmatpush1.bf16.msra.mxu0 %v9535_v26  ;;  %v9601_v26 = vld [vmem:[%s11023_s5 + $0xa50] ss:$8 sps:$4 sm:$0xff]  }
 0x239   : > { %8093 = vmatpush1.bf16.msra.mxu1 %v9538_v28  ;;  %8053 = vmatprep.subr.bf16.mxu0 %v9543_v29  ;;  %v9604_v28 = vld [vmem:[%s11023_s5 + $0xb50] ss:$8 sps:$4 sm:$0xff]  }
 0x23a   : > { %8094 = vmatprep.subr.bf16.mxu1 %v9546_v8 }
 0x23c   : > { %8054 = vmatpush2.bf16.msra.mxu0 %v9541_v30  ;;  %v9612_v30 = vld [vmem:[%s11023_s5 + $0xb44] ss:$8 sps:$4 sm:$0xff]  }
 0x23d   : > { %8095 = vmatpush2.bf16.msra.mxu1 %v9544_v33  ;;  %8055 = vmatprep.subr.bf16.mxu0 %v9549_v34  ;;  %v9607_v33 = vld [vmem:[%s11023_s5 + $0xa40] ss:$8 sps:$4 sm:$0xff]  }
 0x23e   : > { %8096 = vmatprep.subr.bf16.mxu1 %v9552_v35  ;;  %v9610_v34 = vld [vmem:[%s11023_s5 + $0xb40] ss:$8 sps:$4 sm:$0xff]   ;;  %v9615_v35 = vld [vmem:[%s11023_s5 + $0xa34] ss:$8 sps:$4 sm:$0xff]  }
 0x240   : > { %8056 = vmatpush2.bf16.msra.mxu0 %v9547_v36  ;;  %v9618_v36 = vld [vmem:[%s11023_s5 + $0xb34] ss:$8 sps:$4 sm:$0xff]  }
 0x241   : > { %8097 = vmatpush2.bf16.msra.mxu1 %v9550_v38  ;;  %8057 = vmatprep.subr.bf16.mxu0 %v9555_v39  ;;  %v9613_v38 = vld [vmem:[%s11023_s5 + $0xa30] ss:$8 sps:$4 sm:$0xff]  }
 0x242   : > { %8098 = vmatprep.subr.bf16.mxu1 %v9558_v40  ;;  %v9616_v39 = vld [vmem:[%s11023_s5 + $0xb30] ss:$8 sps:$4 sm:$0xff]   ;;  %v9621_v40 = vld [vmem:[%s11023_s5 + $0xa24] ss:$8 sps:$4 sm:$0xff]  }
 0x244   : > { %8058 = vmatpush2.bf16.msra.mxu0 %v9553_v31  ;;  %v9624_v31 = vld [vmem:[%s11023_s5 + $0xb24] ss:$8 sps:$4 sm:$0xff]  }
 0x245   : > { %8099 = vmatpush2.bf16.msra.mxu1 %v9556_v41  ;;  %8059 = vmatprep.subr.bf16.mxu0 %v9561_v42  ;;  %v9619_v41 = vld [vmem:[%s11023_s5 + $0xa20] ss:$8 sps:$4 sm:$0xff]  }
 0x246   : > { %8100 = vmatprep.subr.bf16.mxu1 %v9564_v43  ;;  %v9622_v42 = vld [vmem:[%s11023_s5 + $0xb20] ss:$8 sps:$4 sm:$0xff]   ;;  %v9627_v43 = vld [vmem:[%s11023_s5 + $0xa14] ss:$8 sps:$4 sm:$0xff]  }
 0x248   : > { %8060 = vmatpush2.bf16.msra.mxu0 %v9559_v44  ;;  %v9630_v44 = vld [vmem:[%s11023_s5 + $0xb14] ss:$8 sps:$4 sm:$0xff]  }
 0x249   : > { %8101 = vmatpush2.bf16.msra.mxu1 %v9562_v45  ;;  %8061 = vmatprep.subr.bf16.mxu0 %v9567_v46  ;;  %v9625_v45 = vld [vmem:[%s11023_s5 + $0xa10] ss:$8 sps:$4 sm:$0xff]  }
 0x24a   : > { %8102 = vmatprep.subr.bf16.mxu1 %v9570_v47  ;;  %v9628_v46 = vld [vmem:[%s11023_s5 + $0xb10] ss:$8 sps:$4 sm:$0xff]   ;;  %v9633_v47 = vld [vmem:[%s11023_s5 + $0xa04] ss:$8 sps:$4 sm:$0xff]  }
 0x24c   : > { %8062 = vmatpush2.bf16.msra.mxu0 %v9565_v48  ;;  %v9636_v48 = vld [vmem:[%s11023_s5 + $0xb04] ss:$8 sps:$4 sm:$0xff]  }
 0x24d   : > { %8103 = vmatpush2.bf16.msra.mxu1 %v9568_v49  ;;  %8063 = vmatprep.subr.bf16.mxu0 %v9573_v50  ;;  %v9631_v49 = vld [vmem:[%s11023_s5 + $0xa00] ss:$8 sps:$4 sm:$0xff]  }
 0x24e   : > { %8104 = vmatprep.subr.bf16.mxu1 %v9576_v51  ;;  %v9634_v50 = vld [vmem:[%s11023_s5 + $0xb00] ss:$8 sps:$4 sm:$0xff]   ;;  %v9639_v51 = vld [vmem:[%s11023_s5 + $0xaf4] ss:$8 sps:$4 sm:$0xff]  }
 0x250   : > { %8064 = vmatpush2.bf16.msra.mxu0 %v9571_v52  ;;  %v9637_v52 = vld [vmem:[%s11023_s5 + $0xaf0] ss:$8 sps:$4 sm:$0xff]  }
 0x251   : > { %8105 = vmatpush2.bf16.msra.mxu1 %v9574_v53  ;;  %8065 = vmatprep.subr.bf16.mxu0 %v9579_v54  ;;  %v9640_v53 = vld [vmem:[%s11023_s5 + $0xbf0] ss:$8 sps:$4 sm:$0xff]   ;;  %v9645_v54 = vld [vmem:[%s11023_s5 + $0xae4] ss:$8 sps:$4 sm:$0xff]  }
 0x252   : > { %8106 = vmatprep.subr.bf16.mxu1 %v9582_v55  ;;  %v9648_v55 = vld [vmem:[%s11023_s5 + $0xbe4] ss:$8 sps:$4 sm:$0xff]  }
 0x254   : > { %8066 = vmatpush2.bf16.msra.mxu0 %v9577_v32  ;;  %v9643_v32 = vld [vmem:[%s11023_s5 + $0xae0] ss:$8 sps:$4 sm:$0xff]  }
 0x255   : > { %8107 = vmatpush2.bf16.msra.mxu1 %v9580_v58  ;;  %8067 = vmatprep.subr.bf16.mxu0 %v9585_v59  ;;  %v9646_v58 = vld [vmem:[%s11023_s5 + $0xbe0] ss:$8 sps:$4 sm:$0xff]   ;;  %v9651_v59 = vld [vmem:[%s11023_s5 + $0xad4] ss:$8 sps:$4 sm:$0xff]  }
 0x256   : > { %8108 = vmatprep.subr.bf16.mxu1 %v9588_v60  ;;  %v9654_v60 = vld [vmem:[%s11023_s5 + $0xbd4] ss:$8 sps:$4 sm:$0xff]  }
 0x258   : > { %8068 = vmatpush2.bf16.msra.mxu0 %v9583_v0  ;;  %v9657_v0 = vld [vmem:[%s11023_s5 + $0xac4] ss:$8 sps:$4 sm:$0xff]  }
 0x259   : > { %8109 = vmatpush2.bf16.msra.mxu1 %v9586_v1  ;;  %8119 = vmatprep.subr.bf16.mxu0 %v9591_v2  ;;  %v9660_v1 = vld [vmem:[%s11023_s5 + $0xbc4] ss:$8 sps:$4 sm:$0xff]   ;;  %v9655_v2 = vld [vmem:[%s11023_s5 + $0xac0] ss:$8 sps:$4 sm:$0xff]  }
 0x25a   : > { %8160 = vmatprep.subr.bf16.mxu1 %v9594_v5  ;;  %v9658_v5 = vld [vmem:[%s11023_s5 + $0xbc0] ss:$8 sps:$4 sm:$0xff]  }
 0x25b   : > { %v7825_v13 = vpop.f32.mrf.mxu0  ;;  %8070 = vmatmul.mubr.bf16.vlgmr.msra.gmra.mxu0 %v5042_v63  ;;  %v9652_v63 = vld [vmem:[%s11023_s5 + $0xbd0] ss:$8 sps:$4 sm:$0xff]  }
 0x25c   : > { %v7866_v15 = vpop.f32.mrf.mxu1  ;;  %8111 = vmatmul.mubr.bf16.vlgmr.msra.gmra.mxu1 %v5064_v11  ;;  %v7826_v16 = vadd.f32 %v7825_v13, %v11347_v57  ;;  %8120 = vmatpush1.bf16.msra.mxu0 %v9589_v6  ;;  %v9663_v6 = vld [vmem:[%s11023_s5 + $0xab4] ss:$8 sps:$4 sm:$0xff]   ;;  %v9664_v11 = vld [vmem:[%s11023_s5 + $0xbb0] ss:$8 sps:$4 sm:$0xff]   ;;  %v9667_v13 = vld [vmem:[%s11023_s5 + $0xaa0] ss:$8 sps:$4 sm:$0xff]  }
 0x25d   : > { %8161 = vmatpush1.bf16.msra.mxu1 %v9592_v7  ;;  %v7827_v19 = vpop.f32.mrf.mxu0  ;;  %8121 = vmatprep.subr.bf16.mxu0 %v9597_v37  ;;  %v9666_v7 = vld [vmem:[%s11023_s5 + $0xbb4] ss:$8 sps:$4 sm:$0xff]   ;;  %v9669_v37 = vld [vmem:[%s11023_s5 + $0xaa4] ss:$8 sps:$4 sm:$0xff]  }
 0x25e   : > { %v7868_v20 = vpop.f32.mrf.mxu1  ;;  %8162 = vmatprep.subr.bf16.mxu1 %v9600_v3  ;;  %v11428_v23 = vadd.f32 %v7866_v15, %v7826_v16  ;;  %v7828_v24 = vadd.f32 %v7827_v19, %v11351_v62  ;;  %8151 = vmatprep.mubr.bf16.mxu0 %v5063_v9  ;;  %v9609_v62 = vld [vmem:[%s11023_s5 + $0xa44] ss:$8 sps:$4 sm:$0xff]   ;;  %v9661_v9 = vld [vmem:[%s11023_s5 + $0xab0] ss:$8 sps:$4 sm:$0xff]   ;;  %v9670_v15 = vld [vmem:[%s11023_s5 + $0xba0] ss:$8 sps:$4 sm:$0xff]  }
 0x25f   : > { %8192 = vmatprep.mubr.bf16.mxu1 %v5067_v12  ;;  %v7829_v57 = vpop.f32.mrf.mxu0  ;;  %v9672_v3 = vld [vmem:[%s11023_s5 + $0xba4] ss:$8 sps:$4 sm:$0xff]   ;;  %v11480_v12 = vld [vmem:[%s11685_s0 + $0x18] sm:$0xff] }
 0x260   : > { %v7870_v14 = vpop.f32.mrf.mxu1  ;;  %v11431_v25 = vadd.f32 %v7868_v20, %v7828_v24  ;;  %8122 = vmatpush1.bf16.msra.mxu0 %v9595_v17  ;;  %v9675_v16 = vld [vmem:[%s11023_s5 + $0xa94] ss:$8 sps:$4 sm:$0xff]   ;;  %v9673_v19 = vld [vmem:[%s11023_s5 + $0xa90] ss:$8 sps:$4 sm:$0xff]   ;;  %v5049_v57 = vrot.slane %v11404_v56, %v11030_v10  ;;  %v9694_v56 = vld [vmem:[%s11023_s5 + $0xc64] ss:$8 sps:$4 sm:$0xff]  }
 0x261   : > { %8163 = vmatpush1.bf16.msra.mxu1 %v9598_v18  ;;  %v7830_v29 = vpop.f32.mrf.mxu0  ;;  %8123 = vmatprep.subr.bf16.mxu0 %v9603_v21  ;;  %v9678_v17 = vld [vmem:[%s11023_s5 + $0xb94] ss:$8 sps:$4 sm:$0xff]   ;;  %v11488_v18 = vrot.slane %v11480_v12, %v11030_v10  ;;  %v9676_v20 = vld [vmem:[%s11023_s5 + $0xb90] ss:$8 sps:$4 sm:$0xff]   ;;  %v9681_v21 = vld [vmem:[%s11023_s5 + $0xa84] ss:$8 sps:$4 sm:$0xff]  }
 0x262   : > { %v7871_v8 = vpop.f32.mrf.mxu1  ;;  %8164 = vmatprep.subr.bf16.mxu1 %v9606_v22  ;;  %v9684_v22 = vld [vmem:[%s11023_s5 + $0xb84] ss:$8 sps:$4 sm:$0xff]   ;;  %v9679_v14 = vld [vmem:[%s11023_s5 + $0xa80] ss:$8 sps:$4 sm:$0xff]   ;;  %v9691_v29 = vld [vmem:[%s11023_s5 + $0xd74] ss:$8 sps:$4 sm:$0xff]  }
 0x263   : > { %v5083_v24 = vcombine.high %v11488_v18, %v11488_v18 }
 0x264   : > { %8124 = vmatpush1.bf16.msra.mxu0 %v9601_v26  ;;  %v9682_v26 = vld [vmem:[%s11023_s5 + $0xb80] ss:$8 sps:$4 sm:$0xff]  }
 0x265   : > { %8165 = vmatpush1.bf16.msra.mxu1 %v9604_v28  ;;  %8125 = vmatprep.subr.bf16.mxu0 %v9609_v62  ;;  %v9688_v28 = vld [vmem:[%s11023_s5 + $0xc74] ss:$8 sps:$4 sm:$0xff]   ;;  %v5105_v8 = vrot.slane %v5083_v24, %v11030_v10  ;;  %v5065_v62 = vcombine.high %v5049_v57, %v5049_v57 }
 0x266   : > { %8166 = vmatprep.subr.bf16.mxu1 %v9612_v30  ;;  %v9686_v30 = vld [vmem:[%s11023_s5 + $0xc70] ss:$8 sps:$4 sm:$0xff]   ;;  %v9751_v24 = vld [vmem:[%s11023_s5 + $0xdd4] ss:$8 sps:$4 sm:$0xff]  }
 0x268   : > { %8126 = vmatpush1.bf16.msra.mxu0 %v9607_v33  ;;  %v9689_v33 = vld [vmem:[%s11023_s5 + $0xd70] ss:$8 sps:$4 sm:$0xff]  }
 0x269   : > { %8167 = vmatpush1.bf16.msra.mxu1 %v9610_v34  ;;  %8127 = vmatprep.subr.bf16.mxu0 %v9615_v35  ;;  %v9697_v34 = vld [vmem:[%s11023_s5 + $0xd64] ss:$8 sps:$4 sm:$0xff]   ;;  %v5115_v35 = vcombine.high %v5105_v8, %v5105_v8 }
 0x26a   : > { %8168 = vmatprep.subr.bf16.mxu1 %v9618_v36 }
 0x26c   : > { %8128 = vmatpush1.bf16.msra.mxu0 %v9613_v38 }
 0x26d   : > { %8169 = vmatpush1.bf16.msra.mxu1 %v9616_v39  ;;  %8129 = vmatprep.subr.bf16.mxu0 %v9621_v40  ;;  %v9692_v40 = vld [vmem:[%s11023_s5 + $0xc60] ss:$8 sps:$4 sm:$0xff]  }
 0x26e   : > { %8170 = vmatprep.subr.bf16.mxu1 %v9624_v31  ;;  %v9695_v31 = vld [vmem:[%s11023_s5 + $0xd60] ss:$8 sps:$4 sm:$0xff]  }
 0x270   : > { %8130 = vmatpush1.bf16.msra.mxu0 %v9619_v41 }
 0x271   : > { %8171 = vmatpush1.bf16.msra.mxu1 %v9622_v42  ;;  %8131 = vmatprep.subr.bf16.mxu0 %v9627_v43  ;;  %v9700_v43 = vld [vmem:[%s11023_s5 + $0xc54] ss:$8 sps:$4 sm:$0xff]  }
 0x272   : > { %8172 = vmatprep.subr.bf16.mxu1 %v9630_v44  ;;  %v9703_v44 = vld [vmem:[%s11023_s5 + $0xd54] ss:$8 sps:$4 sm:$0xff]  }
 0x274   : > { %8132 = vmatpush1.bf16.msra.mxu0 %v9625_v45 }
 0x275   : > { %8173 = vmatpush1.bf16.msra.mxu1 %v9628_v46  ;;  %8133 = vmatprep.subr.bf16.mxu0 %v9633_v47 }
 0x276   : > { %8174 = vmatprep.subr.bf16.mxu1 %v9636_v48 }
 0x278   : > { %8134 = vmatpush1.bf16.msra.mxu0 %v9631_v49  ;;  %v9698_v49 = vld [vmem:[%s11023_s5 + $0xc50] ss:$8 sps:$4 sm:$0xff]  }
 0x279   : > { %8175 = vmatpush1.bf16.msra.mxu1 %v9634_v50  ;;  %8135 = vmatprep.subr.bf16.mxu0 %v9639_v51  ;;  %v9701_v50 = vld [vmem:[%s11023_s5 + $0xd50] ss:$8 sps:$4 sm:$0xff]  }
 0x27a   : > { %8176 = vmatprep.subr.bf16.mxu1 %v9642_v27 }
 0x27c   : > { %8136 = vmatpush2.bf16.msra.mxu0 %v9637_v52  ;;  %v9709_v52 = vld [vmem:[%s11023_s5 + $0xd44] ss:$8 sps:$4 sm:$0xff]  }
 0x27d   : > { %8177 = vmatpush2.bf16.msra.mxu1 %v9640_v53  ;;  %8137 = vmatprep.subr.bf16.mxu0 %v9645_v54  ;;  %v9704_v53 = vld [vmem:[%s11023_s5 + $0xc40] ss:$8 sps:$4 sm:$0xff]  }
 0x27e   : > { %8178 = vmatprep.subr.bf16.mxu1 %v9648_v55  ;;  %v9707_v54 = vld [vmem:[%s11023_s5 + $0xd40] ss:$8 sps:$4 sm:$0xff]   ;;  %v9712_v55 = vld [vmem:[%s11023_s5 + $0xc34] ss:$8 sps:$4 sm:$0xff]  }
 0x280   : > { %8138 = vmatpush2.bf16.msra.mxu0 %v9643_v32  ;;  %v9715_v32 = vld [vmem:[%s11023_s5 + $0xd34] ss:$8 sps:$4 sm:$0xff]  }
 0x281   : > { %8179 = vmatpush2.bf16.msra.mxu1 %v9646_v58  ;;  %8139 = vmatprep.subr.bf16.mxu0 %v9651_v59  ;;  %v9710_v58 = vld [vmem:[%s11023_s5 + $0xc30] ss:$8 sps:$4 sm:$0xff]  }
 0x282   : > { %8180 = vmatprep.subr.bf16.mxu1 %v9654_v60  ;;  %v9713_v59 = vld [vmem:[%s11023_s5 + $0xd30] ss:$8 sps:$4 sm:$0xff]   ;;  %v9718_v60 = vld [vmem:[%s11023_s5 + $0xc24] ss:$8 sps:$4 sm:$0xff]  }
 0x284   : > { %8140 = vmatpush2.bf16.msra.mxu0 %v9649_v61  ;;  %v9721_v61 = vld [vmem:[%s11023_s5 + $0xd24] ss:$8 sps:$4 sm:$0xff]  }
 0x285   : > { %8181 = vmatpush2.bf16.msra.mxu1 %v9652_v63  ;;  %8141 = vmatprep.subr.bf16.mxu0 %v9657_v0  ;;  %v9716_v63 = vld [vmem:[%s11023_s5 + $0xc20] ss:$8 sps:$4 sm:$0xff]  }
 0x286   : > { %8182 = vmatprep.subr.bf16.mxu1 %v9660_v1  ;;  %v9719_v0 = vld [vmem:[%s11023_s5 + $0xd20] ss:$8 sps:$4 sm:$0xff]   ;;  %v9724_v1 = vld [vmem:[%s11023_s5 + $0xc14] ss:$8 sps:$4 sm:$0xff]  }
 0x288   : > { %8142 = vmatpush2.bf16.msra.mxu0 %v9655_v2  ;;  %v9727_v2 = vld [vmem:[%s11023_s5 + $0xd14] ss:$8 sps:$4 sm:$0xff]  }
 0x289   : > { %8183 = vmatpush2.bf16.msra.mxu1 %v9658_v5  ;;  %8143 = vmatprep.subr.bf16.mxu0 %v9663_v6  ;;  %v9722_v5 = vld [vmem:[%s11023_s5 + $0xc10] ss:$8 sps:$4 sm:$0xff]  }
 0x28a   : > { %8184 = vmatprep.subr.bf16.mxu1 %v9666_v7  ;;  %v9725_v6 = vld [vmem:[%s11023_s5 + $0xd10] ss:$8 sps:$4 sm:$0xff]   ;;  %v9730_v7 = vld [vmem:[%s11023_s5 + $0xc04] ss:$8 sps:$4 sm:$0xff]  }
 0x28c   : > { %8144 = vmatpush2.bf16.msra.mxu0 %v9661_v9  ;;  %v9733_v9 = vld [vmem:[%s11023_s5 + $0xd04] ss:$8 sps:$4 sm:$0xff]  }
 0x28d   : > { %8185 = vmatpush2.bf16.msra.mxu1 %v9664_v11  ;;  %8145 = vmatprep.subr.bf16.mxu0 %v9669_v37  ;;  %v9728_v11 = vld [vmem:[%s11023_s5 + $0xc00] ss:$8 sps:$4 sm:$0xff]  }
 0x28e   : > { %8186 = vmatprep.subr.bf16.mxu1 %v9672_v3  ;;  %v9731_v37 = vld [vmem:[%s11023_s5 + $0xd00] ss:$8 sps:$4 sm:$0xff]   ;;  %v9736_v3 = vld [vmem:[%s11023_s5 + $0xcf4] ss:$8 sps:$4 sm:$0xff]  }
 0x290   : > { %8146 = vmatpush2.bf16.msra.mxu0 %v9667_v13  ;;  %v9739_v13 = vld [vmem:[%s11023_s5 + $0xdf4] ss:$8 sps:$4 sm:$0xff]  }
 0x291   : > { %8187 = vmatpush2.bf16.msra.mxu1 %v9670_v15  ;;  %8147 = vmatprep.subr.bf16.mxu0 %v9675_v16  ;;  %v9734_v15 = vld [vmem:[%s11023_s5 + $0xcf0] ss:$8 sps:$4 sm:$0xff]  }
 0x292   : > { %8188 = vmatprep.subr.bf16.mxu1 %v9678_v17  ;;  %v9737_v16 = vld [vmem:[%s11023_s5 + $0xdf0] ss:$8 sps:$4 sm:$0xff]   ;;  %v9742_v17 = vld [vmem:[%s11023_s5 + $0xce4] ss:$8 sps:$4 sm:$0xff]  }
 0x294   : > { %8148 = vmatpush2.bf16.msra.mxu0 %v9673_v19  ;;  %v9745_v19 = vld [vmem:[%s11023_s5 + $0xde4] ss:$8 sps:$4 sm:$0xff]  }
 0x295   : > { %8189 = vmatpush2.bf16.msra.mxu1 %v9676_v20  ;;  %8149 = vmatprep.subr.bf16.mxu0 %v9681_v21  ;;  %v9740_v20 = vld [vmem:[%s11023_s5 + $0xce0] ss:$8 sps:$4 sm:$0xff]  }
 0x296   : > { %8190 = vmatprep.subr.bf16.mxu1 %v9684_v22  ;;  %v9743_v21 = vld [vmem:[%s11023_s5 + $0xde0] ss:$8 sps:$4 sm:$0xff]   ;;  %v9748_v22 = vld [vmem:[%s11023_s5 + $0xcd4] ss:$8 sps:$4 sm:$0xff]  }
 0x298   : > { %8150 = vmatpush2.bf16.msra.mxu0 %v9679_v14  ;;  %v9749_v14 = vld [vmem:[%s11023_s5 + $0xdd0] ss:$8 sps:$4 sm:$0xff]  }
 0x299   : > { %8191 = vmatpush2.bf16.msra.mxu1 %v9682_v26  ;;  %8201 = vmatprep.subr.bf16.mxu0 %v9688_v28  ;;  %v9754_v26 = vld [vmem:[%s11023_s5 + $0xcc4] ss:$8 sps:$4 sm:$0xff]  }
 0x29a   : > { %8242 = vmatprep.subr.bf16.mxu1 %v9691_v29  ;;  %v9757_v28 = vld [vmem:[%s11023_s5 + $0xdc4] ss:$8 sps:$4 sm:$0xff]   ;;  %v9752_v29 = vld [vmem:[%s11023_s5 + $0xcc0] ss:$8 sps:$4 sm:$0xff]  }
 0x29b   : > { %v7907_v36 = vpop.f32.mrf.mxu0  ;;  %8152 = vmatmul.mubr.bf16.vlgmr.msra.gmra.mxu0 %v5049_v57  ;;  %v9746_v57 = vld [vmem:[%s11023_s5 + $0xcd0] ss:$8 sps:$4 sm:$0xff]  }
 0x29c   : > { %v7948_v38 = vpop.f32.mrf.mxu1  ;;  %8193 = vmatmul.mubr.bf16.vlgmr.msra.gmra.mxu1 %v5065_v62  ;;  %v7908_v39 = vadd.f32 %v7907_v36, %v11428_v23  ;;  %8202 = vmatpush1.bf16.msra.mxu0 %v9686_v30  ;;  %v9760_v62 = vld [vmem:[%s11023_s5 + $0xcb4] ss:$8 sps:$4 sm:$0xff]   ;;  %v5068_v36 = vcombine.high %v11480_v12, %v11480_v12  ;;  %v9770_v12 = vld [vmem:[%s11023_s5 + $0xc90] ss:$8 sps:$4 sm:$0xff]  }
 0x29d   : > { %8243 = vmatpush1.bf16.msra.mxu1 %v9689_v33  ;;  %v7909_v41 = vpop.f32.mrf.mxu0  ;;  %8203 = vmatprep.subr.bf16.mxu0 %v9694_v56  ;;  %v9763_v30 = vld [vmem:[%s11023_s5 + $0xdb4] ss:$8 sps:$4 sm:$0xff]   ;;  %v9758_v33 = vld [vmem:[%s11023_s5 + $0xcb0] ss:$8 sps:$4 sm:$0xff]  }
 0x29e   : > { %v7950_v42 = vpop.f32.mrf.mxu1  ;;  %8244 = vmatprep.subr.bf16.mxu1 %v9697_v34  ;;  %v11512_v45 = vadd.f32 %v7948_v38, %v7908_v39  ;;  %v7910_v46 = vadd.f32 %v7909_v41, %v11431_v25  ;;  %8233 = vmatprep.mubr.bf16.mxu0 %v5105_v8  ;;  %v9706_v25 = vld [vmem:[%s11023_s5 + $0xc44] ss:$8 sps:$4 sm:$0xff]   ;;  %v9755_v8 = vld [vmem:[%s11023_s5 + $0xdc0] ss:$8 sps:$4 sm:$0xff]   ;;  %v9761_v56 = vld [vmem:[%s11023_s5 + $0xdb0] ss:$8 sps:$4 sm:$0xff]   ;;  %v11568_v41 = vrot.slane %v5068_v36, %v11030_v10 }
 0x29f   : > { %8274 = vmatprep.mubr.bf16.mxu1 %v5115_v35  ;;  %v7911_v23 = vpop.f32.mrf.mxu0  ;;  %v9766_v34 = vld [vmem:[%s11023_s5 + $0xca4] ss:$8 sps:$4 sm:$0xff]   ;;  %v9764_v38 = vld [vmem:[%s11023_s5 + $0xca0] ss:$8 sps:$4 sm:$0xff]   ;;  %v9835_v36 = vld [vmem:[%s11023_s5 + $0xff4] ss:$8 sps:$4 sm:$0xff]  }
 0x2a0   : > { %v7952_v47 = vpop.f32.mrf.mxu1  ;;  %v11515_v48 = vadd.f32 %v7950_v42, %v7910_v46  ;;  %8204 = vmatpush1.bf16.msra.mxu0 %v9692_v40  ;;  %v9769_v35 = vld [vmem:[%s11023_s5 + $0xda4] ss:$8 sps:$4 sm:$0xff]   ;;  %v9767_v39 = vld [vmem:[%s11023_s5 + $0xda0] ss:$8 sps:$4 sm:$0xff]   ;;  %v9772_v40 = vld [vmem:[%s11023_s5 + $0xc94] ss:$8 sps:$4 sm:$0xff]   ;;  %v5084_v46 = vcombine.high %v11568_v41, %v11568_v41  ;;  %v5091_v23 = vrot.slane %v11488_v18, %v11030_v10 }
 0x2a1   : > { %8245 = vmatpush1.bf16.msra.mxu1 %v9695_v31  ;;  %v7912_v51 = vpop.f32.mrf.mxu0  ;;  %8205 = vmatprep.subr.bf16.mxu0 %v9700_v43  ;;  %v9775_v31 = vld [vmem:[%s11023_s5 + $0xd94] ss:$8 sps:$4 sm:$0xff]   ;;  %v9773_v42 = vld [vmem:[%s11023_s5 + $0xd90] ss:$8 sps:$4 sm:$0xff]   ;;  %v9778_v43 = vld [vmem:[%s11023_s5 + $0xc84] ss:$8 sps:$4 sm:$0xff]  }
 0x2a2   : > { %v7953_v27 = vpop.f32.mrf.mxu1  ;;  %8246 = vmatprep.subr.bf16.mxu1 %v9703_v44  ;;  %v9781_v44 = vld [vmem:[%s11023_s5 + $0xd84] ss:$8 sps:$4 sm:$0xff]   ;;  %v9776_v47 = vld [vmem:[%s11023_s5 + $0xc80] ss:$8 sps:$4 sm:$0xff]   ;;  %v9787_v51 = vld [vmem:[%s11023_s5 + $0xf74] ss:$8 sps:$4 sm:$0xff]  }
 0x2a3   : > { %v5112_v27 = vrot.slane %v5084_v46, %v11030_v10  ;;  %v9790_v18 = vld [vmem:[%s11023_s5 + $0xe64] ss:$8 sps:$4 sm:$0xff]   ;;  %v9842_v46 = vld [vmem:[%s11023_s5 + $0xed0] ss:$8 sps:$4 sm:$0xff]  }
 0x2a4   : > { %8206 = vmatpush1.bf16.msra.mxu0 %v9698_v49  ;;  %v9779_v49 = vld [vmem:[%s11023_s5 + $0xd80] ss:$8 sps:$4 sm:$0xff]  }
 0x2a5   : > { %8247 = vmatpush1.bf16.msra.mxu1 %v9701_v50  ;;  %8207 = vmatprep.subr.bf16.mxu0 %v9706_v25  ;;  %v9784_v50 = vld [vmem:[%s11023_s5 + $0xe74] ss:$8 sps:$4 sm:$0xff]   ;;  %v5113_v25 = vcombine.high %v5091_v23, %v5091_v23 }
 0x2a6   : > { %8248 = vmatprep.subr.bf16.mxu1 %v9709_v52  ;;  %v9782_v52 = vld [vmem:[%s11023_s5 + $0xe70] ss:$8 sps:$4 sm:$0xff]  }
 0x2a8   : > { %8208 = vmatpush1.bf16.msra.mxu0 %v9704_v53  ;;  %v9785_v53 = vld [vmem:[%s11023_s5 + $0xf70] ss:$8 sps:$4 sm:$0xff]  }
 0x2a9   : > { %8249 = vmatpush1.bf16.msra.mxu1 %v9707_v54  ;;  %8209 = vmatprep.subr.bf16.mxu0 %v9712_v55  ;;  %v9793_v54 = vld [vmem:[%s11023_s5 + $0xf64] ss:$8 sps:$4 sm:$0xff]   ;;  %v5116_v55 = vcombine.high %v5112_v27, %v5112_v27 }
 0x2aa   : > { %8250 = vmatprep.subr.bf16.mxu1 %v9715_v32 }
 0x2ac   : > { %8210 = vmatpush1.bf16.msra.mxu0 %v9710_v58 }
 0x2ad   : > { %8251 = vmatpush1.bf16.msra.mxu1 %v9713_v59  ;;  %8211 = vmatprep.subr.bf16.mxu0 %v9718_v60  ;;  %v9788_v60 = vld [vmem:[%s11023_s5 + $0xe60] ss:$8 sps:$4 sm:$0xff]  }
 0x2ae   : > { %8252 = vmatprep.subr.bf16.mxu1 %v9721_v61  ;;  %v9791_v61 = vld [vmem:[%s11023_s5 + $0xf60] ss:$8 sps:$4 sm:$0xff]  }
 0x2b0   : > { %8212 = vmatpush1.bf16.msra.mxu0 %v9716_v63 }
 0x2b1   : > { %8253 = vmatpush1.bf16.msra.mxu1 %v9719_v0  ;;  %8213 = vmatprep.subr.bf16.mxu0 %v9724_v1  ;;  %v9796_v1 = vld [vmem:[%s11023_s5 + $0xe54] ss:$8 sps:$4 sm:$0xff]  }
 0x2b2   : > { %8254 = vmatprep.subr.bf16.mxu1 %v9727_v2  ;;  %v9799_v2 = vld [vmem:[%s11023_s5 + $0xf54] ss:$8 sps:$4 sm:$0xff]  }
 0x2b4   : > { %8214 = vmatpush1.bf16.msra.mxu0 %v9722_v5 }
 0x2b5   : > { %8255 = vmatpush1.bf16.msra.mxu1 %v9725_v6  ;;  %8215 = vmatprep.subr.bf16.mxu0 %v9730_v7 }
 0x2b6   : > { %8256 = vmatprep.subr.bf16.mxu1 %v9733_v9 }
 0x2b8   : > { %8216 = vmatpush1.bf16.msra.mxu0 %v9728_v11  ;;  %v9794_v11 = vld [vmem:[%s11023_s5 + $0xe50] ss:$8 sps:$4 sm:$0xff]  }
 0x2b9   : > { %8257 = vmatpush1.bf16.msra.mxu1 %v9731_v37  ;;  %8217 = vmatprep.subr.bf16.mxu0 %v9736_v3  ;;  %v9797_v37 = vld [vmem:[%s11023_s5 + $0xf50] ss:$8 sps:$4 sm:$0xff]  }
 0x2ba   : > { %8258 = vmatprep.subr.bf16.mxu1 %v9739_v13 }
 0x2bc   : > { %8218 = vmatpush2.bf16.msra.mxu0 %v9734_v15  ;;  %v9805_v15 = vld [vmem:[%s11023_s5 + $0xf44] ss:$8 sps:$4 sm:$0xff]  }
 0x2bd   : > { %8259 = vmatpush2.bf16.msra.mxu1 %v9737_v16  ;;  %8219 = vmatprep.subr.bf16.mxu0 %v9742_v17  ;;  %v9800_v16 = vld [vmem:[%s11023_s5 + $0xe40] ss:$8 sps:$4 sm:$0xff]  }
 0x2be   : > { %8260 = vmatprep.subr.bf16.mxu1 %v9745_v19  ;;  %v9803_v17 = vld [vmem:[%s11023_s5 + $0xf40] ss:$8 sps:$4 sm:$0xff]   ;;  %v9808_v19 = vld [vmem:[%s11023_s5 + $0xe34] ss:$8 sps:$4 sm:$0xff]  }
 0x2c0   : > { %8220 = vmatpush2.bf16.msra.mxu0 %v9740_v20  ;;  %v9811_v20 = vld [vmem:[%s11023_s5 + $0xf34] ss:$8 sps:$4 sm:$0xff]  }
 0x2c1   : > { %8261 = vmatpush2.bf16.msra.mxu1 %v9743_v21  ;;  %8221 = vmatprep.subr.bf16.mxu0 %v9748_v22  ;;  %v9806_v21 = vld [vmem:[%s11023_s5 + $0xe30] ss:$8 sps:$4 sm:$0xff]  }
 0x2c2   : > { %8262 = vmatprep.subr.bf16.mxu1 %v9751_v24  ;;  %v9809_v22 = vld [vmem:[%s11023_s5 + $0xf30] ss:$8 sps:$4 sm:$0xff]   ;;  %v9814_v24 = vld [vmem:[%s11023_s5 + $0xe24] ss:$8 sps:$4 sm:$0xff]  }
 0x2c4   : > { %8222 = vmatpush2.bf16.msra.mxu0 %v9746_v57  ;;  %v9817_v57 = vld [vmem:[%s11023_s5 + $0xf24] ss:$8 sps:$4 sm:$0xff]  }
 0x2c5   : > { %8263 = vmatpush2.bf16.msra.mxu1 %v9749_v14  ;;  %8223 = vmatprep.subr.bf16.mxu0 %v9754_v26  ;;  %v9812_v14 = vld [vmem:[%s11023_s5 + $0xe20] ss:$8 sps:$4 sm:$0xff]  }
 0x2c6   : > { %8264 = vmatprep.subr.bf16.mxu1 %v9757_v28  ;;  %v9815_v26 = vld [vmem:[%s11023_s5 + $0xf20] ss:$8 sps:$4 sm:$0xff]   ;;  %v9820_v28 = vld [vmem:[%s11023_s5 + $0xe14] ss:$8 sps:$4 sm:$0xff]  }
 0x2c8   : > { %8224 = vmatpush2.bf16.msra.mxu0 %v9752_v29  ;;  %v9823_v29 = vld [vmem:[%s11023_s5 + $0xf14] ss:$8 sps:$4 sm:$0xff]  }
 0x2c9   : > { %8265 = vmatpush2.bf16.msra.mxu1 %v9755_v8  ;;  %8225 = vmatprep.subr.bf16.mxu0 %v9760_v62  ;;  %v9818_v8 = vld [vmem:[%s11023_s5 + $0xe10] ss:$8 sps:$4 sm:$0xff]  }
 0x2ca   : > { %8266 = vmatprep.subr.bf16.mxu1 %v9763_v30  ;;  %v9821_v62 = vld [vmem:[%s11023_s5 + $0xf10] ss:$8 sps:$4 sm:$0xff]   ;;  %v9826_v30 = vld [vmem:[%s11023_s5 + $0xe04] ss:$8 sps:$4 sm:$0xff]  }
 0x2cc   : > { %8226 = vmatpush2.bf16.msra.mxu0 %v9758_v33  ;;  %v9829_v33 = vld [vmem:[%s11023_s5 + $0xf04] ss:$8 sps:$4 sm:$0xff]  }
 0x2cd   : > { %8267 = vmatpush2.bf16.msra.mxu1 %v9761_v56  ;;  %8227 = vmatprep.subr.bf16.mxu0 %v9766_v34  ;;  %v9824_v56 = vld [vmem:[%s11023_s5 + $0xe00] ss:$8 sps:$4 sm:$0xff]  }
 0x2ce   : > { %8268 = vmatprep.subr.bf16.mxu1 %v9769_v35  ;;  %v9827_v34 = vld [vmem:[%s11023_s5 + $0xf00] ss:$8 sps:$4 sm:$0xff]   ;;  %v9832_v35 = vld [vmem:[%s11023_s5 + $0xef4] ss:$8 sps:$4 sm:$0xff]  }
 0x2d0   : > { %8228 = vmatpush2.bf16.msra.mxu0 %v9764_v38  ;;  %v9830_v38 = vld [vmem:[%s11023_s5 + $0xef0] ss:$8 sps:$4 sm:$0xff]  }
 0x2d1   : > { %8269 = vmatpush2.bf16.msra.mxu1 %v9767_v39  ;;  %8229 = vmatprep.subr.bf16.mxu0 %v9772_v40  ;;  %v9833_v39 = vld [vmem:[%s11023_s5 + $0xff0] ss:$8 sps:$4 sm:$0xff]   ;;  %v9838_v40 = vld [vmem:[%s11023_s5 + $0xee4] ss:$8 sps:$4 sm:$0xff]  }
 0x2d2   : > { %8270 = vmatprep.subr.bf16.mxu1 %v9775_v31  ;;  %v9841_v31 = vld [vmem:[%s11023_s5 + $0xfe4] ss:$8 sps:$4 sm:$0xff]  }
 0x2d4   : > { %8230 = vmatpush2.bf16.msra.mxu0 %v9770_v12  ;;  %v9836_v12 = vld [vmem:[%s11023_s5 + $0xee0] ss:$8 sps:$4 sm:$0xff]  }
 0x2d5   : > { %8271 = vmatpush2.bf16.msra.mxu1 %v9773_v42  ;;  %8231 = vmatprep.subr.bf16.mxu0 %v9778_v43  ;;  %v9839_v42 = vld [vmem:[%s11023_s5 + $0xfe0] ss:$8 sps:$4 sm:$0xff]   ;;  %v9844_v43 = vld [vmem:[%s11023_s5 + $0xed4] ss:$8 sps:$4 sm:$0xff]  }
 0x2d6   : > { %8272 = vmatprep.subr.bf16.mxu1 %v9781_v44  ;;  %v9847_v44 = vld [vmem:[%s11023_s5 + $0xfd4] ss:$8 sps:$4 sm:$0xff]  }
 0x2d8   : > { %8232 = vmatpush2.bf16.msra.mxu0 %v9776_v47  ;;  %v9850_v47 = vld [vmem:[%s11023_s5 + $0xec4] ss:$8 sps:$4 sm:$0xff]  }
 0x2d9   : > { %8273 = vmatpush2.bf16.msra.mxu1 %v9779_v49  ;;  %8283 = vmatprep.subr.bf16.mxu0 %v9784_v50  ;;  %v9853_v49 = vld [vmem:[%s11023_s5 + $0xfc4] ss:$8 sps:$4 sm:$0xff]   ;;  %v9848_v50 = vld [vmem:[%s11023_s5 + $0xec0] ss:$8 sps:$4 sm:$0xff]  }
 0x2da   : > { %8324 = vmatprep.subr.bf16.mxu1 %v9787_v51  ;;  %v9851_v51 = vld [vmem:[%s11023_s5 + $0xfc0] ss:$8 sps:$4 sm:$0xff]  }
 0x2db   : > { %v7989_v32 = vpop.f32.mrf.mxu0  ;;  %8234 = vmatmul.mubr.bf16.vlgmr.msra.gmra.mxu0 %v5091_v23  ;;  %v9845_v23 = vld [vmem:[%s11023_s5 + $0xfd0] ss:$8 sps:$4 sm:$0xff]  }
 0x2dc   : > { %v8030_v58 = vpop.f32.mrf.mxu1  ;;  %8275 = vmatmul.mubr.bf16.vlgmr.msra.gmra.mxu1 %v5113_v25  ;;  %v7990_v59 = vadd.f32 %v7989_v32, %v11512_v45  ;;  %8284 = vmatpush1.bf16.msra.mxu0 %v9782_v52  ;;  %v9859_v25 = vld [vmem:[%s11023_s5 + $0xfb4] ss:$8 sps:$4 sm:$0xff]   ;;  %v9854_v52 = vld [vmem:[%s11023_s5 + $0xeb0] ss:$8 sps:$4 sm:$0xff]   ;;  %v9863_v32 = vld [vmem:[%s11023_s5 + $0xfa0] ss:$8 sps:$4 sm:$0xff]  }
 0x2dd   : > { %8325 = vmatpush1.bf16.msra.mxu1 %v9785_v53  ;;  %v7991_v63 = vpop.f32.mrf.mxu0  ;;  %8285 = vmatprep.subr.bf16.mxu0 %v9790_v18  ;;  %v9857_v53 = vld [vmem:[%s11023_s5 + $0xfb0] ss:$8 sps:$4 sm:$0xff]   ;;  %v9862_v18 = vld [vmem:[%s11023_s5 + $0xea4] ss:$8 sps:$4 sm:$0xff]  }
 0x2de   : > { %v8032_v0 = vpop.f32.mrf.mxu1  ;;  %8326 = vmatprep.subr.bf16.mxu1 %v9793_v54  ;;  %v11592_v5 = vadd.f32 %v8030_v58, %v7990_v59  ;;  %v7992_v6 = vadd.f32 %v7991_v63, %v11515_v48  ;;  %8315 = vmatprep.mubr.bf16.mxu0 %v5112_v27  ;;  %v9802_v48 = vld [vmem:[%s11023_s5 + $0xe44] ss:$8 sps:$4 sm:$0xff]   ;;  %v9856_v27 = vld [vmem:[%s11023_s5 + $0xeb4] ss:$8 sps:$4 sm:$0xff]  }
 0x2df   : > { %8356 = vmatprep.mubr.bf16.mxu1 %v5116_v55  ;;  %v7993_v45 = vpop.f32.mrf.mxu0  ;;  %v9865_v54 = vld [vmem:[%s11023_s5 + $0xfa4] ss:$8 sps:$4 sm:$0xff]   ;;  %v9860_v55 = vld [vmem:[%s11023_s5 + $0xea0] ss:$8 sps:$4 sm:$0xff]   ;;  %v9868_v58 = vld [vmem:[%s11023_s5 + $0xe94] ss:$8 sps:$4 sm:$0xff]  }
 0x2e0   : > { %v8034_v7 = vpop.f32.mrf.mxu1  ;;  %v11595_v9 = vadd.f32 %v8032_v0, %v7992_v6  ;;  %8286 = vmatpush1.bf16.msra.mxu0 %v9788_v60  ;;  %v9871_v59 = vld [vmem:[%s11023_s5 + $0xf94] ss:$8 sps:$4 sm:$0xff]   ;;  %v9866_v60 = vld [vmem:[%s11023_s5 + $0xe90] ss:$8 sps:$4 sm:$0xff]   ;;  %v9874_v63 = vld [vmem:[%s11023_s5 + $0xe84] ss:$8 sps:$4 sm:$0xff]  }
 0x2e1   : > { %8327 = vmatpush1.bf16.msra.mxu1 %v9791_v61  ;;  %v7994_v3 = vpop.f32.mrf.mxu0  ;;  %8287 = vmatprep.subr.bf16.mxu0 %v9796_v1  ;;  %v9869_v61 = vld [vmem:[%s11023_s5 + $0xf90] ss:$8 sps:$4 sm:$0xff]   ;;  %v9877_v0 = vld [vmem:[%s11023_s5 + $0xf84] ss:$8 sps:$4 sm:$0xff]   ;;  %v5098_v1 = vrot.slane %v11568_v41, %v11030_v10  ;;  %v9875_v6 = vld [vmem:[%s11023_s5 + $0xf80] ss:$8 sps:$4 sm:$0xff]  }
 0x2e2   : > { %v8035_v13 = vpop.f32.mrf.mxu1  ;;  %8328 = vmatprep.subr.bf16.mxu1 %v9799_v2  ;;  %v9872_v2 = vld [vmem:[%s11023_s5 + $0xe80] ss:$8 sps:$4 sm:$0xff]  }
 0x2e3   : > { %v5114_v45 = vcombine.high %v5098_v1, %v5098_v1 }
 0x2e4   : > { %8288 = vmatpush1.bf16.msra.mxu0 %v9794_v11 }
 0x2e5   : > { %8329 = vmatpush1.bf16.msra.mxu1 %v9797_v37  ;;  %8289 = vmatprep.subr.bf16.mxu0 %v9802_v48 }
 0x2e6   : > { %8330 = vmatprep.subr.bf16.mxu1 %v9805_v15 }
 0x2e8   : > { %8290 = vmatpush1.bf16.msra.mxu0 %v9800_v16 }
 0x2e9   : > { %8331 = vmatpush1.bf16.msra.mxu1 %v9803_v17  ;;  %8291 = vmatprep.subr.bf16.mxu0 %v9808_v19 }
 0x2ea   : > { %8332 = vmatprep.subr.bf16.mxu1 %v9811_v20 }
 0x2ec   : > { %8292 = vmatpush1.bf16.msra.mxu0 %v9806_v21 }
 0x2ed   : > { %8333 = vmatpush1.bf16.msra.mxu1 %v9809_v22  ;;  %8293 = vmatprep.subr.bf16.mxu0 %v9814_v24 }
 0x2ee   : > { %8334 = vmatprep.subr.bf16.mxu1 %v9817_v57 }
 0x2f0   : > { %8294 = vmatpush1.bf16.msra.mxu0 %v9812_v14 }
 0x2f1   : > { %8335 = vmatpush1.bf16.msra.mxu1 %v9815_v26  ;;  %8295 = vmatprep.subr.bf16.mxu0 %v9820_v28 }
 0x2f2   : > { %8336 = vmatprep.subr.bf16.mxu1 %v9823_v29  ;;  %v9920_v29 = vmov 0.0  }
 0x2f3   : > { %4399 = vst [vmem:[#allocation2] sm:$0xf] %v9920_v29 }
 0x2f4   : > { %8296 = vmatpush1.bf16.msra.mxu0 %v9818_v8 }
 0x2f5   : > { %8337 = vmatpush1.bf16.msra.mxu1 %v9821_v62  ;;  %8297 = vmatprep.subr.bf16.mxu0 %v9826_v30 }
 0x2f6   : > { %8338 = vmatprep.subr.bf16.mxu1 %v9829_v33 }
 0x2f8   : > { %8298 = vmatpush1.bf16.msra.mxu0 %v9824_v56 }
 0x2f9   : > { %8339 = vmatpush1.bf16.msra.mxu1 %v9827_v34  ;;  %8299 = vmatprep.subr.bf16.mxu0 %v9832_v35 }
 0x2fa   : > { %8340 = vmatprep.subr.bf16.mxu1 %v9835_v36 }
 0x2fc   : > { %8300 = vmatpush2.bf16.msra.mxu0 %v9830_v38 }
 0x2fd   : > { %8341 = vmatpush2.bf16.msra.mxu1 %v9833_v39  ;;  %8301 = vmatprep.subr.bf16.mxu0 %v9838_v40 }
 0x2fe   : > { %8342 = vmatprep.subr.bf16.mxu1 %v9841_v31 }
 0x300   : > { %8302 = vmatpush2.bf16.msra.mxu0 %v9836_v12 }
 0x301   : > { %8343 = vmatpush2.bf16.msra.mxu1 %v9839_v42  ;;  %8303 = vmatprep.subr.bf16.mxu0 %v9844_v43  ;;  %v9921_v42 = vmov 1983009808  }
 0x302   : > { %8344 = vmatprep.subr.bf16.mxu1 %v9847_v44  ;;  %v8369_v43 = vunpack.c.l.s4 %v9921_v42 }
 0x304   : > { %8304 = vmatpush2.bf16.msra.mxu0 %v9842_v46 }
 0x305   : > { %8345 = vmatpush2.bf16.msra.mxu1 %v9845_v23  ;;  %8305 = vmatprep.subr.bf16.mxu0 %v9850_v47  ;;  %v8370_v47 = vunpack.c.0.s8 %v8369_v43 }
 0x306   : > { %8346 = vmatprep.subr.bf16.mxu1 %v9853_v49 }
 0x308   : > { %8306 = vmatpush2.bf16.msra.mxu0 %v9848_v50 }
 0x309   : > { %8347 = vmatpush2.bf16.msra.mxu1 %v9851_v51  ;;  %8307 = vmatprep.subr.bf16.mxu0 %v9856_v27 }
 0x30a   : > { %8348 = vmatprep.subr.bf16.mxu1 %v9859_v25 }
 0x30c   : > { %8308 = vmatpush2.bf16.msra.mxu0 %v9854_v52  ;;  %v8373_v52 = vsub.s32 %v8370_v47, %v11021_v4 }
 0x30d   : > { %8349 = vmatpush2.bf16.msra.mxu1 %v9857_v53  ;;  %8309 = vmatprep.subr.bf16.mxu0 %v9862_v18 }
 0x30e   : > { %8350 = vmatprep.subr.bf16.mxu1 %v9865_v54 }
 0x310   : > { %8310 = vmatpush2.bf16.msra.mxu0 %v9860_v55 }
 0x311   : > { %8351 = vmatpush2.bf16.msra.mxu1 %v9863_v32  ;;  %8311 = vmatprep.subr.bf16.mxu0 %v9868_v58  ;;  %v8386_v32 = vsub.s32 0, %v11021_v4  ;;  %v8390_v58 = vsub.s32 1, %v11021_v4 }
 0x312   : > { %8352 = vmatprep.subr.bf16.mxu1 %v9871_v59  ;;  %v8382_v59 = vld [vmem:[%s4388_s21] sm:$0x3] }
 0x314   : > { %8312 = vmatpush2.bf16.msra.mxu0 %v9866_v60 }
 0x315   : > { %8353 = vmatpush2.bf16.msra.mxu1 %v9869_v61  ;;  %8313 = vmatprep.subr.bf16.mxu0 %v9874_v63 }
 0x316   : > { %8354 = vmatprep.subr.bf16.mxu1 %v9877_v0  ;;  %v4400_v0 = vld [vmem:[#allocation2] sm:$0xf] }
 0x318   : > { %8314 = vmatpush2.bf16.msra.mxu0 %v9872_v2  ;;  %v8387_v2 = vrot.slane %v8382_v59, %v8386_v32 }
 0x319   : > { %8355 = vmatpush2.bf16.msra.mxu1 %v9875_v6  ;;  %v8391_v6 = vrot.slane %v8382_v59, %v8390_v58 }
 0x31b   : > { %v8071_v7 = vpop.f32.mrf.mxu0  ;;  %8316 = vmatmul.mubr.bf16.vlgmr.msra.gmra.mxu0 %v5098_v1 }
 0x31c   : > { %v8112_v11 = vpop.f32.mrf.mxu1  ;;  %8357 = vmatmul.mubr.bf16.vlgmr.msra.gmra.mxu1 %v5114_v45  ;;  %v8072_v37 = vadd.f32 %v8071_v7, %v11592_v5  ;;  %v8392_v7 = vcombine.low %v8387_v2, %v8391_v6 }
 0x31d   : > { %v8073_v3 = vpop.f32.mrf.mxu0 }
 0x31e   : > { %v8114_v13 = vpop.f32.mrf.mxu1  ;;  %v8113_v48 = vadd.f32 %v8112_v11, %v8072_v37  ;;  %v8074_v41 = vadd.f32 %v8073_v3, %v11595_v9  ;;  %v8399_v11 = vrot.slane %v8392_v7, %v8373_v52 }
 0x31f   : > { %v8075_v15 = vpop.f32.mrf.mxu0 }
 0x320   : > { %v8116_v16 = vpop.f32.mrf.mxu1  ;;  %v8115_v17 = vadd.f32 %v8114_v13, %v8074_v41 }
 0x321   : > { %v8076_v19 = vpop.f32.mrf.mxu0 }
 0x322   : > { %v8117_v20 = vpop.f32.mrf.mxu1 }
 0x35b   : > { %v8153_v21 = vpop.f32.mrf.mxu0 }
 0x35c   : > { %v8194_v22 = vpop.f32.mrf.mxu1  ;;  %v8154_v24 = vadd.f32 %v8153_v21, %v8113_v48 }
 0x35d   : > { %v8155_v57 = vpop.f32.mrf.mxu0 }
 0x35e   : > { %v8196_v14 = vpop.f32.mrf.mxu1  ;;  %v8195_v26 = vadd.f32 %v8194_v22, %v8154_v24  ;;  %v8156_v28 = vadd.f32 %v8155_v57, %v8115_v17 }
 0x35f   : > { %v8157_v5 = vpop.f32.mrf.mxu0 }
 0x360   : > { %v8198_v8 = vpop.f32.mrf.mxu1  ;;  %v8197_v62 = vadd.f32 %v8196_v14, %v8156_v28 }
 0x361   : > { %v8158_v30 = vpop.f32.mrf.mxu0 }
 0x362   : > { %v8199_v9 = vpop.f32.mrf.mxu1 }
 0x39b   : > { %v8235_v33 = vpop.f32.mrf.mxu0 }
 0x39c   : > { %v8276_v56 = vpop.f32.mrf.mxu1  ;;  %v8236_v34 = vadd.f32 %v8235_v33, %v8195_v26 }
 0x39d   : > { %v8237_v35 = vpop.f32.mrf.mxu0 }
 0x39e   : > { %v8278_v36 = vpop.f32.mrf.mxu1  ;;  %v8277_v38 = vadd.f32 %v8276_v56, %v8236_v34  ;;  %v8238_v44 = vadd.f32 %v8237_v35, %v8197_v62 }
 0x39f   : > { %v8239_v39 = vpop.f32.mrf.mxu0 }
 0x3a0   : > { %v8280_v40 = vpop.f32.mrf.mxu1  ;;  %v8279_v49 = vadd.f32 %v8278_v36, %v8238_v44 }
 0x3a1   : > { %v8240_v31 = vpop.f32.mrf.mxu0 }
 0x3a2   : > { %v8281_v12 = vpop.f32.mrf.mxu1 }
 0x3db   : > { %v8317_v46 = vpop.f32.mrf.mxu0 }
 0x3dc   : > { %v8358_v23 = vpop.f32.mrf.mxu1  ;;  %v8318_v50 = vadd.f32 %v8317_v46, %v8277_v38 }
 0x3dd   : > { %v8319_v51 = vpop.f32.mrf.mxu0 }
 0x3de   : > { %v8360_v27 = vpop.f32.mrf.mxu1  ;;  %v8320_v25 = vadd.f32 %v8319_v51, %v8279_v49  ;;  %v8359_v54 = vadd.f32 %v8358_v23, %v8318_v50 }
 0x3df   : > { %v8321_v53 = vpop.f32.mrf.mxu0 }
 0x3e0   : > { %v8362_v18 = vpop.f32.mrf.mxu1  ;;  %v8361_v55 = vadd.f32 %v8360_v27, %v8320_v25 }
 0x3e1   : > { %v8322_v60 = vpop.f32.mrf.mxu0 }
 0x3e2   : > { %v8363_v61 = vpop.f32.mrf.mxu1  ;;  %v8367_v63 = vcombine.low %v8359_v54, %v8361_v55 }
 0x3e4   : > { %v8374_v1 = vrot.slane %v8367_v63, %v8373_v52 }
 0x3e6   : > { %v8376_v45 = vadd.f32 %v8374_v1, %v4400_v0 }
 0x3e8   : > { %8377 = vst [vmem:[#allocation2] sm:$0xf] %v8376_v45 }
 0x3ef   : > { %v8381_v37 = vld [vmem:[#allocation2] sm:$0xf] }
 0x3f0   : > { %v8401_v3 = vadd.f32 %v8399_v11, %v8381_v37 }
 0x3f2   : > { %vm8402_vm0 = vcmp.gt.f32.partialorder %v8401_v3, 0.0  ;;  %v8403_v13 = vmul.f32 0.01, %v8401_v3 }
 0x3f4   : > { %v8404_v48 = vsel %vm8402_vm0, %v8401_v3, %v8403_v13 }
 0x3f5   : > { %v8412_v41 = vrot.slane %v8404_v48, %v8373_v52 }
 0x3f7   : > { %v8413_v4 = vcombine.high %v8412_v41, %v8412_v41 }
 0x3f9   : > { %v9059_v15 = vpack.c.bf16 %v8413_v4, %v8412_v41 }
 0x3fb   : > { %v8427_v16 = vrot.slane %v9059_v15, %v11030_v10 }
 0x3fd   : > { %9060 = vst.sshfl [vmem:[%s4393_s23] sm:$0x5 pattern:$0x73625140] %v8427_v16 }
 0x3fe PF: > { %s13_s16 = sadd.s32 1, %s9917_s16   ;;  %s11689_s12 = smov %s9905_s13 }
 0x3ff   : > { %p10_p10 = scmp.ge.s32.totalorder %s13_s16, 4   ;;  %s11690_s13 = smov %s9977_s20 }
 0x400   : > { %s11691_s14 = smov %s9913_s15  ;;  %s11692_s15 = smov %s11694_s17 }
 0x401   :  { %12 = sbr.rel (!%p10_p10) target bundleno = 3 (0x3), region = 139 }

</bundles_post_ra>
